<compile_context>
chip_gen: v6e
topology: v6e:2x2x1
jax: 0.10.0
libtpu: 0.0.40
codegen_flags: <defaults>
</compile_context>

<pallas_src>
import math

import jax
import jax.numpy as jnp
from jax.experimental import pallas as pl
from jax.experimental.pallas import tpu as pltpu


def _hebbian_kernel(sp_row_ref, sp_col_ref, pre_tr_ref, post_tr_ref, attn_ref,
                    pre_dec_ref, post_dec_ref, gpre_ref, gpost_ref,
                    wv_ref, bv_ref,
                    out_ref, npre_ref, npost_ref, nattn_ref):
    """One (head, batch-tile, timestep) grid point.

    Block shapes (head / time axes squeezed):
      sp_row_ref : (TB, 1, N)    sp_col_ref : (TB, N, 1)
      state refs : (TB, N, N)    param refs : (N, N)
      wv_ref     : (N, Dh)       bv_ref     : (1, Dh)
      out_ref    : (TB, N, Dh)   n*_ref     : (TB, N, N)   (resident across T)
    """
    t = pl.program_id(2)

    # First timestep of this (head, batch-tile): seed the resident state from HBM.
    @pl.when(t == 0)
    def _():
        npre_ref[...] = pre_tr_ref[...]
        npost_ref[...] = post_tr_ref[...]
        nattn_ref[...] = attn_ref[...]

    pre_sp = sp_row_ref[...]                      # (TB, 1, N) broadcasts along rows
    post_sp = sp_col_ref[...]                     # (TB, N, 1) broadcasts along cols

    # Eligibility-trace updates (decay/gain matrices precomputed in the wrapper, no EUP).
    pre_tr = npre_ref[...] * pre_dec_ref[...] + pre_sp * gpre_ref[...]
    post_tr = npost_ref[...] * post_dec_ref[...] + post_sp * gpost_ref[...]

    # STDP attention update: attn + pre_trace * (post != 0) - post_trace * (pre != 0)
    post_mask = (post_sp != 0).astype(jnp.float32)
    pre_mask = (pre_sp != 0).astype(jnp.float32)
    attn = nattn_ref[...] + pre_tr * post_mask - post_tr * pre_mask

    # Persist recurrent state (VMEM-resident across t; flushed to HBM once per tile).
    npre_ref[...] = pre_tr
    npost_ref[...] = post_tr
    nattn_ref[...] = attn

    # v_proj(attn): one (TB*N, N) @ (N, Dh) MXU pass per (tile, timestep).
    # The leading-dim collapse is sublane-aligned (N % 8 == 0 in practice) -> no copy.
    tb, n, _ = attn.shape
    dh = wv_ref.shape[-1]
    acc = jnp.dot(attn.reshape(tb * n, n), wv_ref[...],
                  preferred_element_type=jnp.float32)
    acc = acc + bv_ref[...]                       # 1/sqrt(N+Dh) folded into wv/bv
    out_ref[...] = acc.reshape(tb, n, dh).astype(out_ref.dtype)


def _vmem_block_bytes(tb, n, dh, itemsize=4):
    """Rough VMEM working-set estimate for one (head, batch-tile)."""
    state = tb * n * n * itemsize
    total = 12 * state                               # 3 state inputs + 3 outputs, x2 buffers
    total += 2 * tb * 8 * n * itemsize               # spikes row blocks (sublane-padded)
    total += 2 * tb * n * 128 * itemsize             # spikes col blocks (lane-padded)
    total += 2 * tb * n * max(dh, 128) * itemsize    # attention-coefficient output blocks
    total += 8 * n * n * itemsize                    # 4 (N, N) parameter blocks, x2 buffers
    total += 2 * n * max(dh, 128) * itemsize + 2 * 8 * 128 * itemsize   # wv, bv
    return total


def _pick_batch_tile(batch, n, dh, budget_bytes):
    tb = batch
    while tb > 1 and _vmem_block_bytes(tb, n, dh) > budget_bytes:
        tb -= 1
        while batch % tb:
            tb -= 1
    return tb


def _vmem_budget_bytes():
    """Generation-aware VMEM budget (~96 MiB on 128 MiB chips, ~48 MiB on v7x)."""
    try:
        cap = int(pltpu.get_tpu_info().vmem_capacity_bytes)
    except Exception:
        cap = 64 << 20                               # conservative default (v7x per-core)
    return (cap * 3) // 4


def prepare_hebbian_params(lpre, lpost, pre_tau, post_tau, wv, bv, *, dt=1.0):
    """Parameter transforms hoisted out of the per-sequence forward (cache these).

    Returns (pre_decay, post_decay, gain_pre, gain_post, wv_scaled, bv_scaled).
    wv is stored transposed vs torch Linear: (H, N, Dh); the kernel does attn @ wv.
    """
    _, n, dh = wv.shape
    scale = 1.0 / math.sqrt(n + dh)
    pre_decay = 1.0 - dt / jnp.exp(pre_tau)          # (H, N, N)
    post_decay = 1.0 - dt / jnp.exp(post_tau)        # (H, N, N)
    gain_pre = jnp.exp(lpre)                         # (H, N, N)
    gain_post = jnp.exp(lpost)                       # (H, N, N)
    return (pre_decay, post_decay, gain_pre, gain_post, wv * scale, bv * scale)


def multihead_hebbian_forward(spikes, pre_trace, post_trace, attention,
                              pre_decay, post_decay, gain_pre, gain_post,
                              wv_scaled, bv_scaled, *, batch_tile=None):
    """Fused multi-timestep forward.

    spikes: (T, B, N) sequence (or (B, N) for a single step, matching the module).
    Returns (coeffs (T, B, N, H*Dh), new_pre_trace, new_post_trace, new_attention).

    For true in-place state update, jit with donate_argnums=(1, 2, 3) and do NOT reuse
    the passed-in state arrays afterwards (use the returned ones).
    """
    squeeze_t = (spikes.ndim == 2)
    if squeeze_t:
        spikes = spikes[None]
    T, B, N = spikes.shape
    H = pre_trace.shape[0]
    Dh = wv_scaled.shape[-1]

    spikes_row = spikes[:, :, None, :]               # (T, B, 1, N)
    spikes_col = spikes[:, :, :, None]               # (T, B, N, 1)

    budget = _vmem_budget_bytes()
    if batch_tile is None:
        batch_tile = _pick_batch_tile(B, N, Dh, budget)
    assert B % batch_tile == 0, "batch_tile must divide the batch size"
    TB = batch_tile
    nb = B // TB

    est = _vmem_block_bytes(TB, N, Dh)
    vmem_limit = int(max(min(est + (4 << 20), budget), 32 << 20))

    # State blocks indexed only by (h, b): VMEM-resident across the whole T axis.
    state_spec = pl.BlockSpec((None, TB, N, N), lambda h, b, t: (h, b, 0, 0))
    param_spec = pl.BlockSpec((None, N, N), lambda h, b, t: (h, 0, 0))

    lane_aligned = (Dh % 128 == 0)
    if lane_aligned:
        out_main_shape = jax.ShapeDtypeStruct((T, B, N, H * Dh), jnp.float32)
        out_main_spec = pl.BlockSpec((None, TB, N, Dh), lambda h, b, t: (t, b, 0, h))
    else:
        out_main_shape = jax.ShapeDtypeStruct((H, T, B, N, Dh), jnp.float32)
        out_main_spec = pl.BlockSpec((None, None, TB, N, Dh),
                                     lambda h, b, t: (h, t, b, 0, 0))

    out, new_pre, new_post, new_attn = pl.pallas_call(
        _hebbian_kernel,
        out_shape=(out_main_shape,
                   jax.ShapeDtypeStruct(pre_trace.shape, pre_trace.dtype),
                   jax.ShapeDtypeStruct(post_trace.shape, post_trace.dtype),
                   jax.ShapeDtypeStruct(attention.shape, attention.dtype)),
        grid_spec=pltpu.PrefetchScalarGridSpec(
            num_scalar_prefetch=0,
            grid=(H, nb, T),                         # T innermost: state stays resident
            in_specs=[
                pl.BlockSpec((None, TB, 1, N), lambda h, b, t: (t, b, 0, 0)),  # spikes row
                pl.BlockSpec((None, TB, N, 1), lambda h, b, t: (t, b, 0, 0)),  # spikes col
                state_spec,                                                    # pre_trace
                state_spec,                                                    # post_trace
                state_spec,                                                    # attention
                param_spec,                                                    # pre_decay
                param_spec,                                                    # post_decay
                param_spec,                                                    # gain_pre
                param_spec,                                                    # gain_post
                pl.BlockSpec((None, N, Dh), lambda h, b, t: (h, 0, 0)),        # v_proj W (scaled)
                pl.BlockSpec((None, 1, Dh), lambda h, b, t: (h, 0, 0)),        # v_proj b (scaled)
            ],
            out_specs=(out_main_spec, state_spec, state_spec, state_spec),
        ),
        # Update the three recurrent-state buffers in place (inputs 2,3,4 -> outputs 1,2,3).
        input_output_aliases={2: 1, 3: 2, 4: 3},
        compiler_params=pltpu.CompilerParams(
            dimension_semantics=("parallel", "parallel", "arbitrary"),
            vmem_limit_bytes=vmem_limit),
    )(spikes_row, spikes_col, pre_trace, post_trace, attention,
      pre_decay, post_decay, gain_pre, gain_post, wv_scaled, bv_scaled)

    if not lane_aligned:
        # (H, T, B, N, Dh) -> (T, B, N, H*Dh) == torch.cat over heads along dim=-1
        out = jnp.transpose(out, (1, 2, 3, 0, 4)).reshape(T, B, N, H * Dh)
    if squeeze_t:
        out = out[0]
    return out, new_pre, new_post, new_attn


def ref_forward_seq(spikes_seq, pre_trace, post_trace, attention,
                    lpre, lpost, pre_tau, post_tau, wv, bv, *, dt=1.0):
    """Pure-JAX reference mirroring the PyTorch forward, stepped over T timesteps."""
    H = pre_trace.shape[0]
    N = pre_trace.shape[-1]
    Dh = wv.shape[-1]
    scale = 1.0 / math.sqrt(N + Dh)
    pre_t, post_t, attn_t = pre_trace, post_trace, attention
    outs = []
    for t in range(spikes_seq.shape[0]):
        spikes = spikes_seq[t]
        pre_sp = spikes[:, None, :]
        post_sp = spikes[:, :, None]
        step_outs, n_pre, n_post, n_attn = [], [], [], []
        for h in range(H):
            p = pre_t[h] * (1.0 - dt / jnp.exp(pre_tau[h])) + pre_sp * jnp.exp(lpre[h])
            q = post_t[h] * (1.0 - dt / jnp.exp(post_tau[h])) + post_sp * jnp.exp(lpost[h])
            a = (attn_t[h]
                 + p * (post_sp != 0).astype(jnp.float32)
                 - q * (pre_sp != 0).astype(jnp.float32))
            o = jnp.matmul(a, wv[h], precision=jax.lax.Precision.HIGHEST) + bv[h]
            step_outs.append(o * scale)
            n_pre.append(p); n_post.append(q); n_attn.append(a)
        pre_t, post_t, attn_t = jnp.stack(n_pre), jnp.stack(n_post), jnp.stack(n_attn)
        outs.append(jnp.concatenate(step_outs, axis=-1))
    return jnp.stack(outs), pre_t, post_t, attn_t


if __name__ == "__main__":
    dt = 1.0
    w_pre, w_post = 1.0, 0.5
    configs = [
        # Lane-aligned head dim (Dh = 128): direct (T, B, N, H*Dh) output path.
        dict(T=3, B=4, N=128, H=2, embed_dim=256, tau_s=(0.5, 1.0)),
        # Small module-default-like shapes (Dh = 8): fallback output path.
        dict(T=2, B=2, N=32, H=2, embed_dim=16, tau_s=(0.5, 1.0)),
    ]

    for cfg in configs:
        T, B, N, H, embed_dim = cfg["T"], cfg["B"], cfg["N"], cfg["H"], cfg["embed_dim"]
        Dh = embed_dim // H

        key = jax.random.PRNGKey(0)
        k_sp, k_lpre, k_lpost, k_w, k_b, k_sp2 = jax.random.split(key, 6)

        # Input spike sequence (binary, like spike trains).
        spikes_seq = jax.random.bernoulli(k_sp, p=0.3, shape=(T, B, N)).astype(jnp.float32)

        # Parameter init matching HebbianAttentionLayer.__init__ (deterministic via PRNGKey).
        std = 1.0 / math.sqrt(2 * N)
        lpre = math.log(w_pre) + std * jax.random.normal(k_lpre, (H, N, N), jnp.float32)
        lpost = math.log(w_post) + std * jax.random.normal(k_lpost, (H, N, N), jnp.float32)
        pre_tau = jnp.stack([jnp.full((N, N), math.log(t_), jnp.float32) for t_ in cfg["tau_s"]])
        post_tau = pre_tau

        # v_proj (torch Linear-style), stored transposed as (H, N, Dh).
        bound = 1.0 / math.sqrt(N)
        wv = jax.random.uniform(k_w, (H, N, Dh), jnp.float32, -bound, bound)
        bv = jax.random.uniform(k_b, (H, 1, Dh), jnp.float32, -bound, bound)

        # Recurrent buffers start at zero (as in the module's __init__).
        pre_trace = jnp.zeros((H, B, N, N), jnp.float32)
        post_trace = jnp.zeros((H, B, N, N), jnp.float32)
        attention = jnp.zeros((H, B, N, N), jnp.float32)

        # Reference over the full sequence (materialized before the state is donated).
        ref_out, ref_pre, ref_post, ref_attn = ref_forward_seq(
            spikes_seq, pre_trace, post_trace, attention,
            lpre, lpost, pre_tau, post_tau, wv, bv, dt=dt)
        jax.block_until_ready((ref_out, ref_pre, ref_post, ref_attn))

        # Hoisted (cacheable) parameter transforms; scale folded into wv/bv.
        params = prepare_hebbian_params(lpre, lpost, pre_tau, post_tau, wv, bv, dt=dt)

        # Donate the three recurrent-state buffers so input_output_aliases is truly in place.
        fwd = jax.jit(multihead_hebbian_forward, donate_argnums=(1, 2, 3))
        out, new_pre, new_post, new_attn = fwd(
            spikes_seq, pre_trace, post_trace, attention, *params)
        out = jax.block_until_ready(out)

        assert out.shape == (T, B, N, embed_dim)
        assert jnp.allclose(out, ref_out, atol=2e-4, rtol=2e-4), "output mismatch"
        assert jnp.allclose(new_pre, ref_pre, atol=1e-5, rtol=1e-5), "pre_trace mismatch"
        assert jnp.allclose(new_post, ref_post, atol=1e-5, rtol=1e-5), "post_trace mismatch"
        assert jnp.allclose(new_attn, ref_attn, atol=1e-5, rtol=1e-5), "attention mismatch"

        # Second call: recurrent state advances across calls (donated in place).
        spikes_seq2 = jax.random.bernoulli(k_sp2, p=0.3, shape=(T, B, N)).astype(jnp.float32)
        ref_out2, _, _, ref_attn2 = ref_forward_seq(
            spikes_seq2, ref_pre, ref_post, ref_attn,
            lpre, lpost, pre_tau, post_tau, wv, bv, dt=dt)
        jax.block_until_ready(ref_out2)
        out2, new_pre2, new_post2, new_attn2 = fwd(
            spikes_seq2, new_pre, new_post, new_attn, *params)
        out2 = jax.block_until_ready(out2)
        assert jnp.allclose(out2, ref_out2, atol=3e-4, rtol=3e-4), "step-2 output mismatch"
        assert jnp.allclose(new_attn2, ref_attn2, atol=1e-4, rtol=1e-4), "step-2 attention mismatch"

    print("KERNEL_OK")
</pallas_src>

<mosaic_0001>
module attributes {stable_mosaic.version = 11 : i64} {
  func.func @_hebbian_kernel(%arg0: i32, %arg1: i32, %arg2: i32, %arg3: memref<1x4x1x128xf32, #tpu.memory_space<vmem>>, %arg4: memref<1x4x128x1xf32, #tpu.memory_space<vmem>>, %arg5: memref<1x4x128x128xf32, #tpu.memory_space<vmem>>, %arg6: memref<1x4x128x128xf32, #tpu.memory_space<vmem>>, %arg7: memref<1x4x128x128xf32, #tpu.memory_space<vmem>>, %arg8: memref<1x128x128xf32, #tpu.memory_space<vmem>>, %arg9: memref<1x128x128xf32, #tpu.memory_space<vmem>>, %arg10: memref<1x128x128xf32, #tpu.memory_space<vmem>>, %arg11: memref<1x128x128xf32, #tpu.memory_space<vmem>>, %arg12: memref<1x128x128xf32, #tpu.memory_space<vmem>>, %arg13: memref<1x1x128xf32, #tpu.memory_space<vmem>>, %arg14: memref<1x4x128x128xf32, #tpu.memory_space<vmem>>, %arg15: memref<1x4x128x128xf32, #tpu.memory_space<vmem>>, %arg16: memref<1x4x128x128xf32, #tpu.memory_space<vmem>>, %arg17: memref<1x4x128x128xf32, #tpu.memory_space<vmem>>) attributes {dimension_semantics = [#tpu.dimension_semantics<parallel>, #tpu.dimension_semantics<parallel>, #tpu.dimension_semantics<arbitrary>], iteration_bounds = array<i64: 2, 1, 3>, scalar_prefetch = 0 : i64, scratch_operands = 0 : i64, tpu.core_type = #tpu.core_type<tc>, window_params = [{transform_indices = @transform_0, window_bounds = array<i64: 1, 4, 1, 128>}, {transform_indices = @transform_1, window_bounds = array<i64: 1, 4, 128, 1>}, {transform_indices = @transform_2, window_bounds = array<i64: 1, 4, 128, 128>}, {transform_indices = @transform_3, window_bounds = array<i64: 1, 4, 128, 128>}, {transform_indices = @transform_4, window_bounds = array<i64: 1, 4, 128, 128>}, {transform_indices = @transform_5, window_bounds = array<i64: 1, 128, 128>}, {transform_indices = @transform_6, window_bounds = array<i64: 1, 128, 128>}, {transform_indices = @transform_7, window_bounds = array<i64: 1, 128, 128>}, {transform_indices = @transform_8, window_bounds = array<i64: 1, 128, 128>}, {transform_indices = @transform_9, window_bounds = array<i64: 1, 128, 128>}, {transform_indices = @transform_10, window_bounds = array<i64: 1, 1, 128>}, {transform_indices = @transform_11, window_bounds = array<i64: 1, 4, 128, 128>}, {transform_indices = @transform_12, window_bounds = array<i64: 1, 4, 128, 128>}, {transform_indices = @transform_13, window_bounds = array<i64: 1, 4, 128, 128>}, {transform_indices = @transform_14, window_bounds = array<i64: 1, 4, 128, 128>}]} {
    %c0_i32 = arith.constant 0 : i32
    %0 = arith.cmpi eq, %arg2, %c0_i32 : i32
    %1 = arith.extui %0 : i1 to i32
    %c0_i32_0 = arith.constant 0 : i32
    %2 = arith.cmpi ne, %1, %c0_i32_0 : i32
    scf.if %2 {
      %c0_56 = arith.constant 0 : index
      %c0_57 = arith.constant 0 : index
      %c0_58 = arith.constant 0 : index
      %c0_59 = arith.constant 0 : index
      %72 = vector.load %arg5[%c0_56, %c0_57, %c0_58, %c0_59] : memref<1x4x128x128xf32, #tpu.memory_space<vmem>>, vector<1x4x128x128xf32>
      %73 = vector.shape_cast %72 : vector<1x4x128x128xf32> to vector<4x128x128xf32>
      %c0_60 = arith.constant 0 : index
      %c0_61 = arith.constant 0 : index
      %c0_62 = arith.constant 0 : index
      %c0_63 = arith.constant 0 : index
      %74 = vector.load %arg15[%c0_60, %c0_61, %c0_62, %c0_63] : memref<1x4x128x128xf32, #tpu.memory_space<vmem>>, vector<1x4x128x128xf32>
      %75 = vector.shape_cast %74 : vector<1x4x128x128xf32> to vector<4x128x128xf32>
      %76 = vector.shape_cast %73 : vector<4x128x128xf32> to vector<1x4x128x128xf32>
      tpu.vector_store %arg15[%c0_60, %c0_61, %c0_62, %c0_63], %76 {strides = array<i32>} : memref<1x4x128x128xf32, #tpu.memory_space<vmem>>, vector<1x4x128x128xf32>,
      %c0_64 = arith.constant 0 : index
      %c0_65 = arith.constant 0 : index
      %c0_66 = arith.constant 0 : index
      %c0_67 = arith.constant 0 : index
      %77 = vector.load %arg6[%c0_64, %c0_65, %c0_66, %c0_67] : memref<1x4x128x128xf32, #tpu.memory_space<vmem>>, vector<1x4x128x128xf32>
      %78 = vector.shape_cast %77 : vector<1x4x128x128xf32> to vector<4x128x128xf32>
      %c0_68 = arith.constant 0 : index
      %c0_69 = arith.constant 0 : index
      %c0_70 = arith.constant 0 : index
      %c0_71 = arith.constant 0 : index
      %79 = vector.load %arg16[%c0_68, %c0_69, %c0_70, %c0_71] : memref<1x4x128x128xf32, #tpu.memory_space<vmem>>, vector<1x4x128x128xf32>
      %80 = vector.shape_cast %79 : vector<1x4x128x128xf32> to vector<4x128x128xf32>
      %81 = vector.shape_cast %78 : vector<4x128x128xf32> to vector<1x4x128x128xf32>
      tpu.vector_store %arg16[%c0_68, %c0_69, %c0_70, %c0_71], %81 {strides = array<i32>} : memref<1x4x128x128xf32, #tpu.memory_space<vmem>>, vector<1x4x128x128xf32>,
      %c0_72 = arith.constant 0 : index
      %c0_73 = arith.constant 0 : index
      %c0_74 = arith.constant 0 : index
      %c0_75 = arith.constant 0 : index
      %82 = vector.load %arg7[%c0_72, %c0_73, %c0_74, %c0_75] : memref<1x4x128x128xf32, #tpu.memory_space<vmem>>, vector<1x4x128x128xf32>
      %83 = vector.shape_cast %82 : vector<1x4x128x128xf32> to vector<4x128x128xf32>
      %c0_76 = arith.constant 0 : index
      %c0_77 = arith.constant 0 : index
      %c0_78 = arith.constant 0 : index
      %c0_79 = arith.constant 0 : index
      %84 = vector.load %arg17[%c0_76, %c0_77, %c0_78, %c0_79] : memref<1x4x128x128xf32, #tpu.memory_space<vmem>>, vector<1x4x128x128xf32>
      %85 = vector.shape_cast %84 : vector<1x4x128x128xf32> to vector<4x128x128xf32>
      %86 = vector.shape_cast %83 : vector<4x128x128xf32> to vector<1x4x128x128xf32>
      tpu.vector_store %arg17[%c0_76, %c0_77, %c0_78, %c0_79], %86 {strides = array<i32>} : memref<1x4x128x128xf32, #tpu.memory_space<vmem>>, vector<1x4x128x128xf32>,
    } else {
    }
    %c0 = arith.constant 0 : index
    %c0_1 = arith.constant 0 : index
    %c0_2 = arith.constant 0 : index
    %c0_3 = arith.constant 0 : index
    %3 = vector.load %arg3[%c0, %c0_1, %c0_2, %c0_3] : memref<1x4x1x128xf32, #tpu.memory_space<vmem>>, vector<1x4x1x128xf32>
    %4 = vector.shape_cast %3 : vector<1x4x1x128xf32> to vector<4x1x128xf32>
    %c0_4 = arith.constant 0 : index
    %c0_5 = arith.constant 0 : index
    %c0_6 = arith.constant 0 : index
    %c0_7 = arith.constant 0 : index
    %5 = vector.load %arg4[%c0_4, %c0_5, %c0_6, %c0_7] : memref<1x4x128x1xf32, #tpu.memory_space<vmem>>, vector<1x4x128x1xf32>
    %6 = vector.shape_cast %5 : vector<1x4x128x1xf32> to vector<4x128x1xf32>
    %c0_8 = arith.constant 0 : index
    %c0_9 = arith.constant 0 : index
    %c0_10 = arith.constant 0 : index
    %c0_11 = arith.constant 0 : index
    %7 = vector.load %arg15[%c0_8, %c0_9, %c0_10, %c0_11] : memref<1x4x128x128xf32, #tpu.memory_space<vmem>>, vector<1x4x128x128xf32>
    %8 = vector.shape_cast %7 : vector<1x4x128x128xf32> to vector<4x128x128xf32>
    %c0_12 = arith.constant 0 : index
    %c0_13 = arith.constant 0 : index
    %c0_14 = arith.constant 0 : index
    %9 = vector.load %arg8[%c0_12, %c0_13, %c0_14] : memref<1x128x128xf32, #tpu.memory_space<vmem>>, vector<1x128x128xf32>
    %10 = vector.shape_cast %9 : vector<1x128x128xf32> to vector<128x128xf32>
    %11 = vector.shape_cast %10 : vector<128x128xf32> to vector<1x128x128xf32>
    %12 = vector.broadcast %11 : vector<1x128x128xf32> to vector<4x128x128xf32>
    %13 = arith.mulf %8, %12 : vector<4x128x128xf32>
    %c0_15 = arith.constant 0 : index
    %c0_16 = arith.constant 0 : index
    %c0_17 = arith.constant 0 : index
    %14 = vector.load %arg10[%c0_15, %c0_16, %c0_17] : memref<1x128x128xf32, #tpu.memory_space<vmem>>, vector<1x128x128xf32>
    %15 = vector.shape_cast %14 : vector<1x128x128xf32> to vector<128x128xf32>
    %16 = vector.shape_cast %15 : vector<128x128xf32> to vector<1x128x128xf32>
    %17 = vector.broadcast %4 : vector<4x1x128xf32> to vector<4x128x128xf32>
    %18 = vector.broadcast %16 : vector<1x128x128xf32> to vector<4x128x128xf32>
    %19 = arith.mulf %17, %18 : vector<4x128x128xf32>
    %20 = arith.addf %13, %19 : vector<4x128x128xf32>
    %c0_18 = arith.constant 0 : index
    %c0_19 = arith.constant 0 : index
    %c0_20 = arith.constant 0 : index
    %c0_21 = arith.constant 0 : index
    %21 = vector.load %arg16[%c0_18, %c0_19, %c0_20, %c0_21] : memref<1x4x128x128xf32, #tpu.memory_space<vmem>>, vector<1x4x128x128xf32>
    %22 = vector.shape_cast %21 : vector<1x4x128x128xf32> to vector<4x128x128xf32>
    %c0_22 = arith.constant 0 : index
    %c0_23 = arith.constant 0 : index
    %c0_24 = arith.constant 0 : index
    %23 = vector.load %arg9[%c0_22, %c0_23, %c0_24] : memref<1x128x128xf32, #tpu.memory_space<vmem>>, vector<1x128x128xf32>
    %24 = vector.shape_cast %23 : vector<1x128x128xf32> to vector<128x128xf32>
    %25 = vector.shape_cast %24 : vector<128x128xf32> to vector<1x128x128xf32>
    %26 = vector.broadcast %25 : vector<1x128x128xf32> to vector<4x128x128xf32>
    %27 = arith.mulf %22, %26 : vector<4x128x128xf32>
    %c0_25 = arith.constant 0 : index
    %c0_26 = arith.constant 0 : index
    %c0_27 = arith.constant 0 : index
    %28 = vector.load %arg11[%c0_25, %c0_26, %c0_27] : memref<1x128x128xf32, #tpu.memory_space<vmem>>, vector<1x128x128xf32>
    %29 = vector.shape_cast %28 : vector<1x128x128xf32> to vector<128x128xf32>
    %30 = vector.shape_cast %29 : vector<128x128xf32> to vector<1x128x128xf32>
    %31 = vector.broadcast %6 : vector<4x128x1xf32> to vector<4x128x128xf32>
    %32 = vector.broadcast %30 : vector<1x128x128xf32> to vector<4x128x128xf32>
    %33 = arith.mulf %31, %32 : vector<4x128x128xf32>
    %34 = arith.addf %27, %33 : vector<4x128x128xf32>
    %cst = arith.constant 0.000000e+00 : f32
    %35 = vector.broadcast %cst : f32 to vector<4x128x1xf32>
    %36 = arith.cmpf one, %6, %35 : vector<4x128x1xf32>
    %37 = arith.extui %36 : vector<4x128x1xi1> to vector<4x128x1xi32>
    %38 = arith.sitofp %37 : vector<4x128x1xi32> to vector<4x128x1xf32>
    %cst_28 = arith.constant 0.000000e+00 : f32
    %39 = vector.broadcast %cst_28 : f32 to vector<4x1x128xf32>
    %40 = arith.cmpf one, %4, %39 : vector<4x1x128xf32>
    %41 = arith.extui %40 : vector<4x1x128xi1> to vector<4x1x128xi32>
    %42 = arith.sitofp %41 : vector<4x1x128xi32> to vector<4x1x128xf32>
    %c0_29 = arith.constant 0 : index
    %c0_30 = arith.constant 0 : index
    %c0_31 = arith.constant 0 : index
    %c0_32 = arith.constant 0 : index
    %43 = vector.load %arg17[%c0_29, %c0_30, %c0_31, %c0_32] : memref<1x4x128x128xf32, #tpu.memory_space<vmem>>, vector<1x4x128x128xf32>
    %44 = vector.shape_cast %43 : vector<1x4x128x128xf32> to vector<4x128x128xf32>
    %45 = vector.broadcast %38 : vector<4x128x1xf32> to vector<4x128x128xf32>
    %46 = arith.mulf %20, %45 : vector<4x128x128xf32>
    %47 = arith.addf %44, %46 : vector<4x128x128xf32>
    %48 = vector.broadcast %42 : vector<4x1x128xf32> to vector<4x128x128xf32>
    %49 = arith.mulf %34, %48 : vector<4x128x128xf32>
    %50 = arith.subf %47, %49 : vector<4x128x128xf32>
    %c0_33 = arith.constant 0 : index
    %c0_34 = arith.constant 0 : index
    %c0_35 = arith.constant 0 : index
    %c0_36 = arith.constant 0 : index
    %51 = vector.load %arg15[%c0_33, %c0_34, %c0_35, %c0_36] : memref<1x4x128x128xf32, #tpu.memory_space<vmem>>, vector<1x4x128x128xf32>
    %52 = vector.shape_cast %51 : vector<1x4x128x128xf32> to vector<4x128x128xf32>
    %53 = vector.shape_cast %20 : vector<4x128x128xf32> to vector<1x4x128x128xf32>
    tpu.vector_store %arg15[%c0_33, %c0_34, %c0_35, %c0_36], %53 {strides = array<i32>} : memref<1x4x128x128xf32, #tpu.memory_space<vmem>>, vector<1x4x128x128xf32>,
    %c0_37 = arith.constant 0 : index
    %c0_38 = arith.constant 0 : index
    %c0_39 = arith.constant 0 : index
    %c0_40 = arith.constant 0 : index
    %54 = vector.load %arg16[%c0_37, %c0_38, %c0_39, %c0_40] : memref<1x4x128x128xf32, #tpu.memory_space<vmem>>, vector<1x4x128x128xf32>
    %55 = vector.shape_cast %54 : vector<1x4x128x128xf32> to vector<4x128x128xf32>
    %56 = vector.shape_cast %34 : vector<4x128x128xf32> to vector<1x4x128x128xf32>
    tpu.vector_store %arg16[%c0_37, %c0_38, %c0_39, %c0_40], %56 {strides = array<i32>} : memref<1x4x128x128xf32, #tpu.memory_space<vmem>>, vector<1x4x128x128xf32>,
    %c0_41 = arith.constant 0 : index
    %c0_42 = arith.constant 0 : index
    %c0_43 = arith.constant 0 : index
    %c0_44 = arith.constant 0 : index
    %57 = vector.load %arg17[%c0_41, %c0_42, %c0_43, %c0_44] : memref<1x4x128x128xf32, #tpu.memory_space<vmem>>, vector<1x4x128x128xf32>
    %58 = vector.shape_cast %57 : vector<1x4x128x128xf32> to vector<4x128x128xf32>
    %59 = vector.shape_cast %50 : vector<4x128x128xf32> to vector<1x4x128x128xf32>
    tpu.vector_store %arg17[%c0_41, %c0_42, %c0_43, %c0_44], %59 {strides = array<i32>} : memref<1x4x128x128xf32, #tpu.memory_space<vmem>>, vector<1x4x128x128xf32>,
    %60 = vector.shape_cast %50 : vector<4x128x128xf32> to vector<512x128xf32>
    %c0_45 = arith.constant 0 : index
    %c0_46 = arith.constant 0 : index
    %c0_47 = arith.constant 0 : index
    %61 = vector.load %arg12[%c0_45, %c0_46, %c0_47] : memref<1x128x128xf32, #tpu.memory_space<vmem>>, vector<1x128x128xf32>
    %62 = vector.shape_cast %61 : vector<1x128x128xf32> to vector<128x128xf32>
    %cst_48 = arith.constant dense<0.000000e+00> : vector<512x128xf32>
    %63 = tpu.matmul %60, %62, %cst_48 {dimension_numbers = #tpu.dot_dimension_numbers<[1], [0], [0], [1], [0, 0, 1, 1], [], []>} : vector<512x128xf32>, vector<128x128xf32>, vector<512x128xf32> -> vector<512x128xf32>
    %c0_49 = arith.constant 0 : index
    %c0_50 = arith.constant 0 : index
    %c0_51 = arith.constant 0 : index
    %64 = vector.load %arg13[%c0_49, %c0_50, %c0_51] : memref<1x1x128xf32, #tpu.memory_space<vmem>>, vector<1x1x128xf32>
    %65 = vector.shape_cast %64 : vector<1x1x128xf32> to vector<1x128xf32>
    %66 = vector.broadcast %65 : vector<1x128xf32> to vector<512x128xf32>
    %67 = arith.addf %63, %66 : vector<512x128xf32>
    %68 = vector.shape_cast %67 : vector<512x128xf32> to vector<4x128x128xf32>
    %c0_52 = arith.constant 0 : index
    %c0_53 = arith.constant 0 : index
    %c0_54 = arith.constant 0 : index
    %c0_55 = arith.constant 0 : index
    %69 = vector.load %arg14[%c0_52, %c0_53, %c0_54, %c0_55] : memref<1x4x128x128xf32, #tpu.memory_space<vmem>>, vector<1x4x128x128xf32>
    %70 = vector.shape_cast %69 : vector<1x4x128x128xf32> to vector<4x128x128xf32>
    %71 = vector.shape_cast %68 : vector<4x128x128xf32> to vector<1x4x128x128xf32>
    tpu.vector_store %arg14[%c0_52, %c0_53, %c0_54, %c0_55], %71 {strides = array<i32>} : memref<1x4x128x128xf32, #tpu.memory_space<vmem>>, vector<1x4x128x128xf32>,
    return
  }
  func.func @transform_0(%arg0: i32, %arg1: i32, %arg2: i32) -> (i32, i32, i32, i32) {
    %c0_i32 = arith.constant 0 : i32
    %c0_i32_0 = arith.constant 0 : i32
    %c0_i32_1 = arith.constant 0 : i32
    return %arg2, %arg1, %c0_i32, %c0_i32_0 : i32, i32, i32, i32
  }
  func.func @transform_1(%arg0: i32, %arg1: i32, %arg2: i32) -> (i32, i32, i32, i32) {
    %c0_i32 = arith.constant 0 : i32
    %c0_i32_0 = arith.constant 0 : i32
    %c0_i32_1 = arith.constant 0 : i32
    return %arg2, %arg1, %c0_i32, %c0_i32_0 : i32, i32, i32, i32
  }
  func.func @transform_2(%arg0: i32, %arg1: i32, %arg2: i32) -> (i32, i32, i32, i32) {
    %c0_i32 = arith.constant 0 : i32
    %c0_i32_0 = arith.constant 0 : i32
    %c0_i32_1 = arith.constant 0 : i32
    return %arg0, %arg1, %c0_i32, %c0_i32_0 : i32, i32, i32, i32
  }
  func.func @transform_3(%arg0: i32, %arg1: i32, %arg2: i32) -> (i32, i32, i32, i32) {
    %c0_i32 = arith.constant 0 : i32
    %c0_i32_0 = arith.constant 0 : i32
    %c0_i32_1 = arith.constant 0 : i32
    return %arg0, %arg1, %c0_i32, %c0_i32_0 : i32, i32, i32, i32
  }
  func.func @transform_4(%arg0: i32, %arg1: i32, %arg2: i32) -> (i32, i32, i32, i32) {
    %c0_i32 = arith.constant 0 : i32
    %c0_i32_0 = arith.constant 0 : i32
    %c0_i32_1 = arith.constant 0 : i32
    return %arg0, %arg1, %c0_i32, %c0_i32_0 : i32, i32, i32, i32
  }
  func.func @transform_5(%arg0: i32, %arg1: i32, %arg2: i32) -> (i32, i32, i32) {
    %c0_i32 = arith.constant 0 : i32
    %c0_i32_0 = arith.constant 0 : i32
    %c0_i32_1 = arith.constant 0 : i32
    return %arg0, %c0_i32, %c0_i32_0 : i32, i32, i32
  }
  func.func @transform_6(%arg0: i32, %arg1: i32, %arg2: i32) -> (i32, i32, i32) {
    %c0_i32 = arith.constant 0 : i32
    %c0_i32_0 = arith.constant 0 : i32
    %c0_i32_1 = arith.constant 0 : i32
    return %arg0, %c0_i32, %c0_i32_0 : i32, i32, i32
  }
  func.func @transform_7(%arg0: i32, %arg1: i32, %arg2: i32) -> (i32, i32, i32) {
    %c0_i32 = arith.constant 0 : i32
    %c0_i32_0 = arith.constant 0 : i32
    %c0_i32_1 = arith.constant 0 : i32
    return %arg0, %c0_i32, %c0_i32_0 : i32, i32, i32
  }
  func.func @transform_8(%arg0: i32, %arg1: i32, %arg2: i32) -> (i32, i32, i32) {
    %c0_i32 = arith.constant 0 : i32
    %c0_i32_0 = arith.constant 0 : i32
    %c0_i32_1 = arith.constant 0 : i32
    return %arg0, %c0_i32, %c0_i32_0 : i32, i32, i32
  }
  func.func @transform_9(%arg0: i32, %arg1: i32, %arg2: i32) -> (i32, i32, i32) {
    %c0_i32 = arith.constant 0 : i32
    %c0_i32_0 = arith.constant 0 : i32
    %c0_i32_1 = arith.constant 0 : i32
    return %arg0, %c0_i32, %c0_i32_0 : i32, i32, i32
  }
  func.func @transform_10(%arg0: i32, %arg1: i32, %arg2: i32) -> (i32, i32, i32) {
    %c0_i32 = arith.constant 0 : i32
    %c0_i32_0 = arith.constant 0 : i32
    %c0_i32_1 = arith.constant 0 : i32
    return %arg0, %c0_i32, %c0_i32_0 : i32, i32, i32
  }
  func.func @transform_11(%arg0: i32, %arg1: i32, %arg2: i32) -> (i32, i32, i32, i32) {
    %c0_i32 = arith.constant 0 : i32
    %c0_i32_0 = arith.constant 0 : i32
    return %arg2, %arg1, %c0_i32, %arg0 : i32, i32, i32, i32
  }
  func.func @transform_12(%arg0: i32, %arg1: i32, %arg2: i32) -> (i32, i32, i32, i32) {
    %c0_i32 = arith.constant 0 : i32
    %c0_i32_0 = arith.constant 0 : i32
    %c0_i32_1 = arith.constant 0 : i32
    return %arg0, %arg1, %c0_i32, %c0_i32_0 : i32, i32, i32, i32
  }
  func.func @transform_13(%arg0: i32, %arg1: i32, %arg2: i32) -> (i32, i32, i32, i32) {
    %c0_i32 = arith.constant 0 : i32
    %c0_i32_0 = arith.constant 0 : i32
    %c0_i32_1 = arith.constant 0 : i32
    return %arg0, %arg1, %c0_i32, %c0_i32_0 : i32, i32, i32, i32
  }
  func.func @transform_14(%arg0: i32, %arg1: i32, %arg2: i32) -> (i32, i32, i32, i32) {
    %c0_i32 = arith.constant 0 : i32
    %c0_i32_0 = arith.constant 0 : i32
    %c0_i32_1 = arith.constant 0 : i32
    return %arg0, %arg1, %c0_i32, %c0_i32_0 : i32, i32, i32, i32
  }
}

</mosaic_0001>

<bundles_post_ra>
// kernel: multihead_hebbian_forward.1
= control target key start
LH: loop header
LB: loop body
LE: loop exit
PB: predicated region body
PF: predicated region fallthrough
CT: control target
= control target key end

     0   :  { %s9042_s0 = inlined_call_operand.hbm [shape: f32[3,4,1,128], index: 0, kind: input, shape index: {}]   ;;  %s9043_s1 = inlined_call_operand.vmem [shape: f32[3,4,128,1], index: 1, kind: input, shape index: {}]   ;;  %s9044_s2 = inlined_call_operand.hbm [shape: f32[2,4,128,128], index: 2, kind: input, shape index: {}, may-alias: {2,12}]   ;;  %s9045_s3 = inlined_call_operand.hbm [shape: f32[2,4,128,128], index: 3, kind: input, shape index: {}, may-alias: {3,13}]   ;;  %s9046_s4 = inlined_call_operand.hbm [shape: f32[2,4,128,128], index: 4, kind: input, shape index: {}, may-alias: {4,14}]   ;;  %s9047_s5 = inlined_call_operand.hbm [shape: f32[2,128,128], index: 5, kind: input, shape index: {}]   ;;  %s9048_s6 = inlined_call_operand.hbm [shape: f32[2,128,128], index: 6, kind: input, shape index: {}]   ;;  %s9049_s7 = inlined_call_operand.hbm [shape: f32[2,128,128], index: 7, kind: input, shape index: {}]   ;;  %s9050_s8 = inlined_call_operand.hbm [shape: f32[2,128,128], index: 8, kind: input, shape index: {}]   ;;  %s9051_s9 = inlined_call_operand.hbm [shape: f32[2,128,128], index: 9, kind: input, shape index: {}]   ;;  %s9052_s10 = inlined_call_operand.hbm [shape: f32[2,1,128], index: 10, kind: input, shape index: {}]   ;;  %s9053_s11 = inlined_call_operand.hbm [shape: f32[3,4,128,256], index: 11, kind: output, shape index: {0}]   ;;  %s9054_s12 = inlined_call_operand.hbm [shape: f32[2,4,128,128], index: 12, kind: output, shape index: {1}, may-alias: {2,12}]   ;;  %s9055_s13 = inlined_call_operand.hbm [shape: f32[2,4,128,128], index: 13, kind: output, shape index: {2}, may-alias: {3,13}]   ;;  %s9056_s14 = inlined_call_operand.hbm [shape: f32[2,4,128,128], index: 14, kind: output, shape index: {3}, may-alias: {4,14}]  }
   0x1   :  { %9158 = sst [smem:[#allocation100_spill]] %s9042_s0 }
   0x2   :  { %9159 = sst [smem:[#allocation101_spill]] %s9043_s1 }
   0x3   :  { %9160 = sst [smem:[#allocation102_spill]] %s9044_s2 }
   0x4   :  { %9161 = sst [smem:[#allocation103_spill]] %s9045_s3 }
   0x5   :  { %9162 = sst [smem:[#allocation104_spill]] %s9046_s4 }
   0x6   :  { %9163 = sst [smem:[#allocation105_spill]] %s9047_s5 }
   0x7   :  { %9164 = sst [smem:[#allocation106_spill]] %s9048_s6 }
   0x8   :  { %9165 = sst [smem:[#allocation107_spill]] %s9049_s7 }
   0x9   :  { %9166 = sst [smem:[#allocation108_spill]] %s9050_s8 }
   0xa   :  { %9167 = sst [smem:[#allocation109_spill]] %s9051_s9 }
   0xb   :  { %9168 = sst [smem:[#allocation110_spill]] %s9052_s10 }
   0xc   :  { %9169 = sst [smem:[#allocation111_spill]] %s9053_s11 }
   0xd   :  { %9170 = sst [smem:[#allocation112_spill]] %s9054_s12 }
   0xe   :  { %9171 = sst [smem:[#allocation113_spill]] %s9055_s13 }
   0xf   :  { %9172 = sst [smem:[#allocation114_spill]] %s9056_s14 }
  0x10   :  { %20 = vsyncpa [#allocation3], 0 }
  0x11   :  { %22 = vsyncpa [#allocation3 + $0x1], 0 }
  0x12   :  { %23 = vsyncpa [#allocation6], 0 }
  0x13   :  { %25 = vsyncpa [#allocation6 + $0x1], 0 }
  0x14   :  { %26 = vsyncpa [#allocation9], 0 }
  0x15   :  { %28 = vsyncpa [#allocation9 + $0x1], 0 }
  0x16   :  { %29 = vsyncpa [#allocation12], 0 }
  0x17   :  { %31 = vsyncpa [#allocation12 + $0x1], 0 }
  0x18   :  { %32 = vsyncpa [#allocation15], 0 }
  0x19   :  { %34 = vsyncpa [#allocation15 + $0x1], 0 }
  0x1a   :  { %35 = vsyncpa [#allocation18], 0 }
  0x1b   :  { %37 = vsyncpa [#allocation18 + $0x1], 0 }
  0x1c   :  { %38 = vsyncpa [#allocation4], 0 }
  0x1d   :  { %40 = vsyncpa [#allocation4 + $0x1], 0 }
  0x1e   :  { %41 = vsyncpa [#allocation21], 0 }
  0x1f   :  { %43 = vsyncpa [#allocation21 + $0x1], 0 }
  0x20   :  { %44 = vsyncpa [#allocation24], 0 }
  0x21   :  { %46 = vsyncpa [#allocation24 + $0x1], 0  ;;  %s5861_s29 = smov 0   ;;  %s5863_s30 = smov 0  }
  0x22   :  { %s5865_s15 = smov 0   ;;  %s5867_s16 = smov 0  }
  0x23   :  { %s5869_s17 = smov 0   ;;  %s5871_s18 = smov 0  }
  0x24   :  { %s5873_s19 = smov 0   ;;  %s5875_s20 = smov 0  }
  0x25   :  { %s5877_s21 = smov 0   ;;  %s5879_s22 = smov 0  }
  0x26   :  { %s5881_s23 = smov 0   ;;  %s5883_s24 = smov 0  }
  0x27   :  { %s5885_s25 = smov 0   ;;  %s5887_s26 = smov 0  }
  0x28 LB: > { %9173 = sst [smem:[#allocation34_spill]] %s5709_s29  ;;  %s9060_s27 = sadd.s32 4294967294, %s5761_s26   ;;  %s5761_s26 = sphi %s5887_s26, %s52_s26   ;;  %s5757_s25 = sphi %s5885_s25, %s9395_s25   ;;  %s5753_s24 = sphi %s5883_s24, %s9390_s24   ;;  %s5749_s23 = sphi %s5881_s23, %s9394_s23   ;;  %s5745_s22 = sphi %s5879_s22, %s9389_s22   ;;  %s5741_s21 = sphi %s5877_s21, %s9388_s21   ;;  %s5737_s20 = sphi %s5875_s20, %s9393_s20   ;;  %s5733_s19 = sphi %s5873_s19, %s9392_s19   ;;  %s5729_s18 = sphi %s5871_s18, %s9386_s18   ;;  %s5725_s17 = sphi %s5869_s17, %s9385_s17   ;;  %s5721_s16 = sphi %s5867_s16, %s9384_s16   ;;  %s5717_s15 = sphi %s5865_s15, %s9383_s15   ;;  %s5713_s30 = sphi %s5863_s30, %s9382_s30   ;;  %s5709_s29 = sphi %s5861_s29, %s9381_s29  }
  0x29   : > { %9174 = sst [smem:[#allocation35_spill]] %s5713_s30  ;;  %p88_p0 = scmp.eq.s32.totalorder %s5761_s26, 0 }
  0x2a   : > { %9175 = sst [smem:[#allocation36_spill]] %s5717_s15  ;;  %p9076_p1 = scmp.ne.s32.totalorder %s5729_s18, %s5725_s17 }
  0x2b   : > { %9176 = sst [smem:[#allocation37_spill]] %s5721_s16  ;;  %p149_p2 = scmp.ne.s32.totalorder %s5725_s17, %s5721_s16 }
  0x2c   : > { %9177 = sst [smem:[#allocation38_spill]] %s5725_s17  ;;  %p5939_p3 = scmp.eq.s32.totalorder %s9060_s27, 5 }
  0x2d   : > { %9178 = sst [smem:[#allocation39_spill]] %s5729_s18  ;;  %p145_p4 = por %p9076_p1, %p88_p0 }
  0x2e   : > { %9179 = sst [smem:[#allocation40_spill]] %s5741_s21  ;;  %p9068_p5 = scmp.lt.s32.totalorder %s5761_s26, 6 }
  0x2f   : > { %9180 = sst [smem:[#allocation41_spill]] %s5745_s22  ;;  %p5954_p6 = por %p5939_p3, %p149_p2 }
  0x30   : > { %9181 = sst [smem:[#allocation42_spill]] %s5749_s23  ;;  %s5959_s14 = sand.u32 1, %s5761_s26  }
  0x31   : > { %9182 = sst [smem:[#allocation43_spill]] %s5753_s24  ;;  %s5962_s13 = sand.u32 1, %s5729_s18  }
  0x32   : > { %9183 = sst [smem:[#allocation44_spill]] %s5761_s26  ;;  %s5965_s27 = sshll.u32 %s5962_s13, 9 }
  0x33   : > { %s9184_s28 = scalar_select %p5939_p3, 1, 0 }
  0x34   : > { %s9186_s11 = scalar_select %p5954_p6, 1, 0 }
  0x35   : > { %9185 = sst [smem:[#allocation45_spill]] %s9184_s28  ;;  %s5968_s12 = sshll.u32 %s5757_s25, 13 }
  0x36   : > { %9187 = sst [smem:[#allocation46_spill]] %s9186_s11  ;;  %s540_s10 = scalar_lea.vmem [#allocation5], %s5965_s27 }
  0x37   : > { %9188 = sst [smem:[#allocation47_spill]] %s5962_s13  ;;  %s550_s9 = sshll.u32 %s540_s10, 4  ;;  %s551_s9 = int_to_ptr.vmem [resolvable:$true] %s550_s9 }
  0x38   : > { %s9189_s2 = sld [smem:[#allocation102_spill]]  ;;  %p5977_p7 = pnand %p9068_p5, %p145_p4 }
  0x39   : > { %s5244_s3 = scalar_lea.vmem %s551_s9, 8192  ;;  %s5763_s1 = smov [#allocation5]  }
  0x3a   : > { %p5984_p8 = pneg %p5977_p7  ;;  %p5245_p9 = scmp.ne.s32.totalorder %s551_s9, %s5244_s3 }
  0x3b   : > { %s5249_s10 = sshll.u32 %s5763_s1, 4  ;;  %s5250_s10 = int_to_ptr.vmem [resolvable:$false] %s5249_s10 }
  0x3c   : > { %p5247_p10 = pnand %p5245_p9, %p5984_p8  ;;  %s5251_s23 = scalar_lea.vmem %s5250_s10, 16384 }
  0x3d   : > { %p5252_p12 = scmp.lt.s32.totalorder %s551_s9, %s5250_s10  ;;  %p5253_p13 = scmp.lt.s32.totalorder %s5251_s23, %s5244_s3 }
  0x3e   : > { %s549_s22 = scalar_lea.hbm %s9189_s2, %s5968_s12  ;;  %p5248_p11 = pneg %p5247_p10 }
  0x3f   : > { %p5254_p4 = por %p5253_p13, %p5252_p12 }
  0x41   : > { %p5255_p5 = pnand %p5254_p4, %p5248_p11 }
  0x43   : > { %5258 = shalt.err (!%p5255_p5)
}
  0x44   : > { %s9083_s7 = smov 128   ;;  %s9085_s2 = smov 8  }
  0x45   : > { %s9192_s3 = scalar_lea.sflag [#allocation6], %s5959_s14  ;;  %p4399_p9 = scmp.ge.s32.totalorder %s5761_s26, 1 }
  0x46   : > { %4786 = dma.hbm_to_vmem [thread:$0]  (!%p5977_p7), %s549_s22, 8192, %s551_s9, %s9192_s3, %s9083_s7, %s9083_s7, %s9085_s2  }
  0x47   : > { %p728_p5 = scmp.lt.s32.totalorder %s5761_s26, 7  ;;  %s9195_s4 = sld [smem:[#allocation104_spill]] }
  0x48   : > { %s588_s28 = scalar_lea.vmem [#allocation8], %s5965_s27  ;;  %s6009_s30 = sshll.u32 %s5962_s13, 7 }
  0x49   : > { %p5999_p10 = pnand %p4399_p9, %p728_p5  ;;  %s598_s29 = sshll.u32 %s588_s28, 4  ;;  %s599_s29 = int_to_ptr.vmem [resolvable:$true] %s598_s29 }
  0x4a   : > { %s6012_s15 = sshll.u32 %s5757_s25, 11  ;;  %s9080_s16 = scalar_lea.sflag [#allocation9], %s5959_s14 }
  0x4b   : > { %s9193_s1 = scalar_select %p5999_p10, 1, 0 }
  0x4c   : > { %s5272_s17 = scalar_lea.vmem %s599_s29, 8192  ;;  %s5766_s9 = smov [#allocation8]  }
  0x4d   : > { %9194 = sst [smem:[#allocation48_spill]] %s9193_s1  ;;  %s597_s0 = scalar_lea.hbm %s9195_s4, %s5968_s12 }
  0x4e   : > { %p5273_p11 = scmp.ne.s32.totalorder %s599_s29, %s5272_s17  ;;  %s5277_s22 = sshll.u32 %s5766_s9, 4  ;;  %s5278_s22 = int_to_ptr.vmem [resolvable:$false] %s5277_s22 }
  0x4f   : > { %s5279_s3 = scalar_lea.vmem %s5278_s22, 16384  ;;  %p5280_p4 = scmp.lt.s32.totalorder %s599_s29, %s5278_s22 }
  0x50   : > { %p5275_p12 = pnand %p5273_p11, %p5984_p8  ;;  %p5281_p9 = scmp.lt.s32.totalorder %s5279_s3, %s5272_s17 }
  0x52   : > { %p5276_p13 = pneg %p5275_p12  ;;  %p5282_p5 = por %p5281_p9, %p5280_p4 }
  0x54   : > { %p5283_p1 = pnand %p5282_p5, %p5276_p13 }
  0x56   : > { %5286 = shalt.err (!%p5283_p1)
}
  0x57   : > { %4792 = dma.hbm_to_vmem [thread:$0]  (!%p5977_p7), %s597_s0, 8192, %s599_s29, %s9080_s16, %s9083_s7, %s9083_s7, %s9085_s2  }
  0x58   : > { %s9196_s6 = sld [smem:[#allocation106_spill]]  ;;  %s633_s17 = scalar_lea.vmem [#allocation11], %s6009_s30 }
  0x59   : > { %s640_s9 = sshll.u32 %s633_s17, 4  ;;  %s9082_s22 = scalar_lea.sflag [#allocation12], %s5959_s14  ;;  %s641_s9 = int_to_ptr.vmem [resolvable:$true] %s640_s9 }
  0x5a   : > { %s5300_s3 = scalar_lea.vmem %s641_s9, 2048  ;;  %s5767_s4 = smov [#allocation11]  }
  0x5b   : > { %p5301_p1 = scmp.ne.s32.totalorder %s641_s9, %s5300_s3  ;;  %s5305_s1 = sshll.u32 %s5767_s4, 4  ;;  %s5306_s1 = int_to_ptr.vmem [resolvable:$false] %s5305_s1 }
  0x5c   : > { %s5307_s13 = scalar_lea.vmem %s5306_s1, 4096  ;;  %p5308_p13 = scmp.lt.s32.totalorder %s641_s9, %s5306_s1 }
  0x5d   : > { %p5303_p11 = pnand %p5301_p1, %p5984_p8  ;;  %p5309_p4 = scmp.lt.s32.totalorder %s5307_s13, %s5300_s3 }
  0x5e   : > { %s639_s23 = scalar_lea.hbm %s9196_s6, %s6012_s15 }
  0x5f   : > { %p5304_p12 = pneg %p5303_p11  ;;  %p5310_p9 = por %p5309_p4, %p5308_p13 }
  0x61   : > { %p5311_p5 = pnand %p5310_p9, %p5304_p12 }
  0x63   : > { %5314 = shalt.err (!%p5311_p5)
}
  0x64   : > { %4798 = dma.hbm_to_vmem [thread:$0]  (!%p5977_p7), %s639_s23, 2048, %s641_s9, %s9082_s22, %s9083_s7, %s9083_s7, %s9085_s2  }
  0x65   : > { %s9197_s8 = sld [smem:[#allocation108_spill]]  ;;  %s675_s13 = scalar_lea.vmem [#allocation14], %s6009_s30 }
  0x66   : > { %s682_s1 = sshll.u32 %s675_s13, 4  ;;  %s9081_s28 = scalar_lea.sflag [#allocation15], %s5959_s14  ;;  %s683_s1 = int_to_ptr.vmem [resolvable:$true] %s682_s1 }
  0x67   : > { %s5328_s10 = scalar_lea.vmem %s683_s1, 2048  ;;  %s5768_s17 = smov [#allocation14]  }
  0x68   : > { %p5329_p1 = scmp.ne.s32.totalorder %s683_s1, %s5328_s10  ;;  %s5333_s3 = sshll.u32 %s5768_s17, 4  ;;  %s5334_s3 = int_to_ptr.vmem [resolvable:$false] %s5333_s3 }
  0x69   : > { %s5335_s16 = scalar_lea.vmem %s5334_s3, 4096  ;;  %p5336_p13 = scmp.lt.s32.totalorder %s683_s1, %s5334_s3 }
  0x6a   : > { %p5331_p11 = pnand %p5329_p1, %p5984_p8  ;;  %p5337_p4 = scmp.lt.s32.totalorder %s5335_s16, %s5328_s10 }
  0x6b   : > { %s681_s29 = scalar_lea.hbm %s9197_s8, %s6012_s15 }
  0x6c   : > { %p5332_p12 = pneg %p5331_p11  ;;  %p5338_p9 = por %p5337_p4, %p5336_p13 }
  0x6e   : > { %p5339_p5 = pnand %p5338_p9, %p5332_p12 }
  0x70   : > { %5342 = shalt.err (!%p5339_p5)
}
  0x71   : > { %4804 = dma.hbm_to_vmem [thread:$0]  (!%p5977_p7), %s681_s29, 2048, %s683_s1, %s9081_s28, %s9083_s7, %s9083_s7, %s9085_s2  }
  0x72   : > { %s6055_s16 = sadd.s32 4294967295, %s5761_s26   ;;  %s64_s23 = sadd.s32 1, %s5753_s24 }
  0x73   : > { %p65_p1 = scmp.ge.s32.totalorder %s64_s23, 3  ;;  %s71_s9 = sadd.s32 1, %s5757_s25 }
  0x74   : > { %s80_s0 = sadd.s32 1, %s5741_s21  ;;  %s9198_s4 = sld [smem:[#allocation38_spill]] }
  0x75   : > { %p87_p11 = scmp.ne.s32.totalorder %s5741_s21, %s5737_s20  ;;  %s9397_s23 = smov (%p65_p1, %s64_s23), 0 }
  0x76   : > { %9200 = sst [smem:[#allocation49_spill]] %s9397_s23  ;;  %s9399_s9 = smov (!%p65_p1, %s71_s9), %s5757_s25 }
  0x77   : > { %s75_s10 = ssub.s32 %s5753_s24, %s9397_s23  ;;  %s9201_s29 = sld [smem:[#allocation36_spill]] }
  0x78   : > { %p6069_p12 = por %p88_p0, %p87_p11  ;;  %s9203_s17 = sld [smem:[#allocation35_spill]] }
  0x79   : > { %p73_p13 = scmp.ge.s32.totalorder %s9399_s9, 2  ;;  %p78_p4 = scmp.eq.s32.totalorder %s75_s10, 0 }
  0x7a   : > { %p93_p9 = scmp.ne.s32.totalorder %s5737_s20, %s5733_s19  ;;  %p94_p5 = scmp.eq.s32.totalorder %s6055_s16, 0 }
  0x7b   : > { %s9204_s3 = sld [smem:[#allocation34_spill]]  ;;  %s9401_s9 = smov (%p73_p13, %s9399_s9), 0 }
  0x7c   : > { %9205 = sst [smem:[#allocation50_spill]] %s9401_s9  ;;  %p6081_p0 = por %p94_p5, %p93_p9 }
  0x7d   : > { %s6079_s28 = scalar_select %p78_p4, %s5741_s21, %s80_s0  }
  0x7e   : > { %s9207_s22 = scalar_select %p6081_p0, 1, 0 }
  0x7f   : > { %9206 = sst [smem:[#allocation51_spill]] %s6079_s28  ;;  %s131_s2 = ssub.s32 %s5757_s25, %s9401_s9 }
  0x80   : > { %p134_p1 = scmp.eq.s32.totalorder %s131_s2, 0  ;;  %s136_s19 = sadd.s32 1, %s5729_s18 }
  0x81   : > { %p6091_p11 = por %p149_p2, %p94_p5  ;;  %s375_s8 = sor.u32 %s131_s2, %s75_s10 }
  0x82   : > { %s6096_s23 = scalar_select %p134_p1, %s5729_s18, %s136_s19  }
  0x83   : > { %s9209_s6 = scalar_select %p6091_p11, 1, 0 }
  0x84   : > { %9211 = sst [smem:[#allocation52_spill]] %s6096_s23  ;;  %p376_p13 = scmp.eq.s32.totalorder %s375_s8, 0 }
  0x85   : > { %9210 = sst [smem:[#allocation45_spill]] %s9209_s6  ;;  %s378_s0 = sadd.s32 1, %s9201_s29 }
  0x86   : > { %p388_p4 = scmp.ne.s32.totalorder %s9201_s29, %s9203_s17  ;;  %p389_p9 = scmp.eq.s32.totalorder %s6055_s16, 5 }
  0x87   : > { %s9403_s29 = smov (!%p376_p13, %s9201_s29), %s378_s0  ;;  %p394_p0 = scmp.ne.s32.totalorder %s9203_s17, %s9204_s3 }
  0x88   : > { %9212 = sst [smem:[#allocation53_spill]] %s9403_s29  ;;  %p6105_p6 = por %p389_p9, %p388_p4 }
  0x89   : > { %p9215_p2 = scmp.ne.s32.totalorder %s5729_s18, %s9198_s4  ;;  %s499_s2 = sand.u32 1, %s5741_s21  }
  0x8a   : > { %s9213_s9 = scalar_select %p6105_p6, 1, 0 }
  0x8b   : > { %p6114_p5 = por %p389_p9, %p9215_p2  ;;  %p6121_p1 = por %p5939_p3, %p394_p0 }
  0x8c   : > { %9214 = sst [smem:[#allocation54_spill]] %s9213_s9  ;;  %s4371_s8 = sshll.u32 %s499_s2, 2 }
  0x8d   : > { %s9216_s13 = scalar_select %p6114_p5, 1, 0 }
  0x8e   : > { %s9218_s10 = scalar_select %p6121_p1, 1, 0 }
  0x8f   : > { %9217 = sst [smem:[#allocation55_spill]] %s9216_s13  ;;  %s4499_s19 = sshll.u32 %s5753_s24, 6 }
  0x90   : > { %9219 = sst [smem:[#allocation56_spill]] %s9218_s10  ;;  %s503_s6 = scalar_lea.vmem [#allocation2], %s4371_s8 }
  0x91   : > { %s9220_s23 = sld [smem:[#allocation100_spill]]  ;;  %s512_s9 = sshll.u32 %s503_s6, 4  ;;  %s513_s9 = int_to_ptr.vmem [resolvable:$true] %s512_s9 }
  0x92   : > { %p9221_p13 = scmp.lt.s32.totalorder %s5761_s26, 6  ;;  %s500_s7 = scalar_lea.sflag [#allocation3], %s499_s2 }
  0x93   : > { %s5356_s17 = scalar_lea.vmem %s513_s9, 64  ;;  %s5769_s3 = smov [#allocation2]  }
  0x94   : > { %p6133_p4 = pnand %p9221_p13, %p6069_p12  ;;  %p5357_p0 = scmp.ne.s32.totalorder %s513_s9, %s5356_s17 }
  0x95   : > { %s5361_s28 = sshll.u32 %s5769_s3, 4  ;;  %s5362_s28 = int_to_ptr.vmem [resolvable:$false] %s5361_s28 }
  0x96   : > { %p5345_p3 = pneg %p6133_p4  ;;  %p5364_p1 = scmp.lt.s32.totalorder %s513_s9, %s5362_s28 }
  0x97   : > { %s511_s29 = scalar_lea.hbm %s9220_s23, %s4499_s19  ;;  %s5363_s23 = scalar_lea.vmem %s5362_s28, 128 }
  0x98   : > { %p5359_p9 = pnand %p5357_p0, %p5345_p3  ;;  %p5365_p6 = scmp.lt.s32.totalorder %s5363_s23, %s5356_s17 }
  0x9a   : > { %p5360_p2 = pneg %p5359_p9  ;;  %p5366_p5 = por %p5365_p6, %p5364_p1 }
  0x9c   : > { %p5367_p12 = pnand %p5366_p5, %p5360_p2 }
  0x9e   : > { %5370 = shalt.err (!%p5367_p12)
}
  0x9f   : > { %s5770_s6 = smov 16   ;;  %s5771_s1 = smov 1  }
  0xa0   : > { %4783 = dma.hbm_to_vmem [thread:$0]  (!%p6133_p4), %s511_s29, 64, %s513_s9, %s500_s7, %s5770_s6, %s5770_s6, %s5771_s1  }
  0xa1   : > { %s9223_s19 = sld [smem:[#allocation103_spill]]  ;;  %s564_s3 = scalar_lea.vmem [#allocation7], %s5965_s27 }
  0xa2   : > { %s574_s24 = sshll.u32 %s564_s3, 4  ;;  %s9224_s23 = sld [smem:[#allocation105_spill]]  ;;  %s575_s24 = int_to_ptr.vmem [resolvable:$true] %s574_s24 }
  0xa3   : > { %s5384_s18 = scalar_lea.vmem %s575_s24, 8192  ;;  %s5772_s26 = smov [#allocation7]  }
  0xa4   : > { %p5385_p6 = scmp.ne.s32.totalorder %s575_s24, %s5384_s18  ;;  %s5389_s13 = sshll.u32 %s5772_s26, 4  ;;  %s5390_s13 = int_to_ptr.vmem [resolvable:$false] %s5389_s13 }
  0xa5   : > { %s5391_s9 = scalar_lea.vmem %s5390_s13, 16384  ;;  %p5392_p13 = scmp.lt.s32.totalorder %s575_s24, %s5390_s13 }
  0xa6   : > { %p5387_p5 = pnand %p5385_p6, %p5984_p8  ;;  %p5393_p4 = scmp.lt.s32.totalorder %s5391_s9, %s5384_s18 }
  0xa7   : > { %s573_s0 = scalar_lea.hbm %s9223_s19, %s5968_s12 }
  0xa8   : > { %s618_s21 = scalar_lea.hbm %s9224_s23, %s6012_s15  ;;  %p5388_p1 = pneg %p5387_p5 }
  0xa9   : > { %p5394_p3 = por %p5393_p4, %p5392_p13 }
  0xab   : > { %p5395_p0 = pnand %p5394_p3, %p5388_p1 }
  0xad   : > { %5398 = shalt.err (!%p5395_p0)
}
  0xae   : > { %s9226_s12 = smov 8   ;;  %s9227_s27 = smov 128  }
  0xaf   : > { %s9228_s29 = scalar_lea.sflag [#allocation6], %s5959_s14  ;;  %s612_s4 = scalar_lea.vmem [#allocation10], %s6009_s30 }
  0xb0   : > { %4789 = dma.hbm_to_vmem [thread:$0]  (!%p5977_p7), %s573_s0, 8192, %s575_s24, %s9228_s29, %s9227_s27, %s9227_s27, %s9226_s12  }
  0xb1   : > { %s619_s26 = sshll.u32 %s612_s4, 4  ;;  %s9229_s18 = sld [smem:[#allocation107_spill]]  ;;  %s620_s26 = int_to_ptr.vmem [resolvable:$true] %s619_s26 }
  0xb2   : > { %s5412_s2 = scalar_lea.vmem %s620_s26, 2048  ;;  %s5773_s8 = smov [#allocation10]  }
  0xb3   : > { %p5413_p9 = scmp.ne.s32.totalorder %s620_s26, %s5412_s2  ;;  %s5417_s19 = sshll.u32 %s5773_s8, 4  ;;  %s5418_s19 = int_to_ptr.vmem [resolvable:$false] %s5417_s19 }
  0xb4   : > { %s5419_s3 = scalar_lea.vmem %s5418_s19, 4096  ;;  %p5420_p6 = scmp.lt.s32.totalorder %s620_s26, %s5418_s19 }
  0xb5   : > { %p5415_p2 = pnand %p5413_p9, %p5984_p8  ;;  %p5421_p5 = scmp.lt.s32.totalorder %s5419_s3, %s5412_s2 }
  0xb7   : > { %s660_s1 = scalar_lea.hbm %s9229_s18, %s6012_s15  ;;  %p5416_p12 = pneg %p5415_p2 }
  0xb8   : > { %p5422_p1 = por %p5421_p5, %p5420_p6 }
  0xba   : > { %p5423_p13 = pnand %p5422_p1, %p5416_p12 }
  0xbc   : > { %5426 = shalt.err (!%p5423_p13)
}
  0xbd   : > { %s9231_s24 = scalar_lea.sflag [#allocation9], %s5959_s14  ;;  %s654_s28 = scalar_lea.vmem [#allocation13], %s6009_s30 }
  0xbe   : > { %4795 = dma.hbm_to_vmem [thread:$0]  (!%p5977_p7), %s618_s21, 2048, %s620_s26, %s9231_s24, %s9227_s27, %s9227_s27, %s9226_s12  }
  0xbf   : > { %s661_s23 = sshll.u32 %s654_s28, 4  ;;  %s9232_s4 = sld [smem:[#allocation109_spill]]  ;;  %s662_s23 = int_to_ptr.vmem [resolvable:$true] %s661_s23 }
  0xc0   : > { %s5440_s13 = scalar_lea.vmem %s662_s23, 2048  ;;  %s5774_s18 = smov [#allocation13]  }
  0xc1   : > { %p5441_p4 = scmp.ne.s32.totalorder %s662_s23, %s5440_s13  ;;  %s5445_s2 = sshll.u32 %s5774_s18, 4  ;;  %s5446_s2 = int_to_ptr.vmem [resolvable:$false] %s5445_s2 }
  0xc2   : > { %s5447_s8 = scalar_lea.vmem %s5446_s2, 4096  ;;  %p5448_p9 = scmp.lt.s32.totalorder %s662_s23, %s5446_s2 }
  0xc3   : > { %p5443_p3 = pnand %p5441_p4, %p5984_p8  ;;  %p5449_p2 = scmp.lt.s32.totalorder %s5447_s8, %s5440_s13 }
  0xc5   : > { %s702_s7 = scalar_lea.hbm %s9232_s4, %s6012_s15  ;;  %p5444_p0 = pneg %p5443_p3 }
  0xc6   : > { %p5450_p12 = por %p5449_p2, %p5448_p9 }
  0xc8   : > { %p5451_p6 = pnand %p5450_p12, %p5444_p0 }
  0xca   : > { %5454 = shalt.err (!%p5451_p6)
}
  0xcb   : > { %s9233_s21 = scalar_lea.sflag [#allocation12], %s5959_s14  ;;  %s696_s3 = scalar_lea.vmem [#allocation16], %s6009_s30 }
  0xcc   : > { %4801 = dma.hbm_to_vmem [thread:$0]  (!%p5977_p7), %s660_s1, 2048, %s662_s23, %s9233_s21, %s9227_s27, %s9227_s27, %s9226_s12  }
  0xcd   : > { %s703_s24 = sshll.u32 %s696_s3, 4  ;;  %s5775_s17 = smov [#allocation16]   ;;  %s704_s24 = int_to_ptr.vmem [resolvable:$true] %s703_s24 }
  0xce   : > { %s5468_s0 = scalar_lea.vmem %s704_s24, 2048  ;;  %s5473_s28 = sshll.u32 %s5775_s17, 4  ;;  %s5474_s28 = int_to_ptr.vmem [resolvable:$false] %s5473_s28 }
  0xcf   : > { %p5469_p5 = scmp.ne.s32.totalorder %s704_s24, %s5468_s0  ;;  %s5475_s9 = scalar_lea.vmem %s5474_s28, 4096 }
  0xd0   : > { %p5476_p4 = scmp.lt.s32.totalorder %s704_s24, %s5474_s28  ;;  %p5477_p3 = scmp.lt.s32.totalorder %s5475_s9, %s5468_s0 }
  0xd1   : > { %p5471_p1 = pnand %p5469_p5, %p5984_p8 }
  0xd2   : > { %p5478_p0 = por %p5477_p3, %p5476_p4 }
  0xd3   : > { %p5472_p13 = pneg %p5471_p1 }
  0xd5   : > { %p5479_p9 = pnand %p5478_p0, %p5472_p13 }
  0xd7   : > { %5482 = shalt.err (!%p5479_p9)
}
  0xd8   : > { %s9234_s30 = scalar_lea.sflag [#allocation15], %s5959_s14  ;;  %s9235_s29 = sld [smem:[#allocation47_spill]] }
  0xd9   : > { %4807 = dma.hbm_to_vmem [thread:$0]  (!%p5977_p7), %s702_s7, 2048, %s704_s24, %s9234_s30, %s9227_s27, %s9227_s27, %s9226_s12  }
  0xda   : > { %s4398_s13 = sshll.u32 %s5757_s25, 4  ;;  %s9236_s26 = sld [smem:[#allocation110_spill]] }
  0xdb   : > { %s5776_s15 = smov [#allocation17]  }
  0xdc   : > { %s5501_s0 = sshll.u32 %s5776_s15, 4  ;;  %s5502_s0 = int_to_ptr.vmem [resolvable:$false] %s5501_s0 }
  0xdd   : > { %s5503_s17 = scalar_lea.vmem %s5502_s0, 32 }
  0xde   : > { %s716_s18 = scalar_lea.vmem [#allocation17], %s9235_s29  ;;  %s714_s3 = scalar_lea.sflag [#allocation18], %s9235_s29 }
  0xdf   : > { %s723_s2 = sshll.u32 %s716_s18, 4  ;;  %s724_s2 = int_to_ptr.vmem [resolvable:$true] %s723_s2 }
  0xe0   : > { %s721_s19 = scalar_lea.hbm %s9236_s26, %s4398_s13  ;;  %s5496_s14 = scalar_lea.vmem %s724_s2, 16 }
  0xe1   : > { %p5497_p2 = scmp.ne.s32.totalorder %s724_s2, %s5496_s14  ;;  %p5504_p5 = scmp.lt.s32.totalorder %s724_s2, %s5502_s0 }
  0xe2   : > { %p5505_p1 = scmp.lt.s32.totalorder %s5503_s17, %s5496_s14 }
  0xe3   : > { %p5499_p12 = pnand %p5497_p2, %p5984_p8 }
  0xe4   : > { %p5506_p13 = por %p5505_p1, %p5504_p5 }
  0xe5   : > { %p5500_p6 = pneg %p5499_p12 }
  0xe7   : > { %p5507_p4 = pnand %p5506_p13, %p5500_p6 }
  0xe9   : > { %5510 = shalt.err (!%p5507_p4)
}
  0xea   : > { %4810 = dma.hbm_to_vmem [thread:$0]  (!%p5977_p7), %s721_s19, 16, %s724_s2, %s714_s3  }
  0xeb   : > { %732 = sbr.rel (%p5999_p10) target bundleno = 921 (0x399), region = 64 }
  0xf0   : > { %s734_s5 = sand.u32 1, %s5737_s20   ;;  %p9238_p8 = scmp.ne.s32.totalorder %s9207_s22, 0 }
  0xf1   : > { %s4400_s27 = sshll.u32 %s734_s5, 2  ;;  %s735_s7 = scalar_lea.sflag [#allocation3], %s734_s5 }
  0xf2   : > { %s6225_s24 = scalar_lea.vmem [#allocation2], %s4400_s27 }
  0xf3   : > { %5672 = dma.done.wait (%p9238_p8), %s735_s7, 64  }
  0xf4   : > { %5674 = vsyncadd (%p9238_p8), %s735_s7, 4294967232  ;;  %s9239_s28 = sld [smem:[#allocation38_spill]]  ;;  %s6232_s11 = sand.u32 1, %s6055_s16  }
  0xf5   : > { %s744_s23 = scalar_lea.sflag [#allocation6], %s6232_s11 }
  0xfa   : > { %s6235_s30 = sand.u32 1, %s9239_s28  }
  0xfb   : > { %s6238_s1 = sshll.u32 %s6235_s30, 9 }
  0xfc   : > { %s6242_s29 = scalar_lea.vmem [#allocation5], %s6238_s1 }
  0xfd   : > { %5676 = dma.done.wait (%p6091_p11), %s744_s23, 16384  }
  0xfe   : > { %5678 = vsyncadd (%p6091_p11), %s744_s23, 4294950912  ;;  %s6249_s22 = scalar_lea.vmem [#allocation7], %s6238_s1  ;;  %s762_s16 = scalar_lea.sflag [#allocation9], %s6232_s11 }
  0xff   : > { %s6253_s13 = scalar_lea.vmem [#allocation8], %s6238_s1 }
 0x100   : > { %5680 = dma.done.wait (%p6091_p11), %s762_s16, 10240  }
 0x101   : > { %5682 = vsyncadd (%p6091_p11), %s762_s16, 4294957056  ;;  %s4404_s18 = sshll.u32 %s6235_s30, 7  ;;  %s780_s8 = scalar_lea.sflag [#allocation12], %s6232_s11 }
 0x102   : > { %s6260_s2 = scalar_lea.vmem [#allocation10], %s4404_s18  ;;  %s6263_s21 = scalar_lea.vmem [#allocation11], %s4404_s18 }
 0x103   : > { %5684 = dma.done.wait (%p6091_p11), %s780_s8, 4096  }
 0x104   : > { %5686 = vsyncadd (%p6091_p11), %s780_s8, 4294963200  ;;  %s6269_s26 = scalar_lea.vmem [#allocation13], %s4404_s18  ;;  %s798_s19 = scalar_lea.sflag [#allocation15], %s6232_s11 }
 0x105   : > { %s6272_s3 = scalar_lea.vmem [#allocation14], %s4404_s18 }
 0x106   : > { %5688 = dma.done.wait (%p6091_p11), %s798_s19, 4096  }
 0x107   : > { %5690 = vsyncadd (%p6091_p11), %s798_s19, 4294963200  ;;  %s6278_s14 = scalar_lea.vmem [#allocation16], %s4404_s18  ;;  %s816_s15 = scalar_lea.sflag [#allocation18], %s6235_s30 }
 0x108   : > { %5692 = dma.done.wait (%p6091_p11), %s816_s15, 16  }
 0x109   : > { %5694 = vsyncadd (%p6091_p11), %s816_s15, 4294967280  ;;  %s9241_s17 = sld [smem:[#allocation35_spill]]  ;;  %s6299_s19 = scalar_lea.vmem [#allocation20], %s6238_s1 }
 0x10a   : > { %s9242_s12 = sld [smem:[#allocation41_spill]]  ;;  %s6302_s15 = scalar_lea.vmem [#allocation22], %s6238_s1 }
 0x10b   : > { %s9243_s18 = sld [smem:[#allocation101_spill]]  ;;  %s6305_s0 = scalar_lea.vmem [#allocation23], %s6238_s1 }
 0x10f   : > { %s9157_s5 = sand.u32 1, %s9241_s17  }
 0x110   : > { %s4409_s27 = sshll.u32 %s9157_s5, 9  ;;  %p934_p7 = scmp.lt.s32.totalorder %s9242_s12, 2 }
 0x111   : > { %s6296_s9 = scalar_lea.vmem [#allocation19], %s4409_s27  ;;  %p4415_p10 = scmp.ne.s32.totalorder %s9242_s12, 0 }
 0x112   : > { %s935_s7 = scalar_select %p934_p7, %s9242_s12, 2 }
 0x113   : > { %954 = sbr.rel (%p4415_p10) target bundleno = 377 (0x179), region = 108 }
 0x114   : > { %s4508_s28 = sshll.u32 %s935_s7, 9 }
 0x115   : > { %s6294_s8 = scalar_lea.vmem %s9243_s18, %s4508_s28 }
 0x118   : > { %v955_v0 = vld [vmem:[%s6242_s29] sm:$0xff]  ;;  %v956_v1 = vld [vmem:[%s6242_s29 + $0x8] sm:$0xff]  ;;  %v957_v2 = vld [vmem:[%s6242_s29 + $0x10] sm:$0xff] }
 0x119   : > { %1019 = vst [vmem:[%s6299_s19] sm:$0xff] %v955_v0  ;;  %1020 = vst [vmem:[%s6299_s19 + $0x8] sm:$0xff] %v956_v1  ;;  %v958_v3 = vld [vmem:[%s6242_s29 + $0x18] sm:$0xff]  ;;  %v959_v4 = vld [vmem:[%s6242_s29 + $0x20] sm:$0xff] }
 0x11a   : > { %1021 = vst [vmem:[%s6299_s19 + $0x10] sm:$0xff] %v957_v2  ;;  %v960_v5 = vld [vmem:[%s6242_s29 + $0x28] sm:$0xff]  ;;  %1022 = vst [vmem:[%s6299_s19 + $0x18] sm:$0xff] %v958_v3  ;;  %v961_v6 = vld [vmem:[%s6242_s29 + $0x30] sm:$0xff] }
 0x11b   : > { %1023 = vst [vmem:[%s6299_s19 + $0x20] sm:$0xff] %v959_v4  ;;  %1024 = vst [vmem:[%s6299_s19 + $0x28] sm:$0xff] %v960_v5  ;;  %v962_v7 = vld [vmem:[%s6242_s29 + $0x38] sm:$0xff]  ;;  %v963_v8 = vld [vmem:[%s6242_s29 + $0x40] sm:$0xff] }
 0x11c   : > { %1025 = vst [vmem:[%s6299_s19 + $0x30] sm:$0xff] %v961_v6  ;;  %1026 = vst [vmem:[%s6299_s19 + $0x38] sm:$0xff] %v962_v7  ;;  %v964_v9 = vld [vmem:[%s6242_s29 + $0x48] sm:$0xff]  ;;  %v965_v10 = vld [vmem:[%s6242_s29 + $0x50] sm:$0xff] }
 0x11d   : > { %1027 = vst [vmem:[%s6299_s19 + $0x40] sm:$0xff] %v963_v8  ;;  %v966_v11 = vld [vmem:[%s6242_s29 + $0x58] sm:$0xff]  ;;  %1028 = vst [vmem:[%s6299_s19 + $0x48] sm:$0xff] %v964_v9  ;;  %v967_v12 = vld [vmem:[%s6242_s29 + $0x60] sm:$0xff] }
 0x11e   : > { %1029 = vst [vmem:[%s6299_s19 + $0x50] sm:$0xff] %v965_v10  ;;  %1030 = vst [vmem:[%s6299_s19 + $0x58] sm:$0xff] %v966_v11  ;;  %v968_v13 = vld [vmem:[%s6242_s29 + $0x68] sm:$0xff]  ;;  %v969_v14 = vld [vmem:[%s6242_s29 + $0x70] sm:$0xff] }
 0x11f   : > { %1031 = vst [vmem:[%s6299_s19 + $0x60] sm:$0xff] %v967_v12  ;;  %1032 = vst [vmem:[%s6299_s19 + $0x68] sm:$0xff] %v968_v13  ;;  %v970_v15 = vld [vmem:[%s6242_s29 + $0x78] sm:$0xff]  ;;  %v971_v16 = vld [vmem:[%s6242_s29 + $0x80] sm:$0xff] }
 0x120   : > { %1033 = vst [vmem:[%s6299_s19 + $0x70] sm:$0xff] %v969_v14  ;;  %v972_v17 = vld [vmem:[%s6242_s29 + $0x88] sm:$0xff]  ;;  %1034 = vst [vmem:[%s6299_s19 + $0x78] sm:$0xff] %v970_v15  ;;  %v973_v18 = vld [vmem:[%s6242_s29 + $0x90] sm:$0xff] }
 0x121   : > { %1035 = vst [vmem:[%s6299_s19 + $0x80] sm:$0xff] %v971_v16  ;;  %1036 = vst [vmem:[%s6299_s19 + $0x88] sm:$0xff] %v972_v17  ;;  %v974_v19 = vld [vmem:[%s6242_s29 + $0x98] sm:$0xff]  ;;  %v975_v20 = vld [vmem:[%s6242_s29 + $0xa0] sm:$0xff] }
 0x122   : > { %1037 = vst [vmem:[%s6299_s19 + $0x90] sm:$0xff] %v973_v18  ;;  %1038 = vst [vmem:[%s6299_s19 + $0x98] sm:$0xff] %v974_v19  ;;  %v976_v21 = vld [vmem:[%s6242_s29 + $0xa8] sm:$0xff]  ;;  %v977_v22 = vld [vmem:[%s6242_s29 + $0xb0] sm:$0xff] }
 0x123   : > { %1039 = vst [vmem:[%s6299_s19 + $0xa0] sm:$0xff] %v975_v20  ;;  %v978_v23 = vld [vmem:[%s6242_s29 + $0xb8] sm:$0xff]  ;;  %1040 = vst [vmem:[%s6299_s19 + $0xa8] sm:$0xff] %v976_v21  ;;  %v979_v24 = vld [vmem:[%s6242_s29 + $0xc0] sm:$0xff] }
 0x124   : > { %1041 = vst [vmem:[%s6299_s19 + $0xb0] sm:$0xff] %v977_v22  ;;  %1042 = vst [vmem:[%s6299_s19 + $0xb8] sm:$0xff] %v978_v23  ;;  %v980_v25 = vld [vmem:[%s6242_s29 + $0xc8] sm:$0xff]  ;;  %v981_v26 = vld [vmem:[%s6242_s29 + $0xd0] sm:$0xff] }
 0x125   : > { %1043 = vst [vmem:[%s6299_s19 + $0xc0] sm:$0xff] %v979_v24  ;;  %1044 = vst [vmem:[%s6299_s19 + $0xc8] sm:$0xff] %v980_v25  ;;  %v982_v27 = vld [vmem:[%s6242_s29 + $0xd8] sm:$0xff]  ;;  %v983_v28 = vld [vmem:[%s6242_s29 + $0xe0] sm:$0xff] }
 0x126   : > { %1045 = vst [vmem:[%s6299_s19 + $0xd0] sm:$0xff] %v981_v26  ;;  %v984_v29 = vld [vmem:[%s6242_s29 + $0xe8] sm:$0xff]  ;;  %1046 = vst [vmem:[%s6299_s19 + $0xd8] sm:$0xff] %v982_v27  ;;  %v985_v30 = vld [vmem:[%s6242_s29 + $0xf0] sm:$0xff] }
 0x127   : > { %1047 = vst [vmem:[%s6299_s19 + $0xe0] sm:$0xff] %v983_v28  ;;  %1048 = vst [vmem:[%s6299_s19 + $0xe8] sm:$0xff] %v984_v29  ;;  %v986_v31 = vld [vmem:[%s6242_s29 + $0xf8] sm:$0xff]  ;;  %v987_v32 = vld [vmem:[%s6242_s29 + $0x100] sm:$0xff] }
 0x128   : > { %1049 = vst [vmem:[%s6299_s19 + $0xf0] sm:$0xff] %v985_v30  ;;  %1050 = vst [vmem:[%s6299_s19 + $0xf8] sm:$0xff] %v986_v31  ;;  %v988_v33 = vld [vmem:[%s6242_s29 + $0x108] sm:$0xff]  ;;  %v989_v34 = vld [vmem:[%s6242_s29 + $0x110] sm:$0xff] }
 0x129   : > { %1051 = vst [vmem:[%s6299_s19 + $0x100] sm:$0xff] %v987_v32  ;;  %v990_v35 = vld [vmem:[%s6242_s29 + $0x118] sm:$0xff]  ;;  %1052 = vst [vmem:[%s6299_s19 + $0x108] sm:$0xff] %v988_v33  ;;  %v991_v36 = vld [vmem:[%s6242_s29 + $0x120] sm:$0xff] }
 0x12a   : > { %1053 = vst [vmem:[%s6299_s19 + $0x110] sm:$0xff] %v989_v34  ;;  %1054 = vst [vmem:[%s6299_s19 + $0x118] sm:$0xff] %v990_v35  ;;  %v992_v37 = vld [vmem:[%s6242_s29 + $0x128] sm:$0xff]  ;;  %v993_v38 = vld [vmem:[%s6242_s29 + $0x130] sm:$0xff] }
 0x12b   : > { %1055 = vst [vmem:[%s6299_s19 + $0x120] sm:$0xff] %v991_v36  ;;  %1056 = vst [vmem:[%s6299_s19 + $0x128] sm:$0xff] %v992_v37  ;;  %v994_v39 = vld [vmem:[%s6242_s29 + $0x138] sm:$0xff]  ;;  %v995_v40 = vld [vmem:[%s6242_s29 + $0x140] sm:$0xff] }
 0x12c   : > { %1057 = vst [vmem:[%s6299_s19 + $0x130] sm:$0xff] %v993_v38  ;;  %v996_v41 = vld [vmem:[%s6242_s29 + $0x148] sm:$0xff]  ;;  %1058 = vst [vmem:[%s6299_s19 + $0x138] sm:$0xff] %v994_v39  ;;  %v997_v42 = vld [vmem:[%s6242_s29 + $0x150] sm:$0xff] }
 0x12d   : > { %1059 = vst [vmem:[%s6299_s19 + $0x140] sm:$0xff] %v995_v40  ;;  %1060 = vst [vmem:[%s6299_s19 + $0x148] sm:$0xff] %v996_v41  ;;  %v998_v43 = vld [vmem:[%s6242_s29 + $0x158] sm:$0xff]  ;;  %v999_v44 = vld [vmem:[%s6242_s29 + $0x160] sm:$0xff] }
 0x12e   : > { %1061 = vst [vmem:[%s6299_s19 + $0x150] sm:$0xff] %v997_v42  ;;  %1062 = vst [vmem:[%s6299_s19 + $0x158] sm:$0xff] %v998_v43  ;;  %v1000_v45 = vld [vmem:[%s6242_s29 + $0x168] sm:$0xff]  ;;  %v1001_v46 = vld [vmem:[%s6242_s29 + $0x170] sm:$0xff] }
 0x12f   : > { %1063 = vst [vmem:[%s6299_s19 + $0x160] sm:$0xff] %v999_v44  ;;  %v1002_v47 = vld [vmem:[%s6242_s29 + $0x178] sm:$0xff]  ;;  %1064 = vst [vmem:[%s6299_s19 + $0x168] sm:$0xff] %v1000_v45  ;;  %v1003_v48 = vld [vmem:[%s6242_s29 + $0x180] sm:$0xff] }
 0x130   : > { %1065 = vst [vmem:[%s6299_s19 + $0x170] sm:$0xff] %v1001_v46  ;;  %1066 = vst [vmem:[%s6299_s19 + $0x178] sm:$0xff] %v1002_v47  ;;  %v1004_v49 = vld [vmem:[%s6242_s29 + $0x188] sm:$0xff]  ;;  %v1005_v50 = vld [vmem:[%s6242_s29 + $0x190] sm:$0xff] }
 0x131   : > { %1067 = vst [vmem:[%s6299_s19 + $0x180] sm:$0xff] %v1003_v48  ;;  %1068 = vst [vmem:[%s6299_s19 + $0x188] sm:$0xff] %v1004_v49  ;;  %v1006_v51 = vld [vmem:[%s6242_s29 + $0x198] sm:$0xff]  ;;  %v1007_v52 = vld [vmem:[%s6242_s29 + $0x1a0] sm:$0xff] }
 0x132   : > { %1069 = vst [vmem:[%s6299_s19 + $0x190] sm:$0xff] %v1005_v50  ;;  %v1008_v53 = vld [vmem:[%s6242_s29 + $0x1a8] sm:$0xff]  ;;  %1070 = vst [vmem:[%s6299_s19 + $0x198] sm:$0xff] %v1006_v51  ;;  %v1009_v54 = vld [vmem:[%s6242_s29 + $0x1b0] sm:$0xff] }
 0x133   : > { %1071 = vst [vmem:[%s6299_s19 + $0x1a0] sm:$0xff] %v1007_v52  ;;  %1072 = vst [vmem:[%s6299_s19 + $0x1a8] sm:$0xff] %v1008_v53  ;;  %v1010_v55 = vld [vmem:[%s6242_s29 + $0x1b8] sm:$0xff]  ;;  %v1011_v56 = vld [vmem:[%s6242_s29 + $0x1c0] sm:$0xff] }
 0x134   : > { %1073 = vst [vmem:[%s6299_s19 + $0x1b0] sm:$0xff] %v1009_v54  ;;  %1074 = vst [vmem:[%s6299_s19 + $0x1b8] sm:$0xff] %v1010_v55  ;;  %v1012_v57 = vld [vmem:[%s6242_s29 + $0x1c8] sm:$0xff]  ;;  %v1013_v58 = vld [vmem:[%s6242_s29 + $0x1d0] sm:$0xff] }
 0x135   : > { %1075 = vst [vmem:[%s6299_s19 + $0x1c0] sm:$0xff] %v1011_v56  ;;  %v1014_v59 = vld [vmem:[%s6242_s29 + $0x1d8] sm:$0xff]  ;;  %1076 = vst [vmem:[%s6299_s19 + $0x1c8] sm:$0xff] %v1012_v57  ;;  %v1015_v60 = vld [vmem:[%s6242_s29 + $0x1e0] sm:$0xff] }
 0x136   : > { %1077 = vst [vmem:[%s6299_s19 + $0x1d0] sm:$0xff] %v1013_v58  ;;  %1078 = vst [vmem:[%s6299_s19 + $0x1d8] sm:$0xff] %v1014_v59  ;;  %v1016_v61 = vld [vmem:[%s6242_s29 + $0x1e8] sm:$0xff]  ;;  %v1017_v62 = vld [vmem:[%s6242_s29 + $0x1f0] sm:$0xff] }
 0x137   : > { %1079 = vst [vmem:[%s6299_s19 + $0x1e0] sm:$0xff] %v1015_v60  ;;  %1080 = vst [vmem:[%s6299_s19 + $0x1e8] sm:$0xff] %v1016_v61  ;;  %v1018_v63 = vld [vmem:[%s6242_s29 + $0x1f8] sm:$0xff]  ;;  %v1083_v0 = vld [vmem:[%s6249_s22] sm:$0xff] }
 0x138   : > { %1081 = vst [vmem:[%s6299_s19 + $0x1f0] sm:$0xff] %v1017_v62  ;;  %v1084_v1 = vld [vmem:[%s6249_s22 + $0x8] sm:$0xff]  ;;  %1082 = vst [vmem:[%s6299_s19 + $0x1f8] sm:$0xff] %v1018_v63  ;;  %v1085_v2 = vld [vmem:[%s6249_s22 + $0x10] sm:$0xff] }
 0x139   : > { %1147 = vst [vmem:[%s6302_s15] sm:$0xff] %v1083_v0  ;;  %1148 = vst [vmem:[%s6302_s15 + $0x8] sm:$0xff] %v1084_v1  ;;  %v1086_v3 = vld [vmem:[%s6249_s22 + $0x18] sm:$0xff]  ;;  %v1087_v4 = vld [vmem:[%s6249_s22 + $0x20] sm:$0xff] }
 0x13a   : > { %1149 = vst [vmem:[%s6302_s15 + $0x10] sm:$0xff] %v1085_v2  ;;  %1150 = vst [vmem:[%s6302_s15 + $0x18] sm:$0xff] %v1086_v3  ;;  %v1088_v5 = vld [vmem:[%s6249_s22 + $0x28] sm:$0xff]  ;;  %v1089_v6 = vld [vmem:[%s6249_s22 + $0x30] sm:$0xff] }
 0x13b   : > { %1151 = vst [vmem:[%s6302_s15 + $0x20] sm:$0xff] %v1087_v4  ;;  %v1090_v7 = vld [vmem:[%s6249_s22 + $0x38] sm:$0xff]  ;;  %1152 = vst [vmem:[%s6302_s15 + $0x28] sm:$0xff] %v1088_v5  ;;  %v1091_v8 = vld [vmem:[%s6249_s22 + $0x40] sm:$0xff] }
 0x13c   : > { %1153 = vst [vmem:[%s6302_s15 + $0x30] sm:$0xff] %v1089_v6  ;;  %1154 = vst [vmem:[%s6302_s15 + $0x38] sm:$0xff] %v1090_v7  ;;  %v1092_v9 = vld [vmem:[%s6249_s22 + $0x48] sm:$0xff]  ;;  %v1093_v10 = vld [vmem:[%s6249_s22 + $0x50] sm:$0xff] }
 0x13d   : > { %1155 = vst [vmem:[%s6302_s15 + $0x40] sm:$0xff] %v1091_v8  ;;  %1156 = vst [vmem:[%s6302_s15 + $0x48] sm:$0xff] %v1092_v9  ;;  %v1094_v11 = vld [vmem:[%s6249_s22 + $0x58] sm:$0xff]  ;;  %v1095_v12 = vld [vmem:[%s6249_s22 + $0x60] sm:$0xff] }
 0x13e   : > { %1157 = vst [vmem:[%s6302_s15 + $0x50] sm:$0xff] %v1093_v10  ;;  %v1096_v13 = vld [vmem:[%s6249_s22 + $0x68] sm:$0xff]  ;;  %1158 = vst [vmem:[%s6302_s15 + $0x58] sm:$0xff] %v1094_v11  ;;  %v1097_v14 = vld [vmem:[%s6249_s22 + $0x70] sm:$0xff] }
 0x13f   : > { %1159 = vst [vmem:[%s6302_s15 + $0x60] sm:$0xff] %v1095_v12  ;;  %1160 = vst [vmem:[%s6302_s15 + $0x68] sm:$0xff] %v1096_v13  ;;  %v1098_v15 = vld [vmem:[%s6249_s22 + $0x78] sm:$0xff]  ;;  %v1099_v16 = vld [vmem:[%s6249_s22 + $0x80] sm:$0xff] }
 0x140   : > { %1161 = vst [vmem:[%s6302_s15 + $0x70] sm:$0xff] %v1097_v14  ;;  %1162 = vst [vmem:[%s6302_s15 + $0x78] sm:$0xff] %v1098_v15  ;;  %v1100_v17 = vld [vmem:[%s6249_s22 + $0x88] sm:$0xff]  ;;  %v1101_v18 = vld [vmem:[%s6249_s22 + $0x90] sm:$0xff] }
 0x141   : > { %1163 = vst [vmem:[%s6302_s15 + $0x80] sm:$0xff] %v1099_v16  ;;  %v1102_v19 = vld [vmem:[%s6249_s22 + $0x98] sm:$0xff]  ;;  %1164 = vst [vmem:[%s6302_s15 + $0x88] sm:$0xff] %v1100_v17  ;;  %v1103_v20 = vld [vmem:[%s6249_s22 + $0xa0] sm:$0xff] }
 0x142   : > { %1165 = vst [vmem:[%s6302_s15 + $0x90] sm:$0xff] %v1101_v18  ;;  %1166 = vst [vmem:[%s6302_s15 + $0x98] sm:$0xff] %v1102_v19  ;;  %v1104_v21 = vld [vmem:[%s6249_s22 + $0xa8] sm:$0xff]  ;;  %v1105_v22 = vld [vmem:[%s6249_s22 + $0xb0] sm:$0xff] }
 0x143   : > { %1167 = vst [vmem:[%s6302_s15 + $0xa0] sm:$0xff] %v1103_v20  ;;  %1168 = vst [vmem:[%s6302_s15 + $0xa8] sm:$0xff] %v1104_v21  ;;  %v1106_v23 = vld [vmem:[%s6249_s22 + $0xb8] sm:$0xff]  ;;  %v1107_v24 = vld [vmem:[%s6249_s22 + $0xc0] sm:$0xff] }
 0x144   : > { %1169 = vst [vmem:[%s6302_s15 + $0xb0] sm:$0xff] %v1105_v22  ;;  %v1108_v25 = vld [vmem:[%s6249_s22 + $0xc8] sm:$0xff]  ;;  %1170 = vst [vmem:[%s6302_s15 + $0xb8] sm:$0xff] %v1106_v23  ;;  %v1109_v26 = vld [vmem:[%s6249_s22 + $0xd0] sm:$0xff] }
 0x145   : > { %1171 = vst [vmem:[%s6302_s15 + $0xc0] sm:$0xff] %v1107_v24  ;;  %1172 = vst [vmem:[%s6302_s15 + $0xc8] sm:$0xff] %v1108_v25  ;;  %v1110_v27 = vld [vmem:[%s6249_s22 + $0xd8] sm:$0xff]  ;;  %v1111_v28 = vld [vmem:[%s6249_s22 + $0xe0] sm:$0xff] }
 0x146   : > { %1173 = vst [vmem:[%s6302_s15 + $0xd0] sm:$0xff] %v1109_v26  ;;  %1174 = vst [vmem:[%s6302_s15 + $0xd8] sm:$0xff] %v1110_v27  ;;  %v1112_v29 = vld [vmem:[%s6249_s22 + $0xe8] sm:$0xff]  ;;  %v1113_v30 = vld [vmem:[%s6249_s22 + $0xf0] sm:$0xff] }
 0x147   : > { %1175 = vst [vmem:[%s6302_s15 + $0xe0] sm:$0xff] %v1111_v28  ;;  %v1114_v31 = vld [vmem:[%s6249_s22 + $0xf8] sm:$0xff]  ;;  %1176 = vst [vmem:[%s6302_s15 + $0xe8] sm:$0xff] %v1112_v29  ;;  %v1115_v32 = vld [vmem:[%s6249_s22 + $0x100] sm:$0xff] }
 0x148   : > { %1177 = vst [vmem:[%s6302_s15 + $0xf0] sm:$0xff] %v1113_v30  ;;  %1178 = vst [vmem:[%s6302_s15 + $0xf8] sm:$0xff] %v1114_v31  ;;  %v1116_v33 = vld [vmem:[%s6249_s22 + $0x108] sm:$0xff]  ;;  %v1117_v34 = vld [vmem:[%s6249_s22 + $0x110] sm:$0xff] }
 0x149   : > { %1179 = vst [vmem:[%s6302_s15 + $0x100] sm:$0xff] %v1115_v32  ;;  %1180 = vst [vmem:[%s6302_s15 + $0x108] sm:$0xff] %v1116_v33  ;;  %v1118_v35 = vld [vmem:[%s6249_s22 + $0x118] sm:$0xff]  ;;  %v1119_v36 = vld [vmem:[%s6249_s22 + $0x120] sm:$0xff] }
 0x14a   : > { %1181 = vst [vmem:[%s6302_s15 + $0x110] sm:$0xff] %v1117_v34  ;;  %v1120_v37 = vld [vmem:[%s6249_s22 + $0x128] sm:$0xff]  ;;  %1182 = vst [vmem:[%s6302_s15 + $0x118] sm:$0xff] %v1118_v35  ;;  %v1121_v38 = vld [vmem:[%s6249_s22 + $0x130] sm:$0xff] }
 0x14b   : > { %1183 = vst [vmem:[%s6302_s15 + $0x120] sm:$0xff] %v1119_v36  ;;  %1184 = vst [vmem:[%s6302_s15 + $0x128] sm:$0xff] %v1120_v37  ;;  %v1122_v39 = vld [vmem:[%s6249_s22 + $0x138] sm:$0xff]  ;;  %v1123_v40 = vld [vmem:[%s6249_s22 + $0x140] sm:$0xff] }
 0x14c   : > { %1185 = vst [vmem:[%s6302_s15 + $0x130] sm:$0xff] %v1121_v38  ;;  %1186 = vst [vmem:[%s6302_s15 + $0x138] sm:$0xff] %v1122_v39  ;;  %v1124_v41 = vld [vmem:[%s6249_s22 + $0x148] sm:$0xff]  ;;  %v1125_v42 = vld [vmem:[%s6249_s22 + $0x150] sm:$0xff] }
 0x14d   : > { %1187 = vst [vmem:[%s6302_s15 + $0x140] sm:$0xff] %v1123_v40  ;;  %v1126_v43 = vld [vmem:[%s6249_s22 + $0x158] sm:$0xff]  ;;  %1188 = vst [vmem:[%s6302_s15 + $0x148] sm:$0xff] %v1124_v41  ;;  %v1127_v44 = vld [vmem:[%s6249_s22 + $0x160] sm:$0xff] }
 0x14e   : > { %1189 = vst [vmem:[%s6302_s15 + $0x150] sm:$0xff] %v1125_v42  ;;  %1190 = vst [vmem:[%s6302_s15 + $0x158] sm:$0xff] %v1126_v43  ;;  %v1128_v45 = vld [vmem:[%s6249_s22 + $0x168] sm:$0xff]  ;;  %v1129_v46 = vld [vmem:[%s6249_s22 + $0x170] sm:$0xff] }
 0x14f   : > { %1191 = vst [vmem:[%s6302_s15 + $0x160] sm:$0xff] %v1127_v44  ;;  %1192 = vst [vmem:[%s6302_s15 + $0x168] sm:$0xff] %v1128_v45  ;;  %v1130_v47 = vld [vmem:[%s6249_s22 + $0x178] sm:$0xff]  ;;  %v1131_v48 = vld [vmem:[%s6249_s22 + $0x180] sm:$0xff] }
 0x150   : > { %1193 = vst [vmem:[%s6302_s15 + $0x170] sm:$0xff] %v1129_v46  ;;  %v1132_v49 = vld [vmem:[%s6249_s22 + $0x188] sm:$0xff]  ;;  %1194 = vst [vmem:[%s6302_s15 + $0x178] sm:$0xff] %v1130_v47  ;;  %v1133_v50 = vld [vmem:[%s6249_s22 + $0x190] sm:$0xff] }
 0x151   : > { %1195 = vst [vmem:[%s6302_s15 + $0x180] sm:$0xff] %v1131_v48  ;;  %1196 = vst [vmem:[%s6302_s15 + $0x188] sm:$0xff] %v1132_v49  ;;  %v1134_v51 = vld [vmem:[%s6249_s22 + $0x198] sm:$0xff]  ;;  %v1135_v52 = vld [vmem:[%s6249_s22 + $0x1a0] sm:$0xff] }
 0x152   : > { %1197 = vst [vmem:[%s6302_s15 + $0x190] sm:$0xff] %v1133_v50  ;;  %1198 = vst [vmem:[%s6302_s15 + $0x198] sm:$0xff] %v1134_v51  ;;  %v1136_v53 = vld [vmem:[%s6249_s22 + $0x1a8] sm:$0xff]  ;;  %v1137_v54 = vld [vmem:[%s6249_s22 + $0x1b0] sm:$0xff] }
 0x153   : > { %1199 = vst [vmem:[%s6302_s15 + $0x1a0] sm:$0xff] %v1135_v52  ;;  %v1138_v55 = vld [vmem:[%s6249_s22 + $0x1b8] sm:$0xff]  ;;  %1200 = vst [vmem:[%s6302_s15 + $0x1a8] sm:$0xff] %v1136_v53  ;;  %v1139_v56 = vld [vmem:[%s6249_s22 + $0x1c0] sm:$0xff] }
 0x154   : > { %1201 = vst [vmem:[%s6302_s15 + $0x1b0] sm:$0xff] %v1137_v54  ;;  %1202 = vst [vmem:[%s6302_s15 + $0x1b8] sm:$0xff] %v1138_v55  ;;  %v1140_v57 = vld [vmem:[%s6249_s22 + $0x1c8] sm:$0xff]  ;;  %v1141_v58 = vld [vmem:[%s6249_s22 + $0x1d0] sm:$0xff] }
 0x155   : > { %1203 = vst [vmem:[%s6302_s15 + $0x1c0] sm:$0xff] %v1139_v56  ;;  %1204 = vst [vmem:[%s6302_s15 + $0x1c8] sm:$0xff] %v1140_v57  ;;  %v1142_v59 = vld [vmem:[%s6249_s22 + $0x1d8] sm:$0xff]  ;;  %v1143_v60 = vld [vmem:[%s6249_s22 + $0x1e0] sm:$0xff] }
 0x156   : > { %1205 = vst [vmem:[%s6302_s15 + $0x1d0] sm:$0xff] %v1141_v58  ;;  %v1144_v61 = vld [vmem:[%s6249_s22 + $0x1e8] sm:$0xff]  ;;  %1206 = vst [vmem:[%s6302_s15 + $0x1d8] sm:$0xff] %v1142_v59  ;;  %v1145_v62 = vld [vmem:[%s6249_s22 + $0x1f0] sm:$0xff] }
 0x157   : > { %1207 = vst [vmem:[%s6302_s15 + $0x1e0] sm:$0xff] %v1143_v60  ;;  %1208 = vst [vmem:[%s6302_s15 + $0x1e8] sm:$0xff] %v1144_v61  ;;  %v1146_v63 = vld [vmem:[%s6249_s22 + $0x1f8] sm:$0xff]  ;;  %v1211_v0 = vld [vmem:[%s6253_s13] sm:$0xff] }
 0x158   : > { %1209 = vst [vmem:[%s6302_s15 + $0x1f0] sm:$0xff] %v1145_v62  ;;  %1210 = vst [vmem:[%s6302_s15 + $0x1f8] sm:$0xff] %v1146_v63  ;;  %v1212_v1 = vld [vmem:[%s6253_s13 + $0x8] sm:$0xff]  ;;  %v1213_v2 = vld [vmem:[%s6253_s13 + $0x10] sm:$0xff] }
 0x159   : > { %1275 = vst [vmem:[%s6305_s0] sm:$0xff] %v1211_v0  ;;  %v1214_v3 = vld [vmem:[%s6253_s13 + $0x18] sm:$0xff]  ;;  %1276 = vst [vmem:[%s6305_s0 + $0x8] sm:$0xff] %v1212_v1  ;;  %v1215_v4 = vld [vmem:[%s6253_s13 + $0x20] sm:$0xff] }
 0x15a   : > { %1277 = vst [vmem:[%s6305_s0 + $0x10] sm:$0xff] %v1213_v2  ;;  %1278 = vst [vmem:[%s6305_s0 + $0x18] sm:$0xff] %v1214_v3  ;;  %v1216_v5 = vld [vmem:[%s6253_s13 + $0x28] sm:$0xff]  ;;  %v1217_v6 = vld [vmem:[%s6253_s13 + $0x30] sm:$0xff] }
 0x15b   : > { %1279 = vst [vmem:[%s6305_s0 + $0x20] sm:$0xff] %v1215_v4  ;;  %1280 = vst [vmem:[%s6305_s0 + $0x28] sm:$0xff] %v1216_v5  ;;  %v1218_v7 = vld [vmem:[%s6253_s13 + $0x38] sm:$0xff]  ;;  %v1219_v8 = vld [vmem:[%s6253_s13 + $0x40] sm:$0xff] }
 0x15c   : > { %1281 = vst [vmem:[%s6305_s0 + $0x30] sm:$0xff] %v1217_v6  ;;  %v1220_v9 = vld [vmem:[%s6253_s13 + $0x48] sm:$0xff]  ;;  %1282 = vst [vmem:[%s6305_s0 + $0x38] sm:$0xff] %v1218_v7  ;;  %v1221_v10 = vld [vmem:[%s6253_s13 + $0x50] sm:$0xff] }
 0x15d   : > { %1283 = vst [vmem:[%s6305_s0 + $0x40] sm:$0xff] %v1219_v8  ;;  %1284 = vst [vmem:[%s6305_s0 + $0x48] sm:$0xff] %v1220_v9  ;;  %v1222_v11 = vld [vmem:[%s6253_s13 + $0x58] sm:$0xff]  ;;  %v1223_v12 = vld [vmem:[%s6253_s13 + $0x60] sm:$0xff] }
 0x15e   : > { %1285 = vst [vmem:[%s6305_s0 + $0x50] sm:$0xff] %v1221_v10  ;;  %1286 = vst [vmem:[%s6305_s0 + $0x58] sm:$0xff] %v1222_v11  ;;  %v1224_v13 = vld [vmem:[%s6253_s13 + $0x68] sm:$0xff]  ;;  %v1225_v14 = vld [vmem:[%s6253_s13 + $0x70] sm:$0xff] }
 0x15f   : > { %1287 = vst [vmem:[%s6305_s0 + $0x60] sm:$0xff] %v1223_v12  ;;  %v1226_v15 = vld [vmem:[%s6253_s13 + $0x78] sm:$0xff]  ;;  %1288 = vst [vmem:[%s6305_s0 + $0x68] sm:$0xff] %v1224_v13  ;;  %v1227_v16 = vld [vmem:[%s6253_s13 + $0x80] sm:$0xff] }
 0x160   : > { %1289 = vst [vmem:[%s6305_s0 + $0x70] sm:$0xff] %v1225_v14  ;;  %1290 = vst [vmem:[%s6305_s0 + $0x78] sm:$0xff] %v1226_v15  ;;  %v1228_v17 = vld [vmem:[%s6253_s13 + $0x88] sm:$0xff]  ;;  %v1229_v18 = vld [vmem:[%s6253_s13 + $0x90] sm:$0xff] }
 0x161   : > { %1291 = vst [vmem:[%s6305_s0 + $0x80] sm:$0xff] %v1227_v16  ;;  %1292 = vst [vmem:[%s6305_s0 + $0x88] sm:$0xff] %v1228_v17  ;;  %v1230_v19 = vld [vmem:[%s6253_s13 + $0x98] sm:$0xff]  ;;  %v1231_v20 = vld [vmem:[%s6253_s13 + $0xa0] sm:$0xff] }
 0x162   : > { %1293 = vst [vmem:[%s6305_s0 + $0x90] sm:$0xff] %v1229_v18  ;;  %v1232_v21 = vld [vmem:[%s6253_s13 + $0xa8] sm:$0xff]  ;;  %1294 = vst [vmem:[%s6305_s0 + $0x98] sm:$0xff] %v1230_v19  ;;  %v1233_v22 = vld [vmem:[%s6253_s13 + $0xb0] sm:$0xff] }
 0x163   : > { %1295 = vst [vmem:[%s6305_s0 + $0xa0] sm:$0xff] %v1231_v20  ;;  %1296 = vst [vmem:[%s6305_s0 + $0xa8] sm:$0xff] %v1232_v21  ;;  %v1234_v23 = vld [vmem:[%s6253_s13 + $0xb8] sm:$0xff]  ;;  %v1235_v24 = vld [vmem:[%s6253_s13 + $0xc0] sm:$0xff] }
 0x164   : > { %1297 = vst [vmem:[%s6305_s0 + $0xb0] sm:$0xff] %v1233_v22  ;;  %1298 = vst [vmem:[%s6305_s0 + $0xb8] sm:$0xff] %v1234_v23  ;;  %v1236_v25 = vld [vmem:[%s6253_s13 + $0xc8] sm:$0xff]  ;;  %v1237_v26 = vld [vmem:[%s6253_s13 + $0xd0] sm:$0xff] }
 0x165   : > { %1299 = vst [vmem:[%s6305_s0 + $0xc0] sm:$0xff] %v1235_v24  ;;  %v1238_v27 = vld [vmem:[%s6253_s13 + $0xd8] sm:$0xff]  ;;  %1300 = vst [vmem:[%s6305_s0 + $0xc8] sm:$0xff] %v1236_v25  ;;  %v1239_v28 = vld [vmem:[%s6253_s13 + $0xe0] sm:$0xff] }
 0x166   : > { %1301 = vst [vmem:[%s6305_s0 + $0xd0] sm:$0xff] %v1237_v26  ;;  %1302 = vst [vmem:[%s6305_s0 + $0xd8] sm:$0xff] %v1238_v27  ;;  %v1240_v29 = vld [vmem:[%s6253_s13 + $0xe8] sm:$0xff]  ;;  %v1241_v30 = vld [vmem:[%s6253_s13 + $0xf0] sm:$0xff] }
 0x167   : > { %1303 = vst [vmem:[%s6305_s0 + $0xe0] sm:$0xff] %v1239_v28  ;;  %1304 = vst [vmem:[%s6305_s0 + $0xe8] sm:$0xff] %v1240_v29  ;;  %v1242_v31 = vld [vmem:[%s6253_s13 + $0xf8] sm:$0xff]  ;;  %v1243_v32 = vld [vmem:[%s6253_s13 + $0x100] sm:$0xff] }
 0x168   : > { %1305 = vst [vmem:[%s6305_s0 + $0xf0] sm:$0xff] %v1241_v30  ;;  %v1244_v33 = vld [vmem:[%s6253_s13 + $0x108] sm:$0xff]  ;;  %1306 = vst [vmem:[%s6305_s0 + $0xf8] sm:$0xff] %v1242_v31  ;;  %v1245_v34 = vld [vmem:[%s6253_s13 + $0x110] sm:$0xff] }
 0x169   : > { %1307 = vst [vmem:[%s6305_s0 + $0x100] sm:$0xff] %v1243_v32  ;;  %1308 = vst [vmem:[%s6305_s0 + $0x108] sm:$0xff] %v1244_v33  ;;  %v1246_v35 = vld [vmem:[%s6253_s13 + $0x118] sm:$0xff]  ;;  %v1247_v36 = vld [vmem:[%s6253_s13 + $0x120] sm:$0xff] }
 0x16a   : > { %1309 = vst [vmem:[%s6305_s0 + $0x110] sm:$0xff] %v1245_v34  ;;  %1310 = vst [vmem:[%s6305_s0 + $0x118] sm:$0xff] %v1246_v35  ;;  %v1248_v37 = vld [vmem:[%s6253_s13 + $0x128] sm:$0xff]  ;;  %v1249_v38 = vld [vmem:[%s6253_s13 + $0x130] sm:$0xff] }
 0x16b   : > { %1311 = vst [vmem:[%s6305_s0 + $0x120] sm:$0xff] %v1247_v36  ;;  %v1250_v39 = vld [vmem:[%s6253_s13 + $0x138] sm:$0xff]  ;;  %1312 = vst [vmem:[%s6305_s0 + $0x128] sm:$0xff] %v1248_v37  ;;  %v1251_v40 = vld [vmem:[%s6253_s13 + $0x140] sm:$0xff] }
 0x16c   : > { %1313 = vst [vmem:[%s6305_s0 + $0x130] sm:$0xff] %v1249_v38  ;;  %1314 = vst [vmem:[%s6305_s0 + $0x138] sm:$0xff] %v1250_v39  ;;  %v1252_v41 = vld [vmem:[%s6253_s13 + $0x148] sm:$0xff]  ;;  %v1253_v42 = vld [vmem:[%s6253_s13 + $0x150] sm:$0xff] }
 0x16d   : > { %1315 = vst [vmem:[%s6305_s0 + $0x140] sm:$0xff] %v1251_v40  ;;  %1316 = vst [vmem:[%s6305_s0 + $0x148] sm:$0xff] %v1252_v41  ;;  %v1254_v43 = vld [vmem:[%s6253_s13 + $0x158] sm:$0xff]  ;;  %v1255_v44 = vld [vmem:[%s6253_s13 + $0x160] sm:$0xff] }
 0x16e   : > { %1317 = vst [vmem:[%s6305_s0 + $0x150] sm:$0xff] %v1253_v42  ;;  %v1256_v45 = vld [vmem:[%s6253_s13 + $0x168] sm:$0xff]  ;;  %1318 = vst [vmem:[%s6305_s0 + $0x158] sm:$0xff] %v1254_v43  ;;  %v1257_v46 = vld [vmem:[%s6253_s13 + $0x170] sm:$0xff] }
 0x16f   : > { %1319 = vst [vmem:[%s6305_s0 + $0x160] sm:$0xff] %v1255_v44  ;;  %1320 = vst [vmem:[%s6305_s0 + $0x168] sm:$0xff] %v1256_v45  ;;  %v1258_v47 = vld [vmem:[%s6253_s13 + $0x178] sm:$0xff]  ;;  %v1259_v48 = vld [vmem:[%s6253_s13 + $0x180] sm:$0xff] }
 0x170   : > { %1321 = vst [vmem:[%s6305_s0 + $0x170] sm:$0xff] %v1257_v46  ;;  %1322 = vst [vmem:[%s6305_s0 + $0x178] sm:$0xff] %v1258_v47  ;;  %v1260_v49 = vld [vmem:[%s6253_s13 + $0x188] sm:$0xff]  ;;  %v1261_v50 = vld [vmem:[%s6253_s13 + $0x190] sm:$0xff] }
 0x171   : > { %1323 = vst [vmem:[%s6305_s0 + $0x180] sm:$0xff] %v1259_v48  ;;  %v1262_v51 = vld [vmem:[%s6253_s13 + $0x198] sm:$0xff]  ;;  %1324 = vst [vmem:[%s6305_s0 + $0x188] sm:$0xff] %v1260_v49  ;;  %v1263_v52 = vld [vmem:[%s6253_s13 + $0x1a0] sm:$0xff] }
 0x172   : > { %1325 = vst [vmem:[%s6305_s0 + $0x190] sm:$0xff] %v1261_v50  ;;  %1326 = vst [vmem:[%s6305_s0 + $0x198] sm:$0xff] %v1262_v51  ;;  %v1264_v53 = vld [vmem:[%s6253_s13 + $0x1a8] sm:$0xff]  ;;  %v1265_v54 = vld [vmem:[%s6253_s13 + $0x1b0] sm:$0xff] }
 0x173   : > { %1327 = vst [vmem:[%s6305_s0 + $0x1a0] sm:$0xff] %v1263_v52  ;;  %1328 = vst [vmem:[%s6305_s0 + $0x1a8] sm:$0xff] %v1264_v53  ;;  %v1266_v55 = vld [vmem:[%s6253_s13 + $0x1b8] sm:$0xff]  ;;  %v1267_v56 = vld [vmem:[%s6253_s13 + $0x1c0] sm:$0xff] }
 0x174   : > { %1329 = vst [vmem:[%s6305_s0 + $0x1b0] sm:$0xff] %v1265_v54  ;;  %v1268_v57 = vld [vmem:[%s6253_s13 + $0x1c8] sm:$0xff]  ;;  %1330 = vst [vmem:[%s6305_s0 + $0x1b8] sm:$0xff] %v1266_v55  ;;  %v1269_v58 = vld [vmem:[%s6253_s13 + $0x1d0] sm:$0xff] }
 0x175   : > { %1331 = vst [vmem:[%s6305_s0 + $0x1c0] sm:$0xff] %v1267_v56  ;;  %1332 = vst [vmem:[%s6305_s0 + $0x1c8] sm:$0xff] %v1268_v57  ;;  %v1270_v59 = vld [vmem:[%s6253_s13 + $0x1d8] sm:$0xff]  ;;  %v1271_v60 = vld [vmem:[%s6253_s13 + $0x1e0] sm:$0xff] }
 0x176   : > { %1333 = vst [vmem:[%s6305_s0 + $0x1d0] sm:$0xff] %v1269_v58  ;;  %1334 = vst [vmem:[%s6305_s0 + $0x1d8] sm:$0xff] %v1270_v59  ;;  %v1272_v61 = vld [vmem:[%s6253_s13 + $0x1e8] sm:$0xff]  ;;  %v1273_v62 = vld [vmem:[%s6253_s13 + $0x1f0] sm:$0xff] }
 0x177   : > { %1335 = vst [vmem:[%s6305_s0 + $0x1e0] sm:$0xff] %v1271_v60  ;;  %v1274_v63 = vld [vmem:[%s6253_s13 + $0x1f8] sm:$0xff]  ;;  %1336 = vst [vmem:[%s6305_s0 + $0x1e8] sm:$0xff] %v1272_v61 }
 0x178   : > { %1337 = vst [vmem:[%s6305_s0 + $0x1f0] sm:$0xff] %v1273_v62  ;;  %1338 = vst [vmem:[%s6305_s0 + $0x1f8] sm:$0xff] %v1274_v63 }
 0x179 PF: > { %v6693_v0 = vld [vmem:[%s6294_s8 + $0x10] sm:$0xff]  ;;  %v6696_v1 = vld [vmem:[%s6294_s8] sm:$0xff]  ;;  %v5777_v2 = vmov 0   ;;  %v6701_v3 = vld [vmem:[%s6294_s8 + $0x18] sm:$0xff]  ;;  %v1571_v42 = vlaneseq  ;;  %v9104_v44 = vmov 0.0   ;;  %s9357_s1 = sld [smem:[#allocation55_spill]] }
 0x17a   : > { %4948 = vset.pattern.permute.xlu1 %v5777_v2  ;;  %4947 = vset.pattern.permute.xlu0 %v5777_v2  ;;  %v6704_v4 = vld [vmem:[%s6294_s8 + $0x8] sm:$0xff]  ;;  %v6712_v6 = vld [vmem:[%s6294_s8 + $0x20] sm:$0xff]  ;;  %v6717_v7 = vld [vmem:[%s6294_s8 + $0x38] sm:$0xff]  ;;  %vm2329_vm0 = vcmp.ne.f32.partialorder %v6693_v0, 0.0  ;;  %vm2327_vm1 = vcmp.ne.f32.partialorder %v6696_v1, 0.0  ;;  %vm2330_vm2 = vcmp.ne.f32.partialorder %v6701_v3, 0.0 }
 0x17b   : > { %1891 = vperm.xlu1 %4948, %v6693_v0   ;;  %1881 = vperm.xlu0 %4947, %v6696_v1   ;;  %v6709_v5 = vld [vmem:[%s6294_s8 + $0x28] sm:$0xff]  ;;  %v6720_v8 = vld [vmem:[%s6294_s8 + $0x30] sm:$0xff]  ;;  %v6728_v10 = vld [vmem:[%s6294_s8 + $0x40] sm:$0xff]  ;;  %vm2328_vm3 = vcmp.ne.f32.partialorder %v6704_v4, 0.0  ;;  %vm2331_vm5 = vcmp.ne.f32.partialorder %v6712_v6, 0.0  ;;  %vm2334_vm6 = vcmp.ne.f32.partialorder %v6717_v7, 0.0 }
 0x17c   : > { %v6725_v9 = vld [vmem:[%s6294_s8 + $0x48] sm:$0xff]  ;;  %v6733_v11 = vld [vmem:[%s6294_s8 + $0x58] sm:$0xff]  ;;  %v6736_v12 = vld [vmem:[%s6294_s8 + $0x50] sm:$0xff]  ;;  %vm2332_vm4 = vcmp.ne.f32.partialorder %v6709_v5, 0.0  ;;  %v6844_v45 = vsel %vm2329_vm0, 1.0, %v9104_v44  ;;  %v6849_v46 = vsel %vm2327_vm1, 1.0, %v9104_v44 }
 0x17d   : > { %v6741_v13 = vld [vmem:[%s6294_s8 + $0x68] sm:$0xff]  ;;  %v6744_v14 = vld [vmem:[%s6294_s8 + $0x60] sm:$0xff]  ;;  %v6749_v15 = vld [vmem:[%s6294_s8 + $0x78] sm:$0xff]  ;;  %v6854_v47 = vsel %vm2330_vm2, 1.0, %v9104_v44  ;;  %vm2333_vm7 = vcmp.ne.f32.partialorder %v6720_v8, 0.0  ;;  %v6862_v48 = vsel %vm2328_vm3, 1.0, %v9104_v44 }
 0x17e   : > { %v6752_v16 = vld [vmem:[%s6294_s8 + $0x70] sm:$0xff]  ;;  %v6757_v17 = vld [vmem:[%s6294_s8 + $0x88] sm:$0xff]  ;;  %v6760_v18 = vld [vmem:[%s6294_s8 + $0x80] sm:$0xff]  ;;  %v6867_v49 = vsel %vm2332_vm4, 1.0, %v9104_v44  ;;  %vm2336_vm8 = vcmp.ne.f32.partialorder %v6725_v9, 0.0  ;;  %vm2335_vm9 = vcmp.ne.f32.partialorder %v6728_v10, 0.0 }
 0x17f   : > { %1896 = vperm.xlu1 %4948, %v6701_v3   ;;  %1886 = vperm.xlu0 %4947, %v6704_v4   ;;  %v6765_v19 = vld [vmem:[%s6294_s8 + $0x98] sm:$0xff]  ;;  %v6768_v20 = vld [vmem:[%s6294_s8 + $0x90] sm:$0xff]  ;;  %v6773_v21 = vld [vmem:[%s6294_s8 + $0xa8] sm:$0xff]  ;;  %v6880_v52 = vsel %vm2331_vm5, 1.0, %v9104_v44  ;;  %v6885_v53 = vsel %vm2334_vm6, 1.0, %v9104_v44  ;;  %vm2338_vm10 = vcmp.ne.f32.partialorder %v6733_v11, 0.0 }
 0x180   : > { %v6776_v22 = vld [vmem:[%s6294_s8 + $0xa0] sm:$0xff]  ;;  %v6781_v23 = vld [vmem:[%s6294_s8 + $0xb8] sm:$0xff]  ;;  %v6784_v24 = vld [vmem:[%s6294_s8 + $0xb0] sm:$0xff]  ;;  %vm2337_vm11 = vcmp.ne.f32.partialorder %v6736_v12, 0.0  ;;  %v6893_v55 = vsel %vm2333_vm7, 1.0, %v9104_v44  ;;  %vm2340_vm12 = vcmp.ne.f32.partialorder %v6741_v13, 0.0 }
 0x181   : > { %v6789_v25 = vld [vmem:[%s6294_s8 + $0xc8] sm:$0xff]  ;;  %v6792_v26 = vld [vmem:[%s6294_s8 + $0xc0] sm:$0xff]  ;;  %v6797_v27 = vld [vmem:[%s6294_s8 + $0xd8] sm:$0xff]  ;;  %vm2339_vm13 = vcmp.ne.f32.partialorder %v6744_v14, 0.0  ;;  %vm2342_vm14 = vcmp.ne.f32.partialorder %v6749_v15, 0.0  ;;  %v6901_v56 = vsel %vm2336_vm8, 1.0, %v9104_v44 }
 0x182   : > { %v6800_v28 = vld [vmem:[%s6294_s8 + $0xd0] sm:$0xff]  ;;  %v1372_v29 = vld [vmem:[%s6294_s8 + $0xe8] sm:$0xff]  ;;  %v1371_v30 = vld [vmem:[%s6294_s8 + $0xe0] sm:$0xff]  ;;  %v6906_v57 = vsel %vm2335_vm9, 1.0, %v9104_v44  ;;  %vm2341_vm15 = vcmp.ne.f32.partialorder %v6752_v16, 0.0  ;;  %vm2344_vm0 = vcmp.ne.f32.partialorder %v6757_v17, 0.0 }
 0x183   : > { %1906 = vperm.xlu1 %4948, %v6709_v5   ;;  %1901 = vperm.xlu0 %4947, %v6712_v6   ;;  %v1374_v31 = vld [vmem:[%s6294_s8 + $0xf8] sm:$0xff]  ;;  %v1373_v32 = vld [vmem:[%s6294_s8 + $0xf0] sm:$0xff]  ;;  %v6809_v33 = vld [vmem:[%s6294_s8 + $0x108] sm:$0xff]  ;;  %v6916_v59 = vsel %vm2338_vm10, 1.0, %v9104_v44  ;;  %v6921_v60 = vsel %vm2337_vm11, 1.0, %v9104_v44  ;;  %vm2343_vm1 = vcmp.ne.f32.partialorder %v6760_v18, 0.0 }
 0x184   : > { %v6812_v34 = vld [vmem:[%s6294_s8 + $0x100] sm:$0xff]  ;;  %v6817_v35 = vld [vmem:[%s6294_s8 + $0x118] sm:$0xff]  ;;  %v6820_v36 = vld [vmem:[%s6294_s8 + $0x110] sm:$0xff]  ;;  %vm2346_vm2 = vcmp.ne.f32.partialorder %v6765_v19, 0.0  ;;  %v6934_v63 = vsel %vm2340_vm12, 1.0, %v9104_v44  ;;  %v6939_v0 = vsel %vm2339_vm13, 1.0, %v9104_v44 }
 0x185   : > { %v3402_v37 = vld [vmem:[%s6278_s14 + $0x78] sm:$0xff]  ;;  %v3401_v38 = vld [vmem:[%s6278_s14 + $0x70] sm:$0xff]  ;;  %v6830_v39 = vld [vmem:[%s6294_s8 + $0x128] sm:$0xff]  ;;  %v6944_v1 = vsel %vm2342_vm14, 1.0, %v9104_v44  ;;  %vm2345_vm3 = vcmp.ne.f32.partialorder %v6768_v20, 0.0  ;;  %v6950_v2 = vsel %vm2341_vm15, 1.0, %v9104_v44 }
 0x186   : > { %4592 = vmatprep.subr.mxu0 %v3402_v37  ;;  %4720 = vmatprep.subr.mxu1 %v3402_v37  ;;  %v6833_v40 = vld [vmem:[%s6294_s8 + $0x120] sm:$0xff]  ;;  %v3400_v41 = vld [vmem:[%s6278_s14 + $0x68] sm:$0xff]  ;;  %v3399_v43 = vld [vmem:[%s6278_s14 + $0x60] sm:$0xff]  ;;  %v6955_v3 = vsel %vm2344_vm0, 1.0, %v9104_v44  ;;  %vm2348_vm4 = vcmp.ne.f32.partialorder %v6773_v21, 0.0  ;;  %v1572_v4 = vshrl.u32 %v1571_v42, 7 }
 0x187   : > { %1916 = vperm.xlu1 %4948, %v6717_v7   ;;  %1911 = vperm.xlu0 %4947, %v6720_v8   ;;  %v6872_v50 = vld [vmem:[%s6294_s8 + $0x138] sm:$0xff]  ;;  %v6875_v51 = vld [vmem:[%s6294_s8 + $0x130] sm:$0xff]  ;;  %v3398_v54 = vld [vmem:[%s6278_s14 + $0x58] sm:$0xff]  ;;  %v6962_v6 = vsel %vm2343_vm1, 1.0, %v9104_v44  ;;  %v6967_v7 = vsel %vm2346_vm2, 1.0, %v9104_v44  ;;  %vm2360_vm5 = vcmp.ne.f32.partialorder %v6809_v33, 0.0 }
 0x188   : > { %4593 = vmatpush3.msra.mxu0 %v3402_v37  ;;  %4736 = vmatpush3.msra.mxu1 %v3402_v37  ;;  %v3397_v58 = vld [vmem:[%s6278_s14 + $0x50] sm:$0xff]  ;;  %v6926_v61 = vld [vmem:[%s6294_s8 + $0x148] sm:$0xff]  ;;  %v6929_v62 = vld [vmem:[%s6294_s8 + $0x140] sm:$0xff]  ;;  %vm2359_vm6 = vcmp.ne.f32.partialorder %v6812_v34, 0.0  ;;  %v6976_v8 = vsel %vm2345_vm3, 1.0, %v9104_v44  ;;  %vm2347_vm7 = vcmp.ne.f32.partialorder %v6776_v22, 0.0 }
 0x189   : > { %4594 = vmatprep.subr.mxu0 %v3401_v38  ;;  %4721 = vmatprep.subr.mxu1 %v3401_v38  ;;  %v3396_v5 = vld [vmem:[%s6278_s14 + $0x48] sm:$0xff]  ;;  %vm2362_vm8 = vcmp.ne.f32.partialorder %v6817_v35, 0.0  ;;  %vm2361_vm9 = vcmp.ne.f32.partialorder %v6820_v36, 0.0  ;;  %vm2350_vm10 = vcmp.ne.f32.partialorder %v6781_v23, 0.0  ;;  %vm2364_vm11 = vcmp.ne.f32.partialorder %v6830_v39, 0.0  ;;  %p9359_p3 = scmp.ne.s32.totalorder %s9357_s1, 0 }
 0x18a   : > { %4595 = vmatpush3.msra.mxu0 %v3401_v38  ;;  %4737 = vmatpush3.msra.mxu1 %v3401_v38  ;;  %vm2363_vm12 = vcmp.ne.f32.partialorder %v6833_v40, 0.0  ;;  %vm2366_vm13 = vcmp.ne.f32.partialorder %v6872_v50, 0.0  ;;  %v1440_v37 = vld [vmem:[%s6299_s19 + $0x108] sm:$0xff]  ;;  %vm2349_vm14 = vcmp.ne.f32.partialorder %v6784_v24, 0.0  ;;  %vm2365_vm15 = vcmp.ne.f32.partialorder %v6875_v51, 0.0  ;;  %s5779_s17 = smov [#allocation20]  }
 0x18b   : > { %1926 = vperm.xlu1 %4948, %v6725_v9   ;;  %1921 = vperm.xlu0 %4947, %v6728_v10   ;;  %v6982_v9 = vld [vmem:[%s6294_s8 + $0x158] sm:$0xff]  ;;  %v6985_v10 = vld [vmem:[%s6294_s8 + $0x150] sm:$0xff]  ;;  %vm2352_vm0 = vcmp.ne.f32.partialorder %v6789_v25, 0.0  ;;  %vm2368_vm1 = vcmp.ne.f32.partialorder %v6926_v61, 0.0  ;;  %vm2351_vm2 = vcmp.ne.f32.partialorder %v6792_v26, 0.0  ;;  %vm2367_vm3 = vcmp.ne.f32.partialorder %v6929_v62, 0.0 }
 0x18c   : > { %4596 = vmatprep.subr.mxu0 %v3400_v41  ;;  %4722 = vmatprep.subr.mxu1 %v3400_v41  ;;  %v7065_v38 = vld [vmem:[%s6260_s2 + $0x8] sm:$0xff]  ;;  %s5515_s12 = sshll.u32 %s5779_s17, 4  ;;  %s5516_s12 = int_to_ptr.vmem [resolvable:$false] %s5515_s12 }
 0x18d   : > { %4597 = vmatpush3.msra.mxu0 %v3400_v41  ;;  %4738 = vmatpush3.msra.mxu1 %v3400_v41  ;;  %v1520_v42 = vmul.f32 %v7065_v38, %v1440_v37  ;;  %v7108_v37 = vsel %vm2349_vm14, 1.0, %v9104_v44  ;;  %vm2353_vm14 = vcmp.ne.f32.partialorder %v6800_v28, 0.0  ;;  %s5517_s27 = scalar_lea.vmem %s5516_s12, 16384 }
 0x18e   : > { %4598 = vmatprep.subr.mxu0 %v3399_v43  ;;  %4723 = vmatprep.subr.mxu1 %v3399_v43  ;;  %9248 = vst [vmem:[#allocation61_spill] sm:$0xff] %v7108_v37  ;;  %v1441_v37 = vld [vmem:[%s6299_s19 + $0x110] sm:$0xff] }
 0x18f   : > { %1936 = vperm.xlu1 %4948, %v6733_v11   ;;  %1931 = vperm.xlu0 %4947, %v6736_v12   ;;  %v6990_v11 = vsel %vm2348_vm4, 1.0, %v9104_v44  ;;  %v3395_v12 = vld [vmem:[%s6278_s14 + $0x40] sm:$0xff]  ;;  %vm2370_vm4 = vcmp.ne.f32.partialorder %v6982_v9, 0.0 }
 0x190   : > { %4599 = vmatpush3.msra.mxu0 %v3399_v43  ;;  %4739 = vmatpush3.msra.mxu1 %v3399_v43  ;;  %9244 = vst [vmem:[#allocation57_spill] sm:$0xff] %v6990_v11  ;;  %v7074_v43 = vld [vmem:[%s6269_s26 + $0x8] sm:$0xff] }
 0x191   : > { %4600 = vmatprep.subr.mxu0 %v3398_v54  ;;  %4724 = vmatprep.subr.mxu1 %v3398_v54 }
 0x192   : > { %4601 = vmatpush3.msra.mxu0 %v3398_v54  ;;  %4740 = vmatpush3.msra.mxu1 %v3398_v54 }
 0x193   : > { %1946 = vperm.xlu1 %4948, %v6741_v13   ;;  %1941 = vperm.xlu0 %4947, %v6744_v14   ;;  %v6999_v13 = vsel %vm2360_vm5, 1.0, %v9104_v44  ;;  %v7004_v14 = vsel %vm2359_vm6, 1.0, %v9104_v44  ;;  %vm2354_vm5 = vcmp.ne.f32.partialorder %v6797_v27, 0.0  ;;  %vm2369_vm6 = vcmp.ne.f32.partialorder %v6985_v10, 0.0 }
 0x194   : > { %4602 = vmatprep.subr.mxu0 %v3397_v58  ;;  %4725 = vmatprep.subr.mxu1 %v3397_v58 }
 0x195   : > { %4603 = vmatpush3.msra.mxu0 %v3397_v58  ;;  %4741 = vmatpush3.msra.mxu1 %v3397_v58  ;;  %v1439_v58 = vld [vmem:[%s6299_s19 + $0x100] sm:$0xff] }
 0x196   : > { %4604 = vmatprep.subr.mxu0 %v3396_v5  ;;  %4726 = vmatprep.subr.mxu1 %v3396_v5 }
 0x197   : > { %1956 = vperm.xlu1 %4948, %v6749_v15   ;;  %1951 = vperm.xlu0 %4947, %v6752_v16   ;;  %v7007_v15 = vsub.s32 0, %v1572_v4  ;;  %v7012_v16 = vsel %vm2347_vm7, 1.0, %v9104_v44  ;;  %v7090_v4 = vsel %vm2350_vm10, 1.0, %v9104_v44 }
 0x198   : > { %4605 = vmatpush3.msra.mxu0 %v3396_v5  ;;  %4742 = vmatpush3.msra.mxu1 %v3396_v5  ;;  %9246 = vst [vmem:[#allocation59_spill] sm:$0xff] %v7012_v16  ;;  %9247 = vst [vmem:[#allocation60_spill] sm:$0xff] %v7090_v4  ;;  %v9251_v16 = vmov 0.0  }
 0x199   : > { %9245 = vst [vmem:[#allocation58_spill] sm:$0xff] %v7007_v15  ;;  %4606 = vmatprep.subr.mxu0 %v3395_v12  ;;  %4727 = vmatprep.subr.mxu1 %v3395_v12  ;;  %v7162_v11 = vsel %vm2368_vm1, 1.0, %v9251_v16 }
 0x19a   : > { %4607 = vmatpush3.msra.mxu0 %v3395_v12  ;;  %4743 = vmatpush3.msra.mxu1 %v3395_v12 }
 0x19b   : > { %1966 = vperm.xlu1 %4948, %v6757_v17   ;;  %1961 = vperm.xlu0 %4947, %v6760_v18   ;;  %v7017_v17 = vsel %vm2362_vm8, 1.0, %v9104_v44  ;;  %v7022_v18 = vsel %vm2361_vm9, 1.0, %v9104_v44 }
 0x19f   : > { %1976 = vperm.xlu1 %4948, %v6765_v19   ;;  %1971 = vperm.xlu0 %4947, %v6768_v20   ;;  %v7027_v19 = vld [vmem:[%s6225_s24] sm:$0x1] }
 0x1a0   : > { %v3394_v20 = vld [vmem:[%s6278_s14 + $0x38] sm:$0xff] }
 0x1a1   : > { %4608 = vmatprep.subr.mxu0 %v3394_v20  ;;  %4728 = vmatprep.subr.mxu1 %v3394_v20 }
 0x1a2   : > { %4609 = vmatpush3.msra.mxu0 %v3394_v20  ;;  %4744 = vmatpush3.msra.mxu1 %v3394_v20  ;;  %v1410_v20 = vld [vmem:[%s6299_s19 + $0x18] sm:$0xff] }
 0x1a3   : > { %1986 = vperm.xlu1 %4948, %v6773_v21   ;;  %1981 = vperm.xlu0 %4947, %v6776_v22   ;;  %v7033_v21 = vsel %vm2364_vm11, 1.0, %v9104_v44  ;;  %v7038_v22 = vsel %vm2363_vm12, 1.0, %v9104_v44  ;;  %vm2519_vm11 = vcmp.ne.f32.partialorder %v7027_v19, 0.0 }
 0x1a7   : > { %1996 = vperm.xlu1 %4948, %v6781_v23   ;;  %1991 = vperm.xlu0 %4947, %v6784_v24   ;;  %v7103_v23 = vld [vmem:[%s6269_s26] sm:$0xff]  ;;  %v7119_v24 = vsel %vm2365_vm15, 1.0, %v9104_v44 }
 0x1ab   : > { %2006 = vperm.xlu1 %4948, %v6789_v25   ;;  %2001 = vperm.xlu0 %4947, %v6792_v26  }
 0x1af   : > { %2016 = vperm.xlu1 %4948, %v6797_v27   ;;  %2011 = vperm.xlu0 %4947, %v6800_v28   ;;  %v7636_v28 = vld [vmem:[%s6225_s24 + $0x3] ss:$0 sm:$0xff] }
 0x1b3   : > { %2026 = vperm.xlu1 %4948, %v1372_v29   ;;  %2021 = vperm.xlu0 %4947, %v1371_v30   ;;  %v7041_v29 = vld [vmem:[%s6294_s8 + $0x168] sm:$0xff]  ;;  %v7044_v30 = vld [vmem:[%s6294_s8 + $0x160] sm:$0xff] }
 0x1b4   : > { %vm2372_vm7 = vcmp.ne.f32.partialorder %v7041_v29, 0.0  ;;  %vm2371_vm8 = vcmp.ne.f32.partialorder %v7044_v30, 0.0 }
 0x1b7   : > { %2036 = vperm.xlu1 %4948, %v1374_v31   ;;  %2031 = vperm.xlu0 %4947, %v1373_v32   ;;  %v7047_v31 = vld [vmem:[%s6225_s24 + $0x2] ss:$0 sm:$0xff]  ;;  %v7051_v32 = vrot.slane %v7027_v19, %v7007_v15  ;;  %v7460_v19 = vld [vmem:[%s6263_s21 + $0x20] sm:$0xff] }
 0x1b8   : > { %v1624_v54 = vmul.f32 %v7047_v31, %v7074_v43  ;;  %9278 = vst [vmem:[#allocation83_spill] sm:$0xff] %v7460_v19 }
 0x1ba   : > { %v1688_v5 = vadd.f32 %v1624_v54, %v1520_v42  ;;  %v1591_v42 = vmul.f32 %v7051_v32, %v7103_v23  ;;  %v1409_v54 = vld [vmem:[%s6299_s19 + $0x10] sm:$0xff] }
 0x1bb   : > { %2046 = vperm.xlu1 %4948, %v6809_v33   ;;  %2041 = vperm.xlu0 %4947, %v6812_v34   ;;  %v7056_v33 = vsel %vm2366_vm13, 1.0, %v9104_v44  ;;  %v4954_v34 = vpack.i.bf16 %v6999_v13, %v6862_v48  ;;  %v1442_v48 = vld [vmem:[%s6299_s19 + $0x118] sm:$0xff] }
 0x1bc   : > { %3228 = vst [vmem:[%s6299_s19 + $0x108] sm:$0xff] %v1688_v5  ;;  %v9259_v25 = vpack.i.bf16 %v7056_v33, %v6885_v53  ;;  %v7296_v53 = vsel %vm2371_vm8, 1.0, %v9251_v16 }
 0x1bf   : > { %2056 = vperm.xlu1 %4948, %v6817_v35   ;;  %2051 = vperm.xlu0 %4947, %v6820_v36   ;;  %v4949_v35 = vpack.i.bf16 %v7004_v14, %v6849_v46  ;;  %v1408_v36 = vld [vmem:[%s6299_s19 + $0x8] sm:$0xff]  ;;  %v1407_v46 = vld [vmem:[%s6299_s19] sm:$0xff] }
 0x1c0   : > { %v1488_v41 = vmul.f32 %v7065_v38, %v1408_v36  ;;  %v3392_v14 = vld [vmem:[%s6278_s14 + $0x28] sm:$0xff]  ;;  %v7100_v36 = vld [vmem:[%s6260_s2] sm:$0xff] }
 0x1c1   : > { %v1487_v13 = vmul.f32 %v7100_v36, %v1407_v46  ;;  %v1623_v46 = vmul.f32 %v7047_v31, %v7103_v23 }
 0x1c3   : > { %2066 = vperm.xlu1 %4948, %v6830_v39   ;;  %2061 = vperm.xlu0 %4947, %v6833_v40   ;;  %v3393_v40 = vld [vmem:[%s6278_s14 + $0x30] sm:$0xff]  ;;  %v7114_v39 = vld [vmem:[%s6260_s2 + $0x18] sm:$0xff] }
 0x1c4   : > { %4610 = vmatprep.subr.mxu0 %v3393_v40  ;;  %4729 = vmatprep.subr.mxu1 %v3393_v40 }
 0x1c5   : > { %4611 = vmatpush3.msra.mxu0 %v3393_v40  ;;  %4745 = vmatpush3.msra.mxu1 %v3393_v40  ;;  %v1490_v40 = vmul.f32 %v7114_v39, %v1410_v20 }
 0x1c6   : > { %4612 = vmatprep.subr.mxu0 %v3392_v14  ;;  %4730 = vmatprep.subr.mxu1 %v3392_v14 }
 0x1c7   : > { %2076 = vperm.xlu1 %4948, %v6872_v50   ;;  %2071 = vperm.xlu0 %4947, %v6875_v51   ;;  %v1592_v50 = vmul.f32 %v7051_v32, %v7074_v43  ;;  %v3391_v51 = vld [vmem:[%s6278_s14 + $0x20] sm:$0xff] }
 0x1c8   : > { %4613 = vmatpush3.msra.mxu0 %v3392_v14  ;;  %4746 = vmatpush3.msra.mxu1 %v3392_v14 }
 0x1c9   : > { %v1656_v12 = vadd.f32 %v1592_v50, %v1488_v41  ;;  %v1519_v41 = vmul.f32 %v7100_v36, %v1439_v58  ;;  %v7127_v50 = vld [vmem:[%s6269_s26 + $0x18] sm:$0xff]  ;;  %v1522_v58 = vmul.f32 %v7114_v39, %v1442_v48  ;;  %v7145_v48 = vld [vmem:[%s6260_s2 + $0x10] sm:$0xff]  ;;  %4614 = vmatprep.subr.mxu0 %v3391_v51  ;;  %4731 = vmatprep.subr.mxu1 %v3391_v51 }
 0x1ca   : > { %v1594_v44 = vmul.f32 %v7051_v32, %v7127_v50  ;;  %v1626_v5 = vmul.f32 %v7047_v31, %v7127_v50  ;;  %9249 = vst [vmem:[#allocation62_spill] sm:$0xff] %v7145_v48  ;;  %v1489_v4 = vmul.f32 %v7145_v48, %v1409_v54  ;;  %4615 = vmatpush3.msra.mxu0 %v3391_v51 }
 0x1cb   : > { %2086 = vperm.xlu1 %4948, %v6926_v61   ;;  %2081 = vperm.xlu0 %4947, %v6929_v62   ;;  %3196 = vst [vmem:[%s6299_s19 + $0x8] sm:$0xff] %v1656_v12  ;;  %v7148_v12 = vld [vmem:[%s6269_s26 + $0x10] sm:$0xff]  ;;  %v7178_v61 = vsel %vm2367_vm3, 1.0, %v9251_v16 }
 0x1cc   : > { %9250 = vst [vmem:[#allocation63_spill] sm:$0xff] %v7148_v12  ;;  %v1658_v20 = vadd.f32 %v1594_v44, %v1490_v40  ;;  %v3390_v44 = vld [vmem:[%s6278_s14 + $0x18] sm:$0xff]  ;;  %v1690_v14 = vadd.f32 %v1626_v5, %v1522_v58  ;;  %v1625_v54 = vmul.f32 %v7047_v31, %v7148_v12  ;;  %v7172_v40 = vld [vmem:[%s6269_s26 + $0x28] sm:$0xff]  ;;  %v9253_v58 = vpack.i.bf16 %v7022_v18, %v6844_v45  ;;  %v7197_v18 = vld [vmem:[%s6260_s2 + $0x20] sm:$0xff] }
 0x1cd   : > { %v1596_v62 = vmul.f32 %v7051_v32, %v7172_v40  ;;  %4747 = vmatpush3.msra.mxu1 %v3391_v51  ;;  %4616 = vmatprep.subr.mxu0 %v3390_v44  ;;  %v3389_v51 = vld [vmem:[%s6278_s14 + $0x10] sm:$0xff] }
 0x1ce   : > { %3198 = vst [vmem:[%s6299_s19 + $0x18] sm:$0xff] %v1658_v20  ;;  %3230 = vst [vmem:[%s6299_s19 + $0x118] sm:$0xff] %v1690_v14  ;;  %v7202_v20 = vsel %vm2370_vm4, 1.0, %v9251_v16  ;;  %4732 = vmatprep.subr.mxu1 %v3390_v44  ;;  %4617 = vmatpush3.msra.mxu0 %v3390_v44 }
 0x1cf   : > { %2096 = vperm.xlu1 %4948, %v6982_v9   ;;  %2091 = vperm.xlu0 %4947, %v6985_v10   ;;  %v5004_v33 = vpack.i.bf16 %v7202_v20, %v6916_v59  ;;  %v1721_v59 = vld [vmem:[%s6302_s15 + $0x10] sm:$0xff] }
 0x1d0   : > { %4748 = vmatpush3.msra.mxu1 %v3390_v44  ;;  %v9254_v44 = vpack.i.bf16 %v7033_v21, %v6867_v49  ;;  %4618 = vmatprep.subr.mxu0 %v3389_v51  ;;  %v1413_v21 = vld [vmem:[%s6299_s19 + $0x30] sm:$0xff] }
 0x1d1   : > { %4733 = vmatprep.subr.mxu1 %v3389_v51  ;;  %4619 = vmatpush3.msra.mxu0 %v3389_v51 }
 0x1d2   : > { %4749 = vmatpush3.msra.mxu1 %v3389_v51  ;;  %v7278_v51 = vsel %vm2351_vm2, 1.0, %v9251_v16 }
 0x1d3   : > { %2106 = vperm.xlu1 %4948, %v7041_v29   ;;  %2101 = vperm.xlu0 %4947, %v7044_v30   ;;  %v7268_v29 = vsel %vm2352_vm0, 1.0, %v9251_v16  ;;  %9258 = vst [vmem:[#allocation66_spill] sm:$0xff] %v7278_v51  ;;  %v7313_v30 = vsel %vm2354_vm5, 1.0, %v9251_v16 }
 0x1d4   : > { %9257 = vst [vmem:[#allocation65_spill] sm:$0xff] %v7268_v29  ;;  %9261 = vst [vmem:[#allocation68_spill] sm:$0xff] %v7313_v30  ;;  %v1420_v30 = vld [vmem:[%s6299_s19 + $0x68] sm:$0xff]  ;;  %v1453_v29 = vld [vmem:[%s6299_s19 + $0x170] sm:$0xff] }
 0x1d7   : > { %4955 = vperm.xlu1 %4948, %v4954_v34   ;;  %4950 = vperm.xlu0 %4947, %v4949_v35   ;;  %v1655_v34 = vadd.f32 %v1591_v42, %v1487_v13  ;;  %v1687_v35 = vadd.f32 %v1623_v46, %v1519_v41  ;;  %v1521_v13 = vmul.f32 %v7145_v48, %v1441_v37  ;;  %v1412_v41 = vld [vmem:[%s6299_s19 + $0x28] sm:$0xff]  ;;  %v1411_v48 = vld [vmem:[%s6299_s19 + $0x20] sm:$0xff] }
 0x1d8   : > { %v1444_v42 = vld [vmem:[%s6299_s19 + $0x128] sm:$0xff]  ;;  %v1593_v37 = vmul.f32 %v7051_v32, %v7148_v12  ;;  %v1443_v12 = vld [vmem:[%s6299_s19 + $0x120] sm:$0xff] }
 0x1d9   : > { %v7156_v46 = vld [vmem:[%s6260_s2 + $0x28] sm:$0xff]  ;;  %3195 = vst [vmem:[%s6299_s19] sm:$0xff] %v1655_v34  ;;  %3227 = vst [vmem:[%s6299_s19 + $0x100] sm:$0xff] %v1687_v35  ;;  %v9252_v34 = vpack.i.bf16 %v7017_v17, %v6854_v47  ;;  %v1689_v45 = vadd.f32 %v1625_v54, %v1521_v13  ;;  %v1628_v17 = vmul.f32 %v7047_v31, %v7172_v40  ;;  %v7220_v54 = vld [vmem:[%s6260_s2 + $0x38] sm:$0xff] }
 0x1da   : > { %v1492_v35 = vmul.f32 %v7156_v46, %v1412_v41  ;;  %v1524_v5 = vmul.f32 %v7156_v46, %v1444_v42  ;;  %v1657_v47 = vadd.f32 %v1593_v37, %v1489_v4  ;;  %v1491_v4 = vmul.f32 %v7197_v18, %v1411_v48  ;;  %v7208_v42 = vld [vmem:[%s6269_s26 + $0x20] sm:$0xff] }
 0x1db   : > { %4965 = vperm.xlu1 %4948, %v9252_v34   ;;  %4960 = vperm.xlu0 %4947, %v9253_v58   ;;  %v1523_v13 = vmul.f32 %v7197_v18, %v1443_v12  ;;  %3229 = vst [vmem:[%s6299_s19 + $0x110] sm:$0xff] %v1689_v45  ;;  %v1595_v14 = vmul.f32 %v7051_v32, %v7208_v42  ;;  %v1414_v12 = vld [vmem:[%s6299_s19 + $0x38] sm:$0xff]  ;;  %v7225_v34 = vsel %vm2369_vm6, 1.0, %v9251_v16 }
 0x1dc   : > { %v1660_v41 = vadd.f32 %v1596_v62, %v1492_v35  ;;  %3197 = vst [vmem:[%s6299_s19 + $0x10] sm:$0xff] %v1657_v47  ;;  %v1692_v9 = vadd.f32 %v1628_v17, %v1524_v5  ;;  %v1627_v48 = vmul.f32 %v7047_v31, %v7208_v42  ;;  %v1446_v37 = vld [vmem:[%s6299_s19 + $0x138] sm:$0xff]  ;;  %v9255_v58 = vpack.i.bf16 %v7038_v22, %v6880_v52  ;;  %v3388_v5 = vld [vmem:[%s6278_s14 + $0x8] sm:$0xff] }
 0x1dd   : > { %v4979_v35 = vpack.i.bf16 %v7119_v24, %v6893_v55  ;;  %v1494_v62 = vmul.f32 %v7220_v54, %v1414_v12  ;;  %v1526_v10 = vmul.f32 %v7220_v54, %v1446_v37  ;;  %v7240_v47 = vld [vmem:[%s6269_s26 + $0x38] sm:$0xff]  ;;  %v1659_v49 = vadd.f32 %v1595_v14, %v1491_v4  ;;  %v7260_v4 = vld [vmem:[%s6260_s2 + $0x30] sm:$0xff]  ;;  %4620 = vmatprep.subr.mxu0 %v3388_v5  ;;  %v7287_v14 = vld [vmem:[%s6294_s8 + $0x170] sm:$0xff] }
 0x1de   : > { %3200 = vst [vmem:[%s6299_s19 + $0x28] sm:$0xff] %v1660_v41  ;;  %3232 = vst [vmem:[%s6299_s19 + $0x128] sm:$0xff] %v1692_v9  ;;  %v1691_v52 = vadd.f32 %v1627_v48, %v1523_v13  ;;  %v1598_v55 = vmul.f32 %v7051_v32, %v7240_v47  ;;  %v7250_v22 = vsel %vm2372_vm7, 1.0, %v9251_v16  ;;  %v4994_v24 = vpack.i.bf16 %v7162_v11, %v6901_v56  ;;  %v1445_v41 = vld [vmem:[%s6299_s19 + $0x130] sm:$0xff]  ;;  %v3387_v56 = vld [vmem:[%s6278_s14] sm:$0xff] }
 0x1df   : > { %4975 = vperm.xlu1 %4948, %v9254_v44   ;;  %4970 = vperm.xlu0 %4947, %v9255_v58   ;;  %v4989_v45 = vpack.i.bf16 %v7178_v61, %v6906_v57  ;;  %v1630_v17 = vmul.f32 %v7047_v31, %v7240_v47  ;;  %v7263_v13 = vld [vmem:[%s6269_s26 + $0x30] sm:$0xff]  ;;  %3199 = vst [vmem:[%s6299_s19 + $0x20] sm:$0xff] %v1659_v49  ;;  %vm2373_vm10 = vcmp.ne.f32.partialorder %v7287_v14, 0.0 }
 0x1e0   : > { %9256 = vst [vmem:[#allocation64_spill] sm:$0xff] %v7263_v13  ;;  %4734 = vmatprep.subr.mxu1 %v3388_v5  ;;  %3231 = vst [vmem:[%s6299_s19 + $0x120] sm:$0xff] %v1691_v52  ;;  %v1662_v57 = vadd.f32 %v1598_v55, %v1494_v62  ;;  %v1493_v11 = vmul.f32 %v7260_v4, %v1413_v21  ;;  %v1525_v61 = vmul.f32 %v7260_v4, %v1445_v41  ;;  %v7284_v9 = vld [vmem:[%s6294_s8 + $0x178] sm:$0xff]  ;;  %v7308_v62 = vld [vmem:[%s6260_s2 + $0x48] sm:$0xff] }
 0x1e1   : > { %v1694_v48 = vadd.f32 %v1630_v17, %v1526_v10  ;;  %v1597_v26 = vmul.f32 %v7051_v32, %v7263_v13  ;;  %v1629_v12 = vmul.f32 %v7047_v31, %v7263_v13  ;;  %v4999_v37 = vpack.i.bf16 %v7225_v34, %v6921_v60  ;;  %4621 = vmatpush3.msra.mxu0 %v3388_v5  ;;  %v1416_v58 = vld [vmem:[%s6299_s19 + $0x48] sm:$0xff]  ;;  %v1415_v55 = vld [vmem:[%s6299_s19 + $0x40] sm:$0xff]  ;;  %v1417_v41 = vld [vmem:[%s6299_s19 + $0x50] sm:$0xff] }
 0x1e2   : > { %4750 = vmatpush3.msra.mxu1 %v3388_v5  ;;  %3202 = vst [vmem:[%s6299_s19 + $0x38] sm:$0xff] %v1662_v57  ;;  %9260 = vst [vmem:[#allocation67_spill] sm:$0xff] %v7308_v62  ;;  %v7317_v60 = vld [vmem:[%s6263_s21 + $0x10] sm:$0xff]  ;;  %4622 = vmatprep.subr.mxu0 %v3387_v56  ;;  %v1496_v5 = vmul.f32 %v7308_v62, %v1416_v58  ;;  %v7322_v10 = vld [vmem:[%s6269_s26 + $0x48] sm:$0xff]  ;;  %vm2374_vm9 = vcmp.ne.f32.partialorder %v7284_v9, 0.0 }
 0x1e3   : > { %4985 = vperm.xlu1 %4948, %v9259_v25   ;;  %4980 = vperm.xlu0 %4947, %v4979_v35   ;;  %v1448_v35 = vld [vmem:[%s6299_s19 + $0x148] sm:$0xff]  ;;  %9262 = vst [vmem:[#allocation69_spill] sm:$0xff] %v7317_v60  ;;  %3234 = vst [vmem:[%s6299_s19 + $0x138] sm:$0xff] %v1694_v48  ;;  %v1661_v20 = vadd.f32 %v1597_v26, %v1493_v11  ;;  %v1693_v34 = vadd.f32 %v1629_v12, %v1525_v61  ;;  %v1447_v21 = vld [vmem:[%s6299_s19 + $0x140] sm:$0xff] }
 0x1e4   : > { %4735 = vmatprep.subr.mxu1 %v3387_v56  ;;  %9263 = vst [vmem:[#allocation70_spill] sm:$0xff] %v7322_v10  ;;  %4623 = vmatpush3.msra.mxu0 %v3387_v56  ;;  %v1528_v27 = vmul.f32 %v7308_v62, %v1448_v35  ;;  %v1600_v49 = vmul.f32 %v7051_v32, %v7322_v10  ;;  %v7333_v17 = vld [vmem:[%s6260_s2 + $0x40] sm:$0xff]  ;;  %v7353_v58 = vld [vmem:[%s6260_s2 + $0x58] sm:$0xff]  ;;  %v7358_v35 = vsel %vm2374_vm9, 1.0, %v9251_v16 }
 0x1e5   : > { %4751 = vmatpush3.msra.mxu1 %v3387_v56  ;;  %v1632_v52 = vmul.f32 %v7047_v31, %v7322_v10  ;;  %9264 = vst [vmem:[#allocation71_spill] sm:$0xff] %v7333_v17  ;;  %3201 = vst [vmem:[%s6299_s19 + $0x30] sm:$0xff] %v1661_v20  ;;  %v1495_v56 = vmul.f32 %v7333_v17, %v1415_v55  ;;  %v1527_v57 = vmul.f32 %v7333_v17, %v1447_v21  ;;  %v7343_v11 = vld [vmem:[%s6269_s26 + $0x40] sm:$0xff]  ;;  %v1449_v44 = vld [vmem:[%s6299_s19 + $0x150] sm:$0xff] }
 0x1e6   : > { %3233 = vst [vmem:[%s6299_s19 + $0x130] sm:$0xff] %v1693_v34  ;;  %9265 = vst [vmem:[#allocation72_spill] sm:$0xff] %v7343_v11  ;;  %v1599_v25 = vmul.f32 %v7051_v32, %v7343_v11  ;;  %v1631_v48 = vmul.f32 %v7047_v31, %v7343_v11  ;;  %v1418_v26 = vld [vmem:[%s6299_s19 + $0x58] sm:$0xff]  ;;  %v7361_v20 = vmul.f32 %v7317_v60, %v1721_v59  ;;  %v7419_v11 = vld [vmem:[%s6263_s21 + $0x8] sm:$0xff] }
 0x1e7   : > { %4995 = vperm.xlu1 %4948, %v4994_v24   ;;  %4990 = vperm.xlu0 %4947, %v4989_v45   ;;  %v1719_v24 = vld [vmem:[%s6302_s15] sm:$0xff]  ;;  %v1664_v45 = vadd.f32 %v1600_v49, %v1496_v5  ;;  %v1696_v61 = vadd.f32 %v1632_v52, %v1528_v27  ;;  %v1450_v12 = vld [vmem:[%s6299_s19 + $0x158] sm:$0xff]  ;;  %9266 = vst [vmem:[#allocation73_spill] sm:$0xff] %v7353_v58  ;;  %v7573_v60 = vld [vmem:[%s6269_s26 + $0x70] sm:$0xff] }
 0x1e8   : > { %v7364_v34 = vld [vmem:[%s6263_s21] sm:$0xff]  ;;  %v1498_v27 = vmul.f32 %v7353_v58, %v1418_v26  ;;  %v1530_v49 = vmul.f32 %v7353_v58, %v1450_v12  ;;  %v7372_v52 = vld [vmem:[%s6269_s26 + $0x58] sm:$0xff]  ;;  %v1663_v55 = vadd.f32 %v1599_v25, %v1495_v56  ;;  %v1695_v21 = vadd.f32 %v1631_v48, %v1527_v57  ;;  %v7383_v12 = vld [vmem:[%s6260_s2 + $0x50] sm:$0xff]  ;;  %9286 = vst [vmem:[#allocation91_spill] sm:$0xff] %v7573_v60 }
 0x1e9   : > { %v7367_v5 = vld [vmem:[%s6294_s8 + $0x188] sm:$0xff]  ;;  %9267 = vst [vmem:[#allocation74_spill] sm:$0xff] %v7372_v52  ;;  %3204 = vst [vmem:[%s6299_s19 + $0x48] sm:$0xff] %v1664_v45  ;;  %v1602_v59 = vmul.f32 %v7051_v32, %v7372_v52  ;;  %v1634_v26 = vmul.f32 %v7047_v31, %v7372_v52  ;;  %v7388_v56 = vsel %vm2373_vm10, 1.0, %v9251_v16  ;;  %v7392_v57 = vld [vmem:[%s6294_s8 + $0x180] sm:$0xff]  ;;  %v1497_v45 = vmul.f32 %v7383_v12, %v1417_v41 }
 0x1ea   : > { %3236 = vst [vmem:[%s6299_s19 + $0x148] sm:$0xff] %v1696_v61  ;;  %9268 = vst [vmem:[#allocation75_spill] sm:$0xff] %v7383_v12  ;;  %v1529_v61 = vmul.f32 %v7383_v12, %v1449_v44  ;;  %v7401_v25 = vld [vmem:[%s6263_s21 + $0x18] sm:$0xff]  ;;  %v1452_v44 = vld [vmem:[%s6299_s19 + $0x168] sm:$0xff]  ;;  %vm2376_vm12 = vcmp.ne.f32.partialorder %v7367_v5, 0.0  ;;  %vm2375_vm13 = vcmp.ne.f32.partialorder %v7392_v57, 0.0 }
 0x1eb   : > { %5005 = vperm.xlu1 %4948, %v5004_v33   ;;  %5000 = vperm.xlu0 %4947, %v4999_v37   ;;  %v7397_v33 = vld [vmem:[%s6269_s26 + $0x50] sm:$0xff]  ;;  %v1722_v37 = vld [vmem:[%s6302_s15 + $0x18] sm:$0xff]  ;;  %9270 = vst [vmem:[#allocation77_spill] sm:$0xff] %v7401_v25  ;;  %3203 = vst [vmem:[%s6299_s19 + $0x40] sm:$0xff] %v1663_v55  ;;  %v1666_v48 = vadd.f32 %v1602_v59, %v1498_v27  ;;  %v1698_v58 = vadd.f32 %v1634_v26, %v1530_v49 }
 0x1ec   : > { %9269 = vst [vmem:[#allocation76_spill] sm:$0xff] %v7397_v33  ;;  %3235 = vst [vmem:[%s6299_s19 + $0x140] sm:$0xff] %v1695_v21  ;;  %v1601_v52 = vmul.f32 %v7051_v32, %v7397_v33  ;;  %v1633_v41 = vmul.f32 %v7047_v31, %v7397_v33  ;;  %v7412_v12 = vld [vmem:[%s6260_s2 + $0x68] sm:$0xff]  ;;  %v7415_v55 = vmul.f32 %v7364_v34, %v1719_v24  ;;  %v7583_v13 = vld [vmem:[%s6272_s3 + $0x18] sm:$0xff] }
 0x1ed   : > { %9271 = vst [vmem:[#allocation78_spill] sm:$0xff] %v7412_v12  ;;  %v1720_v21 = vld [vmem:[%s6302_s15 + $0x8] sm:$0xff]  ;;  %v1500_v27 = vmul.f32 %v7412_v12, %v1420_v30  ;;  %v1532_v49 = vmul.f32 %v7412_v12, %v1452_v44  ;;  %3206 = vst [vmem:[%s6299_s19 + $0x58] sm:$0xff] %v1666_v48  ;;  %v1419_v30 = vld [vmem:[%s6299_s19 + $0x60] sm:$0xff] }
 0x1ee   : > { %v7425_v59 = vld [vmem:[%s6269_s26 + $0x68] sm:$0xff]  ;;  %3238 = vst [vmem:[%s6299_s19 + $0x158] sm:$0xff] %v1698_v58  ;;  %v1665_v26 = vadd.f32 %v1601_v52, %v1497_v45  ;;  %v1697_v33 = vadd.f32 %v1633_v41, %v1529_v61  ;;  %v7436_v12 = vld [vmem:[%s6260_s2 + $0x60] sm:$0xff]  ;;  %v9274_v58 = vpack.i.bf16 %v7250_v22, %v6934_v63  ;;  %v9275_v52 = vpack.i.bf16 %v7296_v53, %v6939_v0  ;;  %v7463_v22 = vld [vmem:[%s6294_s8 + $0x198] sm:$0xff] }
 0x1ef   : > { %9272 = vst [vmem:[#allocation79_spill] sm:$0xff] %v7425_v59  ;;  %v1604_v24 = vmul.f32 %v7051_v32, %v7425_v59  ;;  %v1636_v17 = vmul.f32 %v7047_v31, %v7425_v59  ;;  %v1451_v44 = vld [vmem:[%s6299_s19 + $0x160] sm:$0xff]  ;;  %9273 = vst [vmem:[#allocation80_spill] sm:$0xff] %v7436_v12  ;;  %v4480_v45 = vsel %vm2519_vm11, 1.0, %v9251_v16  ;;  %v1724_v61 = vld [vmem:[%s6302_s15 + $0x28] sm:$0xff]  ;;  %v1499_v41 = vmul.f32 %v7436_v12, %v1419_v30 }
 0x1f0   : > { %5015 = vperm.xlu1 %4948, %v9274_v58   ;;  %5010 = vperm.xlu0 %4947, %v9275_v52   ;;  %v7450_v48 = vld [vmem:[%s6263_s21 + $0x28] sm:$0xff]  ;;  %v1531_v59 = vmul.f32 %v7436_v12, %v1451_v44  ;;  %v7455_v63 = vld [vmem:[%s6269_s26 + $0x60] sm:$0xff]  ;;  %3205 = vst [vmem:[%s6299_s19 + $0x50] sm:$0xff] %v1665_v26  ;;  %3237 = vst [vmem:[%s6299_s19 + $0x150] sm:$0xff] %v1697_v33  ;;  %v5024_v52 = vpack.i.bf16 %v7358_v35, %v6944_v1  ;;  %vm2378_vm15 = vcmp.ne.f32.partialorder %v7463_v22, 0.0 }
 0x1f1   : > { %9276 = vst [vmem:[#allocation81_spill] sm:$0xff] %v7450_v48  ;;  %9277 = vst [vmem:[#allocation82_spill] sm:$0xff] %v7455_v63  ;;  %v1723_v0 = vld [vmem:[%s6302_s15 + $0x20] sm:$0xff]  ;;  %v1668_v53 = vadd.f32 %v1604_v24, %v1500_v27  ;;  %v1700_v30 = vadd.f32 %v1636_v17, %v1532_v49  ;;  %v1603_v44 = vmul.f32 %v7051_v32, %v7455_v63  ;;  %v7481_v17 = vsel %vm2376_vm12, 1.0, %v9251_v16  ;;  %v1726_v27 = vld [vmem:[%s6302_s15 + $0x38] sm:$0xff] }
 0x1f2   : > { %v1635_v58 = vmul.f32 %v7047_v31, %v7455_v63  ;;  %v5019_v26 = vpack.i.bf16 %v7388_v56, %v6950_v2  ;;  %v7476_v33 = vmul.f32 %v7401_v25, %v1722_v37  ;;  %v7485_v49 = vld [vmem:[%s6294_s8 + $0x190] sm:$0xff]  ;;  %v7488_v24 = vld [vmem:[%s6272_s3 + $0x10] sm:$0xff]  ;;  %v7491_v63 = vld [vmem:[%s6272_s3] sm:$0xff]  ;;  %v7494_v1 = vmul.f32 %v7419_v11, %v1720_v21 }
 0x1f3   : > { %9279 = vst [vmem:[#allocation84_spill] sm:$0xff] %v7488_v24  ;;  %9280 = vst [vmem:[#allocation85_spill] sm:$0xff] %v7491_v63  ;;  %v7499_v2 = vsel %vm2375_vm13, 1.0, %v9251_v16  ;;  %v7502_v35 = vld [vmem:[%s6263_s21 + $0x38] sm:$0xff]  ;;  %v7506_v37 = vld [vmem:[%s6263_s21 + $0x30] sm:$0xff]  ;;  %v1667_v12 = vadd.f32 %v1603_v44, %v1499_v41  ;;  %v7513_v62 = vrot.slane %v4480_v45, %v7007_v15  ;;  %v7516_v10 = vmul.f32 %v7450_v48, %v1724_v61 }
 0x1f4   : > { %9281 = vst [vmem:[#allocation86_spill] sm:$0xff] %v7502_v35  ;;  %v1725_v56 = vld [vmem:[%s6302_s15 + $0x30] sm:$0xff]  ;;  %9282 = vst [vmem:[#allocation87_spill] sm:$0xff] %v7506_v37  ;;  %v1699_v21 = vadd.f32 %v1635_v58, %v1531_v59  ;;  %2116 = vperm.xlu1 %4948, %v7284_v9   ;;  %2111 = vperm.xlu0 %4947, %v7287_v14   ;;  %v1728_v41 = vld [vmem:[%s6302_s15 + $0x48] sm:$0xff]  ;;  %vm2377_vm0 = vcmp.ne.f32.partialorder %v7485_v49, 0.0  ;;  %v7545_v14 = vmul.f32 %v7502_v35, %v1726_v27 }
 0x1f5   : > { %3208 = vst [vmem:[%s6299_s19 + $0x68] sm:$0xff] %v1668_v53  ;;  %3240 = vst [vmem:[%s6299_s19 + $0x168] sm:$0xff] %v1700_v30  ;;  %v7519_v53 = vmul.f32 %v7460_v19, %v1723_v0  ;;  %v1422_v30 = vld [vmem:[%s6299_s19 + $0x78] sm:$0xff]  ;;  %v7532_v45 = vld [vmem:[%s6263_s21 + $0x48] sm:$0xff]  ;;  %v7557_v19 = vmul.f32 %v7506_v37, %v1725_v56  ;;  %v7562_v27 = vsel %vm2378_vm15, 1.0, %v9251_v16  ;;  %v7580_v37 = vsel %vm2377_vm0, 1.0, %v9251_v16 }
 0x1f6   : > { %v1454_v59 = vld [vmem:[%s6299_s19 + $0x178] sm:$0xff]  ;;  %v1727_v61 = vld [vmem:[%s6302_s15 + $0x40] sm:$0xff]  ;;  %3207 = vst [vmem:[%s6299_s19 + $0x60] sm:$0xff] %v1667_v12  ;;  %3239 = vst [vmem:[%s6299_s19 + $0x160] sm:$0xff] %v1699_v21 }
 0x1f7   : > { %v7526_v9 = vld [vmem:[%s6260_s2 + $0x78] sm:$0xff]  ;;  %v7565_v15 = vld [vmem:[%s6263_s21 + $0x40] sm:$0xff] }
 0x1f8   : > { %9283 = vst [vmem:[#allocation88_spill] sm:$0xff] %v7526_v9  ;;  %v1502_v0 = vmul.f32 %v7526_v9, %v1422_v30  ;;  %v1534_v44 = vmul.f32 %v7526_v9, %v1454_v59  ;;  %v7540_v58 = vld [vmem:[%s6269_s26 + $0x78] sm:$0xff]  ;;  %v7554_v30 = vld [vmem:[%s6260_s2 + $0x70] sm:$0xff]  ;;  %v1892_v59 = vpop.permute.xlu1 %1891  ;;  %v1882_v9 = vpop.permute.xlu0 %1881  ;;  %5025 = vperm.xlu1 %4948, %v5024_v52   ;;  %5020 = vperm.xlu0 %4947, %v5019_v26   ;;  %s9358_s2 = sld [smem:[#allocation112_spill]]  ;;  %s3911_s26 = sshll.u32 %s6299_s19, 4  ;;  %s8721_s26 = int_to_ptr.vmem [resolvable:$true] %s3911_s26 }
 0x1f9   : > { %9284 = vst [vmem:[#allocation89_spill] sm:$0xff] %v7540_v58  ;;  %v1606_v51 = vmul.f32 %v7051_v32, %v7540_v58  ;;  %v1638_v12 = vmul.f32 %v7047_v31, %v7540_v58  ;;  %v1421_v21 = vld [vmem:[%s6299_s19 + $0x70] sm:$0xff]  ;;  %9285 = vst [vmem:[#allocation90_spill] sm:$0xff] %v7554_v30  ;;  %v7568_v58 = vld [vmem:[%s6294_s8 + $0x1a8] sm:$0xff]  ;;  %v1533_v48 = vmul.f32 %v7554_v30, %v1453_v29  ;;  %s5511_s14 = scalar_lea.vmem %s8721_s26, 8192  ;;  %p5518_p2 = scmp.lt.s32.totalorder %s8721_s26, %s5516_s12 }
 0x1fa   : > { %v1501_v35 = vmul.f32 %v7554_v30, %v1421_v21  ;;  %v2201_v25 = vmul.f32 %v1892_v59, %v7488_v24  ;;  %v2199_v56 = vmul.f32 %v1882_v9, %v7491_v63  ;;  %v7586_v29 = vld [vmem:[%s6272_s3 + $0x8] sm:$0xff]  ;;  %v7589_v59 = vmul.f32 %v7532_v45, %v1728_v41  ;;  %v1730_v9 = vld [vmem:[%s6302_s15 + $0x58] sm:$0xff]  ;;  %v1729_v41 = vld [vmem:[%s6302_s15 + $0x50] sm:$0xff]  ;;  %p5512_p11 = scmp.ne.s32.totalorder %s8721_s26, %s5511_s14  ;;  %p5519_p12 = scmp.lt.s32.totalorder %s5517_s27, %s5511_s14 }
 0x1fb   : > { %v1670_v21 = vadd.f32 %v1606_v51, %v1502_v0  ;;  %v1702_v52 = vadd.f32 %v1638_v12, %v1534_v44  ;;  %v1605_v26 = vmul.f32 %v7051_v32, %v7573_v60  ;;  %v1637_v30 = vmul.f32 %v7047_v31, %v7573_v60  ;;  %v7602_v63 = vld [vmem:[%s6263_s21 + $0x58] sm:$0xff]  ;;  %v7606_v44 = vld [vmem:[%s6263_s21 + $0x50] sm:$0xff]  ;;  %v7611_v31 = vld [vmem:[%s6272_s3 + $0x28] sm:$0xff] }
 0x1fc   : > { %v2265_v51 = vadd.f32 %v2201_v25, %v7361_v20  ;;  %v2263_v0 = vadd.f32 %v2199_v56, %v7415_v55  ;;  %v7599_v24 = vmul.f32 %v7565_v15, %v1727_v61  ;;  %9287 = vst [vmem:[#allocation92_spill] sm:$0xff] %v7602_v63  ;;  %9288 = vst [vmem:[#allocation93_spill] sm:$0xff] %v7606_v44  ;;  %vm2380_vm1 = vcmp.ne.f32.partialorder %v7568_v58, 0.0  ;;  %v1897_v32 = vpop.permute.xlu1 %1896  ;;  %v1887_v12 = vpop.permute.xlu0 %1886  ;;  %v7614_v20 = vld [vmem:[%s6272_s3 + $0x20] sm:$0xff]  ;;  %p5513_p0 = pnand %p5512_p11, %p9359_p3  ;;  %p5520_p6 = por %p5519_p12, %p5518_p2 }
 0x1fd   : > { %3210 = vst [vmem:[%s6299_s19 + $0x78] sm:$0xff] %v1670_v21  ;;  %3242 = vst [vmem:[%s6299_s19 + $0x178] sm:$0xff] %v1702_v52  ;;  %v1669_v61 = vadd.f32 %v1605_v26, %v1501_v35  ;;  %v1701_v56 = vadd.f32 %v1637_v30, %v1533_v48  ;;  %v7624_v21 = vsel %vm2353_vm14, 1.0, %v9251_v16  ;;  %v2202_v55 = vmul.f32 %v1897_v32, %v7583_v13  ;;  %v1424_v48 = vld [vmem:[%s6299_s19 + $0x88] sm:$0xff]  ;;  %v1423_v32 = vld [vmem:[%s6299_s19 + $0x80] sm:$0xff] }
 0x1fe   : > { %9289 = vst [vmem:[#allocation94_spill] sm:$0xff] %v7624_v21  ;;  %v7627_v60 = vmul.f32 %v7513_v62, %v2265_v51  ;;  %3261 = vst [vmem:[%s6302_s15 + $0x10] sm:$0xff] %v2265_v51  ;;  %v2200_v35 = vmul.f32 %v1887_v12, %v7586_v29  ;;  %2126 = vperm.xlu1 %4948, %v7367_v5   ;;  %2121 = vperm.xlu0 %4947, %v7392_v57   ;;  %v1456_v30 = vld [vmem:[%s6299_s19 + $0x188] sm:$0xff]  ;;  %v7649_v51 = vsel %vm2380_vm1, 1.0, %v9251_v16  ;;  %v7652_v5 = vld [vmem:[%s6225_s24 + $0x1] ss:$0 sm:$0xff]  ;;  %p5514_p9 = pneg %p5513_p0 }
 0x1ff   : > { %3259 = vst [vmem:[%s6302_s15] sm:$0xff] %v2263_v0  ;;  %v7641_v52 = vmul.f32 %v7602_v63, %v1730_v9  ;;  %v7644_v26 = vmul.f32 %v7606_v44, %v1729_v41  ;;  %v7655_v57 = vmul.f32 %v7513_v62, %v2263_v0  ;;  %3209 = vst [vmem:[%s6299_s19 + $0x70] sm:$0xff] %v1669_v61  ;;  %v1455_v9 = vld [vmem:[%s6299_s19 + $0x180] sm:$0xff]  ;;  %v7665_v63 = vld [vmem:[%s6294_s8 + $0x1a0] sm:$0xff] }
 0x200   : > { %9290 = vst [vmem:[#allocation95_spill] sm:$0xff] %v7627_v60  ;;  %3241 = vst [vmem:[%s6299_s19 + $0x170] sm:$0xff] %v1701_v56  ;;  %v2266_v12 = vadd.f32 %v2202_v55, %v7476_v33  ;;  %v2264_v41 = vadd.f32 %v2200_v35, %v7494_v1  ;;  %v1504_v25 = vmul.f32 %v7065_v38, %v1424_v48  ;;  %v1907_v60 = vpop.permute.xlu1 %1906  ;;  %v1902_v44 = vpop.permute.xlu0 %1901  ;;  %v1732_v0 = vld [vmem:[%s6302_s15 + $0x68] sm:$0xff]  ;;  %v7691_v48 = vld [vmem:[%s6272_s3 + $0x38] sm:$0xff]  ;;  %vm2379_vm2 = vcmp.ne.f32.partialorder %v7665_v63, 0.0  ;;  %p5521_p5 = pnand %p5520_p6, %p5514_p9 }
 0x201   : > { %9291 = vst [vmem:[#allocation96_spill] sm:$0xff] %v7655_v57  ;;  %v7669_v57 = vld [vmem:[%s6263_s21 + $0x68] sm:$0xff]  ;;  %v1536_v61 = vmul.f32 %v7065_v38, %v1456_v30  ;;  %v1503_v56 = vmul.f32 %v7100_v36, %v1423_v32  ;;  %v1535_v21 = vmul.f32 %v7100_v36, %v1455_v9  ;;  %v2204_v55 = vmul.f32 %v1907_v60, %v7611_v31  ;;  %v7694_v30 = vld [vmem:[%s6272_s3 + $0x30] sm:$0xff] }
 0x202   : > { %v7675_v33 = vmul.f32 %v7513_v62, %v2266_v12  ;;  %3262 = vst [vmem:[%s6302_s15 + $0x18] sm:$0xff] %v2266_v12  ;;  %v7679_v1 = vmul.f32 %v7513_v62, %v2264_v41  ;;  %3260 = vst [vmem:[%s6302_s15 + $0x8] sm:$0xff] %v2264_v41  ;;  %v2203_v35 = vmul.f32 %v1902_v44, %v7614_v20  ;;  %v1731_v9 = vld [vmem:[%s6302_s15 + $0x60] sm:$0xff] }
 0x203   : > { %v9292_v38 = vpack.i.bf16 %v7481_v17, %v6955_v3  ;;  %v9293_v36 = vpack.i.bf16 %v7499_v2, %v6962_v6  ;;  %v1608_v32 = vmul.f32 %v7652_v5, %v7074_v43  ;;  %v1640_v60 = vmul.f32 %v7636_v28, %v7074_v43  ;;  %v7712_v43 = vld [vmem:[%s6263_s21 + $0x60] sm:$0xff] }
 0x204   : > { %v1607_v44 = vmul.f32 %v7652_v5, %v7103_v23  ;;  %v1639_v3 = vmul.f32 %v7636_v28, %v7103_v23  ;;  %v2268_v6 = vadd.f32 %v2204_v55, %v7516_v10  ;;  %v2267_v17 = vadd.f32 %v2203_v35, %v7519_v53  ;;  %v1917_v12 = vpop.permute.xlu1 %1916  ;;  %v1912_v41 = vpop.permute.xlu0 %1911 }
 0x205   : > { %5035 = vperm.xlu1 %4948, %v9292_v38   ;;  %5030 = vperm.xlu0 %4947, %v9293_v36   ;;  %v7708_v2 = vmul.f32 %v7669_v57, %v1732_v0  ;;  %v1672_v38 = vadd.f32 %v1608_v32, %v1504_v25  ;;  %v1704_v23 = vadd.f32 %v1640_v60, %v1536_v61  ;;  %v7726_v61 = vld [vmem:[%s6272_s3 + $0x48] sm:$0xff] }
 0x206   : > { %v1671_v36 = vadd.f32 %v1607_v44, %v1503_v56  ;;  %v1703_v10 = vadd.f32 %v1639_v3, %v1535_v21  ;;  %v7715_v53 = vmul.f32 %v7513_v62, %v2268_v6  ;;  %3264 = vst [vmem:[%s6302_s15 + $0x28] sm:$0xff] %v2268_v6  ;;  %v7719_v0 = vmul.f32 %v7513_v62, %v2267_v17  ;;  %v7730_v21 = vld [vmem:[%s6272_s3 + $0x40] sm:$0xff] }
 0x207   : > { %3263 = vst [vmem:[%s6302_s15 + $0x20] sm:$0xff] %v2267_v17  ;;  %v2206_v55 = vmul.f32 %v1917_v12, %v7691_v48  ;;  %v2205_v25 = vmul.f32 %v1912_v41, %v7694_v30  ;;  %v7735_v56 = vsel %vm2379_vm2, 1.0, %v9251_v16  ;;  %v7738_v35 = vmul.f32 %v7712_v43, %v1731_v9  ;;  %3212 = vst [vmem:[%s6299_s19 + $0x88] sm:$0xff] %v1672_v38  ;;  %v1425_v9 = vld [vmem:[%s6299_s19 + $0x90] sm:$0xff] }
 0x208   : > { %9294 = vst [vmem:[#allocation97_spill] sm:$0xff] %v7715_v53  ;;  %9295 = vst [vmem:[#allocation98_spill] sm:$0xff] %v7719_v0  ;;  %v1610_v32 = vmul.f32 %v7652_v5, %v7127_v50  ;;  %v1642_v60 = vmul.f32 %v7636_v28, %v7127_v50  ;;  %v1457_v12 = vld [vmem:[%s6299_s19 + $0x190] sm:$0xff]  ;;  %v1927_v41 = vpop.permute.xlu1 %1926  ;;  %v1922_v38 = vpop.permute.xlu0 %1921  ;;  %v7761_v50 = vld [vmem:[%s6294_s8 + $0x1b0] sm:$0xff] }
 0x209   : > { %2136 = vperm.xlu1 %4948, %v7463_v22   ;;  %2131 = vperm.xlu0 %4947, %v7485_v49   ;;  %3244 = vst [vmem:[%s6299_s19 + $0x188] sm:$0xff] %v1704_v23  ;;  %3211 = vst [vmem:[%s6299_s19 + $0x80] sm:$0xff] %v1671_v36  ;;  %v1426_v22 = vld [vmem:[%s6299_s19 + $0x98] sm:$0xff]  ;;  %v2270_v44 = vadd.f32 %v2206_v55, %v7545_v14  ;;  %v2269_v3 = vadd.f32 %v2205_v25, %v7557_v19  ;;  %v7758_v36 = vld [vmem:[%s6294_s8 + $0x1b8] sm:$0xff]  ;;  %vm2381_vm4 = vcmp.ne.f32.partialorder %v7761_v50, 0.0 }
 0x20a   : > { %3243 = vst [vmem:[%s6299_s19 + $0x180] sm:$0xff] %v1703_v10  ;;  %v1458_v49 = vld [vmem:[%s6299_s19 + $0x198] sm:$0xff]  ;;  %v1506_v6 = vmul.f32 %v7114_v39, %v1426_v22  ;;  %v9296_v14 = vld [vmem:[#allocation62_spill] sm:$0xff]  ;;  %v9297_v55 = vld [vmem:[#allocation63_spill] sm:$0xff]  ;;  %v2208_v0 = vmul.f32 %v1927_v41, %v7726_v61  ;;  %vm2382_vm3 = vcmp.ne.f32.partialorder %v7758_v36, 0.0 }
 0x20b   : > { %v1538_v17 = vmul.f32 %v7114_v39, %v1458_v49  ;;  %v1734_v23 = vld [vmem:[%s6302_s15 + $0x78] sm:$0xff]  ;;  %v1505_v19 = vmul.f32 %v9296_v14, %v1425_v9  ;;  %v1537_v10 = vmul.f32 %v9296_v14, %v1457_v12  ;;  %v1609_v39 = vmul.f32 %v7652_v5, %v9297_v55  ;;  %3266 = vst [vmem:[%s6302_s15 + $0x38] sm:$0xff] %v2270_v44  ;;  %v1733_v53 = vld [vmem:[%s6302_s15 + $0x70] sm:$0xff] }
 0x20c   : > { %v1641_v25 = vmul.f32 %v7636_v28, %v9297_v55  ;;  %v7770_v22 = vmul.f32 %v7513_v62, %v2270_v44  ;;  %v7774_v49 = vmul.f32 %v7513_v62, %v2269_v3  ;;  %3265 = vst [vmem:[%s6302_s15 + $0x30] sm:$0xff] %v2269_v3  ;;  %v2207_v9 = vmul.f32 %v1922_v38, %v7730_v21  ;;  %v7783_v14 = vld [vmem:[%s6263_s21 + $0x78] sm:$0xff]  ;;  %v7787_v55 = vld [vmem:[%s6263_s21 + $0x70] sm:$0xff] }
 0x20d   : > { %v9300_v12 = vpack.i.bf16 %v7562_v27, %v6967_v7  ;;  %v9301_v44 = vpack.i.bf16 %v7580_v37, %v6976_v8  ;;  %v7796_v3 = vld [vmem:[%s6272_s3 + $0x50] sm:$0xff]  ;;  %v1674_v41 = vadd.f32 %v1610_v32, %v1506_v6  ;;  %v1706_v38 = vadd.f32 %v1642_v60, %v1538_v17  ;;  %v1937_v8 = vpop.permute.xlu1 %1936  ;;  %v1932_v37 = vpop.permute.xlu0 %1931 }
 0x20e   : > { %9298 = vst [vmem:[#allocation62_spill] sm:$0xff] %v7770_v22  ;;  %9299 = vst [vmem:[#allocation63_spill] sm:$0xff] %v7774_v49  ;;  %v7793_v22 = vld [vmem:[%s6272_s3 + $0x58] sm:$0xff]  ;;  %v1673_v7 = vadd.f32 %v1609_v39, %v1505_v19  ;;  %v1705_v27 = vadd.f32 %v1641_v25, %v1537_v10  ;;  %v2271_v49 = vadd.f32 %v2207_v9, %v7599_v24  ;;  %v7837_v19 = vsel %vm2382_vm3, 1.0, %v9251_v16  ;;  %v1428_v39 = vld [vmem:[%s6299_s19 + $0xa8] sm:$0xff] }
 0x20f   : > { %5045 = vperm.xlu1 %4948, %v9300_v12   ;;  %5040 = vperm.xlu0 %4947, %v9301_v44   ;;  %v2272_v12 = vadd.f32 %v2208_v0, %v7589_v59  ;;  %v9302_v44 = vld [vmem:[#allocation57_spill] sm:$0xff]  ;;  %v9303_v60 = vld [vmem:[#allocation59_spill] sm:$0xff]  ;;  %v7807_v17 = vmul.f32 %v7783_v14, %v1734_v23  ;;  %v7810_v24 = vmul.f32 %v7787_v55, %v1733_v53  ;;  %v7842_v10 = vsel %vm2381_vm4, 1.0, %v9251_v16 }
 0x210   : > { %v5054_v32 = vpack.i.bf16 %v7649_v51, %v9302_v44  ;;  %v5049_v6 = vpack.i.bf16 %v7735_v56, %v9303_v60  ;;  %3214 = vst [vmem:[%s6299_s19 + $0x98] sm:$0xff] %v1674_v41  ;;  %3246 = vst [vmem:[%s6299_s19 + $0x198] sm:$0xff] %v1706_v38  ;;  %v7821_v51 = vmul.f32 %v7513_v62, %v2271_v49  ;;  %v7828_v56 = vld [vmem:[%s6272_s3 + $0x68] sm:$0xff]  ;;  %v7832_v23 = vld [vmem:[%s6272_s3 + $0x60] sm:$0xff] }
 0x211   : > { %3213 = vst [vmem:[%s6299_s19 + $0x90] sm:$0xff] %v1673_v7  ;;  %3245 = vst [vmem:[%s6299_s19 + $0x190] sm:$0xff] %v1705_v27  ;;  %v7817_v59 = vmul.f32 %v7513_v62, %v2272_v12  ;;  %v2210_v0 = vmul.f32 %v1937_v8, %v7793_v22  ;;  %v2209_v53 = vmul.f32 %v1932_v37, %v7796_v3  ;;  %v1427_v7 = vld [vmem:[%s6299_s19 + $0xa0] sm:$0xff]  ;;  %v1942_v8 = vpop.permute.xlu0 %1941  ;;  %v7860_v44 = vld [vmem:[%s6294_s8 + $0x1c0] sm:$0xff] }
 0x212   : > { %3268 = vst [vmem:[%s6302_s15 + $0x48] sm:$0xff] %v2272_v12  ;;  %9304 = vst [vmem:[#allocation57_spill] sm:$0xff] %v7821_v51  ;;  %v1612_v25 = vmul.f32 %v7652_v5, %v7172_v40  ;;  %v1508_v41 = vmul.f32 %v7156_v46, %v1428_v39  ;;  %v1459_v27 = vld [vmem:[%s6299_s19 + $0x1a0] sm:$0xff]  ;;  %v1947_v12 = vpop.permute.xlu1 %1946  ;;  %v2211_v39 = vmul.f32 %v1942_v8, %v7832_v23  ;;  %vm2383_vm7 = vcmp.ne.f32.partialorder %v7860_v44, 0.0 }
 0x213   : > { %3267 = vst [vmem:[%s6302_s15 + $0x40] sm:$0xff] %v2271_v49  ;;  %2146 = vperm.xlu1 %4948, %v7568_v58   ;;  %2141 = vperm.xlu0 %4947, %v7665_v63   ;;  %v1460_v58 = vld [vmem:[%s6299_s19 + $0x1a8] sm:$0xff]  ;;  %v1644_v63 = vmul.f32 %v7636_v28, %v7172_v40  ;;  %v2274_v49 = vadd.f32 %v2210_v0, %v7641_v52  ;;  %v7857_v37 = vld [vmem:[%s6294_s8 + $0x1c8] sm:$0xff] }
 0x214   : > { %v2273_v9 = vadd.f32 %v2209_v53, %v7644_v26  ;;  %v1540_v38 = vmul.f32 %v7156_v46, %v1460_v58  ;;  %v1507_v40 = vmul.f32 %v7197_v18, %v1427_v7  ;;  %v1539_v52 = vmul.f32 %v7197_v18, %v1459_v27  ;;  %v7869_v60 = vld [vmem:[%s6294_s8 + $0xe8] sm:$0xff]  ;;  %v1736_v58 = vld [vmem:[%s6302_s15 + $0x88] sm:$0xff] }
 0x215   : > { %v1611_v46 = vmul.f32 %v7652_v5, %v7208_v42  ;;  %v1643_v26 = vmul.f32 %v7636_v28, %v7208_v42  ;;  %vm2356_vm5 = vcmp.ne.f32.partialorder %v7869_v60, 0.0  ;;  %v7873_v0 = vmul.f32 %v7513_v62, %v2274_v49  ;;  %3270 = vst [vmem:[%s6302_s15 + $0x58] sm:$0xff] %v2274_v49  ;;  %v1735_v7 = vld [vmem:[%s6302_s15 + $0x80] sm:$0xff]  ;;  %v7885_v42 = vld [vmem:[%s6272_s3 + $0x78] sm:$0xff]  ;;  %v7888_v27 = vld [vmem:[%s6272_s3 + $0x70] sm:$0xff]  ;;  %v1952_v8 = vpop.permute.xlu0 %1951 }
 0x216   : > { %v7877_v53 = vmul.f32 %v7513_v62, %v2273_v9  ;;  %3269 = vst [vmem:[%s6302_s15 + $0x50] sm:$0xff] %v2273_v9  ;;  %v2212_v18 = vmul.f32 %v1947_v12, %v7828_v56  ;;  %v1708_v49 = vadd.f32 %v1644_v63, %v1540_v38  ;;  %vm2384_vm6 = vcmp.ne.f32.partialorder %v7857_v37, 0.0  ;;  %v9307_v63 = vld [vmem:[#allocation60_spill] sm:$0xff]  ;;  %v9308_v38 = vld [vmem:[#allocation61_spill] sm:$0xff] }
 0x217   : > { %9305 = vst [vmem:[#allocation59_spill] sm:$0xff] %v7873_v0  ;;  %5055 = vperm.xlu1 %4948, %v5054_v32   ;;  %5050 = vperm.xlu0 %4947, %v5049_v6   ;;  %v1676_v0 = vadd.f32 %v1612_v25, %v1508_v41  ;;  %v1707_v9 = vadd.f32 %v1643_v26, %v1539_v52  ;;  %v1957_v6 = vpop.permute.xlu1 %1956  ;;  %v1430_v52 = vld [vmem:[%s6299_s19 + $0xb8] sm:$0xff] }
 0x218   : > { %9306 = vst [vmem:[#allocation99_spill] sm:$0xff] %v7877_v53  ;;  %v1675_v53 = vadd.f32 %v1611_v46, %v1507_v40  ;;  %v2276_v12 = vadd.f32 %v2212_v18, %v7708_v2  ;;  %v2275_v32 = vadd.f32 %v2211_v39, %v7738_v35  ;;  %v1816_v51 = vmul.f32 %v7419_v11, %v1736_v58  ;;  %v1462_v46 = vld [vmem:[%s6299_s19 + $0x1b8] sm:$0xff]  ;;  %v1429_v39 = vld [vmem:[%s6299_s19 + $0xb0] sm:$0xff] }
 0x219   : > { %v1815_v25 = vmul.f32 %v7364_v34, %v1735_v7  ;;  %v5064_v41 = vpack.i.bf16 %v7837_v19, %v9307_v63  ;;  %v5059_v2 = vpack.i.bf16 %v7842_v10, %v9308_v38  ;;  %3216 = vst [vmem:[%s6299_s19 + $0xa8] sm:$0xff] %v1676_v0  ;;  %3248 = vst [vmem:[%s6299_s19 + $0x1a8] sm:$0xff] %v1708_v49  ;;  %v7919_v10 = vsel %vm2384_vm6, 1.0, %v9251_v16  ;;  %v1461_v58 = vld [vmem:[%s6299_s19 + $0x1b0] sm:$0xff]  ;;  %v1962_v49 = vpop.permute.xlu0 %1961  ;;  %v9312_v38 = vld [vmem:[#allocation85_spill] sm:$0xff] }
 0x21a   : > { %3215 = vst [vmem:[%s6299_s19 + $0xa0] sm:$0xff] %v1675_v53  ;;  %3247 = vst [vmem:[%s6299_s19 + $0x1a0] sm:$0xff] %v1707_v9  ;;  %v7905_v35 = vmul.f32 %v7513_v62, %v2276_v12  ;;  %v7909_v11 = vmul.f32 %v7513_v62, %v2275_v32  ;;  %v2214_v34 = vmul.f32 %v1957_v6, %v7885_v42  ;;  %v7924_v40 = vsel %vm2383_vm7, 1.0, %v9251_v16  ;;  %v1738_v9 = vld [vmem:[%s6302_s15 + $0x98] sm:$0xff] }
 0x21b   : > { %3272 = vst [vmem:[%s6302_s15 + $0x68] sm:$0xff] %v2276_v12  ;;  %3271 = vst [vmem:[%s6302_s15 + $0x60] sm:$0xff] %v2275_v32  ;;  %v2213_v19 = vmul.f32 %v1952_v8, %v7888_v27  ;;  %2156 = vperm.xlu1 %4948, %v7758_v36   ;;  %2151 = vperm.xlu0 %4947, %v7761_v50   ;;  %v1614_v26 = vmul.f32 %v7652_v5, %v7240_v47  ;;  %v1967_v7 = vpop.permute.xlu1 %1966  ;;  %v1737_v12 = vld [vmem:[%s6302_s15 + $0x90] sm:$0xff] }
 0x21c   : > { %v1646_v36 = vmul.f32 %v7636_v28, %v7240_v47  ;;  %v2278_v50 = vadd.f32 %v2214_v34, %v7807_v17  ;;  %v1510_v53 = vmul.f32 %v7220_v54, %v1430_v52  ;;  %v1542_v18 = vmul.f32 %v7220_v54, %v1462_v46  ;;  %v9309_v17 = vld [vmem:[#allocation64_spill] sm:$0xff]  ;;  %v1740_v34 = vld [vmem:[%s6302_s15 + $0xa8] sm:$0xff] }
 0x21d   : > { %v2277_v0 = vadd.f32 %v2213_v19, %v7810_v24  ;;  %v1509_v47 = vmul.f32 %v7260_v4, %v1429_v39  ;;  %v1541_v32 = vmul.f32 %v7260_v4, %v1461_v58  ;;  %v1613_v24 = vmul.f32 %v7652_v5, %v9309_v17  ;;  %v1739_v19 = vld [vmem:[%s6302_s15 + $0xa0] sm:$0xff] }
 0x21e   : > { %v1645_v6 = vmul.f32 %v7636_v28, %v9309_v17  ;;  %v7947_v54 = vmul.f32 %v7513_v62, %v2278_v50  ;;  %3274 = vst [vmem:[%s6302_s15 + $0x78] sm:$0xff] %v2278_v50  ;;  %v2216_v63 = vmul.f32 %v1967_v7, %v7586_v29  ;;  %v2215_v4 = vmul.f32 %v1962_v49, %v9312_v38  ;;  %v9313_v58 = vld [vmem:[#allocation77_spill] sm:$0xff] }
 0x21f   : > { %v7951_v8 = vmul.f32 %v7513_v62, %v2277_v0  ;;  %3273 = vst [vmem:[%s6302_s15 + $0x70] sm:$0xff] %v2277_v0  ;;  %5065 = vperm.xlu1 %4948, %v5064_v41   ;;  %5060 = vperm.xlu0 %4947, %v5059_v2   ;;  %v1678_v52 = vadd.f32 %v1614_v26, %v1510_v53  ;;  %v9314_v17 = vld [vmem:[#allocation69_spill] sm:$0xff]  ;;  %v7961_v41 = vld [vmem:[%s6294_s8 + $0x1d8] sm:$0xff]  ;;  %v7969_v2 = vsel %vm2356_vm5, 1.0, %v9251_v16  ;;  %v5110_v26 = vld [vmem:[%s6294_s8 + $0xe0] sm:$0xff] }
 0x220   : > { %9310 = vst [vmem:[#allocation60_spill] sm:$0xff] %v7947_v54  ;;  %v1710_v46 = vadd.f32 %v1646_v36, %v1542_v18  ;;  %v1677_v39 = vadd.f32 %v1613_v24, %v1509_v47  ;;  %v1709_v50 = vadd.f32 %v1645_v6, %v1541_v32  ;;  %v2280_v62 = vadd.f32 %v2216_v63, %v1816_v51  ;;  %v7964_v38 = vld [vmem:[%s6294_s8 + $0x1d0] sm:$0xff]  ;;  %v1977_v51 = vpop.permute.xlu1 %1976  ;;  %v1972_v36 = vpop.permute.xlu0 %1971  ;;  %v9316_v18 = vld [vmem:[#allocation83_spill] sm:$0xff] }
 0x221   : > { %9311 = vst [vmem:[#allocation61_spill] sm:$0xff] %v7951_v8  ;;  %v2279_v0 = vadd.f32 %v2215_v4, %v1815_v25  ;;  %v1818_v7 = vmul.f32 %v9313_v58, %v1738_v9  ;;  %v1817_v49 = vmul.f32 %v9314_v17, %v1737_v12  ;;  %vm2355_vm8 = vcmp.ne.f32.partialorder %v5110_v26, 0.0  ;;  %v9315_v25 = vld [vmem:[#allocation81_spill] sm:$0xff]  ;;  %3218 = vst [vmem:[%s6299_s19 + $0xb8] sm:$0xff] %v1678_v52  ;;  %v9317_v12 = vld [vmem:[#allocation84_spill] sm:$0xff] }
 0x222   : > { %v1820_v53 = vmul.f32 %v9315_v25, %v1740_v34  ;;  %v1819_v9 = vmul.f32 %v9316_v18, %v1739_v19  ;;  %3250 = vst [vmem:[%s6299_s19 + $0x1b8] sm:$0xff] %v1710_v46  ;;  %3217 = vst [vmem:[%s6299_s19 + $0xb0] sm:$0xff] %v1677_v39  ;;  %v2218_v60 = vmul.f32 %v1977_v51, %v7583_v13  ;;  %v9318_v32 = vld [vmem:[#allocation65_spill] sm:$0xff]  ;;  %v9319_v6 = vld [vmem:[#allocation66_spill] sm:$0xff]  ;;  %vm2386_vm9 = vcmp.ne.f32.partialorder %v7961_v41, 0.0 }
 0x223   : > { %3249 = vst [vmem:[%s6299_s19 + $0x1b0] sm:$0xff] %v1709_v50  ;;  %3276 = vst [vmem:[%s6302_s15 + $0x88] sm:$0xff] %v2280_v62  ;;  %v2217_v47 = vmul.f32 %v1972_v36, %v9317_v12  ;;  %2166 = vperm.xlu1 %4948, %v7857_v37   ;;  %v5074_v24 = vpack.i.bf16 %v7919_v10, %v9318_v32  ;;  %v5069_v63 = vpack.i.bf16 %v7924_v40, %v9319_v6  ;;  %v1432_v4 = vld [vmem:[%s6299_s19 + $0xc8] sm:$0xff]  ;;  %v9321_v46 = vld [vmem:[#allocation67_spill] sm:$0xff] }
 0x224   : > { %3275 = vst [vmem:[%s6302_s15 + $0x80] sm:$0xff] %v2279_v0  ;;  %2161 = vperm.xlu0 %4947, %v7860_v44   ;;  %vm2385_vm10 = vcmp.ne.f32.partialorder %v7964_v38, 0.0  ;;  %v1464_v34 = vld [vmem:[%s6299_s19 + $0x1c8] sm:$0xff]  ;;  %v2282_v10 = vadd.f32 %v2218_v60, %v1818_v7  ;;  %v1512_v44 = vmul.f32 %v9321_v46, %v1432_v4  ;;  %v1431_v50 = vld [vmem:[%s6299_s19 + $0xc0] sm:$0xff]  ;;  %v1987_v0 = vpop.permute.xlu1 %1986  ;;  %v1982_v58 = vpop.permute.xlu0 %1981  ;;  %v1742_v17 = vld [vmem:[%s6302_s15 + $0xb8] sm:$0xff]  ;;  %v4475_v6 = vsel %vm2386_vm9, 1.0, %v9251_v16 }
 0x225   : > { %v9320_v19 = vld [vmem:[#allocation70_spill] sm:$0xff]  ;;  %v2281_v40 = vadd.f32 %v2217_v47, %v1817_v49  ;;  %v1544_v39 = vmul.f32 %v9321_v46, %v1464_v34  ;;  %v1463_v62 = vld [vmem:[%s6299_s19 + $0x1c0] sm:$0xff]  ;;  %v1741_v51 = vld [vmem:[%s6302_s15 + $0xb0] sm:$0xff]  ;;  %v2220_v47 = vmul.f32 %v1987_v0, %v7611_v31  ;;  %v2219_v32 = vmul.f32 %v1982_v58, %v7614_v20 }
 0x226   : > { %v1616_v52 = vmul.f32 %v7652_v5, %v9320_v19  ;;  %v1648_v37 = vmul.f32 %v7636_v28, %v9320_v19  ;;  %v9322_v36 = vld [vmem:[#allocation71_spill] sm:$0xff]  ;;  %v9323_v7 = vld [vmem:[#allocation72_spill] sm:$0xff]  ;;  %3278 = vst [vmem:[%s6302_s15 + $0x98] sm:$0xff] %v2282_v10  ;;  %v4474_v4 = vsel %vm2385_vm10, 1.0, %v9251_v16  ;;  %v1744_v34 = vld [vmem:[%s6302_s15 + $0xc8] sm:$0xff] }
 0x227   : > { %v1511_v25 = vmul.f32 %v9322_v36, %v1431_v50  ;;  %v1543_v18 = vmul.f32 %v9322_v36, %v1463_v62  ;;  %v1615_v49 = vmul.f32 %v7652_v5, %v9323_v7  ;;  %v1647_v60 = vmul.f32 %v7636_v28, %v9323_v7  ;;  %v8009_v12 = vld [vmem:[%s6294_s8 + $0xf8] sm:$0xff]  ;;  %3277 = vst [vmem:[%s6302_s15 + $0x90] sm:$0xff] %v2281_v40  ;;  %v1743_v19 = vld [vmem:[%s6302_s15 + $0xc0] sm:$0xff]  ;;  %v8030_v54 = vld [vmem:[%s6294_s8 + $0x1e0] sm:$0xff] }
 0x228   : > { %vm2358_vm11 = vcmp.ne.f32.partialorder %v8009_v12, 0.0  ;;  %5075 = vperm.xlu1 %4948, %v5074_v24   ;;  %5070 = vperm.xlu0 %4947, %v5069_v63   ;;  %v1680_v10 = vadd.f32 %v1616_v52, %v1512_v44  ;;  %v1712_v40 = vadd.f32 %v1648_v37, %v1544_v39  ;;  %v2284_v24 = vadd.f32 %v2220_v47, %v1820_v53  ;;  %v9324_v0 = vld [vmem:[#allocation86_spill] sm:$0xff]  ;;  %v9325_v36 = vld [vmem:[#allocation87_spill] sm:$0xff]  ;;  %v8027_v8 = vld [vmem:[%s6294_s8 + $0x1e8] sm:$0xff]  ;;  %v1997_v37 = vpop.permute.xlu1 %1996  ;;  %v1992_v53 = vpop.permute.xlu0 %1991 }
 0x229   : > { %v1679_v46 = vadd.f32 %v1615_v49, %v1511_v25  ;;  %v1711_v50 = vadd.f32 %v1647_v60, %v1543_v18  ;;  %v2283_v62 = vadd.f32 %v2219_v32, %v1819_v9  ;;  %v1822_v58 = vmul.f32 %v9324_v0, %v1742_v17  ;;  %v5112_v52 = vld [vmem:[%s6294_s8 + $0xf0] sm:$0xff]  ;;  %v9326_v17 = vld [vmem:[#allocation68_spill] sm:$0xff] }
 0x22a   : > { %v1821_v7 = vmul.f32 %v9325_v36, %v1741_v51  ;;  %v8034_v63 = vsel %vm2355_vm8, 1.0, %v9251_v16  ;;  %vm2357_vm12 = vcmp.ne.f32.partialorder %v5112_v52, 0.0  ;;  %v1824_v9 = vmul.f32 %v7532_v45, %v1744_v34  ;;  %3220 = vst [vmem:[%s6299_s19 + $0xc8] sm:$0xff] %v1680_v10  ;;  %3252 = vst [vmem:[%s6299_s19 + $0x1c8] sm:$0xff] %v1712_v40  ;;  %v9327_v51 = vld [vmem:[#allocation94_spill] sm:$0xff]  ;;  %v1466_v18 = vld [vmem:[%s6299_s19 + $0x1d8] sm:$0xff] }
 0x22b   : > { %v1823_v44 = vmul.f32 %v7565_v15, %v1743_v19  ;;  %3219 = vst [vmem:[%s6299_s19 + $0xc0] sm:$0xff] %v1679_v46  ;;  %3251 = vst [vmem:[%s6299_s19 + $0x1c0] sm:$0xff] %v1711_v50  ;;  %v2222_v26 = vmul.f32 %v1997_v37, %v7691_v48  ;;  %v2221_v39 = vmul.f32 %v1992_v53, %v7694_v30  ;;  %vm2388_vm13 = vcmp.ne.f32.partialorder %v8027_v8, 0.0  ;;  %v1434_v15 = vld [vmem:[%s6299_s19 + $0xd8] sm:$0xff]  ;;  %v9328_v49 = vld [vmem:[#allocation74_spill] sm:$0xff] }
 0x22c   : > { %3280 = vst [vmem:[%s6302_s15 + $0xa8] sm:$0xff] %v2284_v24  ;;  %3279 = vst [vmem:[%s6302_s15 + $0xa0] sm:$0xff] %v2283_v62  ;;  %2176 = vperm.xlu1 %4948, %v7961_v41   ;;  %v5084_v45 = vpack.i.bf16 %v4475_v6, %v9326_v17  ;;  %v5079_v25 = vpack.i.bf16 %v4474_v4, %v9327_v51  ;;  %2171 = vperm.xlu0 %4947, %v7964_v38   ;;  %vm2387_vm14 = vcmp.ne.f32.partialorder %v8030_v54, 0.0  ;;  %v9329_v6 = vld [vmem:[#allocation73_spill] sm:$0xff]  ;;  %v1433_v34 = vld [vmem:[%s6299_s19 + $0xd0] sm:$0xff]  ;;  %v2007_v10 = vpop.permute.xlu1 %2006  ;;  %v2002_v40 = vpop.permute.xlu0 %2001 }
 0x22d   : > { %v1618_v60 = vmul.f32 %v7652_v5, %v9328_v49  ;;  %v1650_v41 = vmul.f32 %v7636_v28, %v9328_v49  ;;  %v2286_v47 = vadd.f32 %v2222_v26, %v1822_v58  ;;  %v2285_v32 = vadd.f32 %v2221_v39, %v1821_v7  ;;  %v1465_v19 = vld [vmem:[%s6299_s19 + $0x1d0] sm:$0xff]  ;;  %v1746_v46 = vld [vmem:[%s6302_s15 + $0xd8] sm:$0xff]  ;;  %v1748_v17 = vld [vmem:[%s6302_s15 + $0xe8] sm:$0xff] }
 0x22e   : > { %v1514_v4 = vmul.f32 %v9329_v6, %v1434_v15  ;;  %v1546_v38 = vmul.f32 %v9329_v6, %v1466_v18  ;;  %v1745_v50 = vld [vmem:[%s6302_s15 + $0xd0] sm:$0xff]  ;;  %v9331_v36 = vld [vmem:[#allocation76_spill] sm:$0xff]  ;;  %v2224_v37 = vmul.f32 %v2007_v10, %v7726_v61  ;;  %v2223_v53 = vmul.f32 %v2002_v40, %v7730_v21  ;;  %v1747_v51 = vld [vmem:[%s6302_s15 + $0xe0] sm:$0xff] }
 0x22f   : > { %v9330_v24 = vld [vmem:[#allocation75_spill] sm:$0xff]  ;;  %v1617_v58 = vmul.f32 %v7652_v5, %v9331_v36  ;;  %v1649_v7 = vmul.f32 %v7636_v28, %v9331_v36  ;;  %3282 = vst [vmem:[%s6302_s15 + $0xb8] sm:$0xff] %v2286_v47  ;;  %3281 = vst [vmem:[%s6302_s15 + $0xb0] sm:$0xff] %v2285_v32  ;;  %v4477_v26 = vsel %vm2388_vm13, 1.0, %v9251_v16  ;;  %v4476_v39 = vsel %vm2387_vm14, 1.0, %v9251_v16  ;;  %v9332_v6 = vld [vmem:[#allocation92_spill] sm:$0xff] }
 0x230   : > { %v1513_v62 = vmul.f32 %v9330_v24, %v1433_v34  ;;  %v1545_v0 = vmul.f32 %v9330_v24, %v1465_v19  ;;  %5085 = vperm.xlu1 %4948, %v5084_v45   ;;  %5080 = vperm.xlu0 %4947, %v5079_v25   ;;  %v1682_v15 = vadd.f32 %v1618_v60, %v1514_v4  ;;  %v9333_v19 = vld [vmem:[#allocation93_spill] sm:$0xff]  ;;  %v8086_v40 = vld [vmem:[%s6294_s8 + $0x1f8] sm:$0xff]  ;;  %v8094_v60 = vsel %vm2358_vm11, 1.0, %v9251_v16 }
 0x231   : > { %v1714_v18 = vadd.f32 %v1650_v41, %v1546_v38  ;;  %v2288_v45 = vadd.f32 %v2224_v37, %v1824_v9  ;;  %v2287_v32 = vadd.f32 %v2223_v53, %v1823_v44  ;;  %v1826_v34 = vmul.f32 %v9332_v6, %v1746_v46  ;;  %v8089_v25 = vld [vmem:[%s6294_s8 + $0x1f0] sm:$0xff]  ;;  %v2017_v9 = vpop.permute.xlu1 %2016  ;;  %v2012_v44 = vpop.permute.xlu0 %2011  ;;  %v9334_v24 = vld [vmem:[#allocation79_spill] sm:$0xff] }
 0x232   : > { %v1681_v49 = vadd.f32 %v1617_v58, %v1513_v62  ;;  %v1713_v47 = vadd.f32 %v1649_v7, %v1545_v0  ;;  %v1825_v10 = vmul.f32 %v9333_v19, %v1745_v50  ;;  %v8098_v41 = vsel %vm2357_vm12, 1.0, %v9251_v16  ;;  %3222 = vst [vmem:[%s6299_s19 + $0xd8] sm:$0xff] %v1682_v15  ;;  %v1468_v50 = vld [vmem:[%s6299_s19 + $0x1e8] sm:$0xff]  ;;  %v1435_v37 = vld [vmem:[%s6299_s19 + $0xe0] sm:$0xff]  ;;  %v9336_v15 = vld [vmem:[#allocation80_spill] sm:$0xff] }
 0x233   : > { %v5094_v4 = vpack.i.bf16 %v4477_v26, %v7969_v2  ;;  %v5089_v38 = vpack.i.bf16 %v4476_v39, %v8034_v63  ;;  %3254 = vst [vmem:[%s6299_s19 + $0x1d8] sm:$0xff] %v1714_v18  ;;  %3284 = vst [vmem:[%s6302_s15 + $0xc8] sm:$0xff] %v2288_v45  ;;  %v2226_v12 = vmul.f32 %v2017_v9, %v7793_v22  ;;  %vm2390_vm15 = vcmp.ne.f32.partialorder %v8086_v40, 0.0  ;;  %v1436_v63 = vld [vmem:[%s6299_s19 + $0xe8] sm:$0xff]  ;;  %v1467_v53 = vld [vmem:[%s6299_s19 + $0x1e0] sm:$0xff] }
 0x234   : > { %3221 = vst [vmem:[%s6299_s19 + $0xd0] sm:$0xff] %v1681_v49  ;;  %3253 = vst [vmem:[%s6299_s19 + $0x1d0] sm:$0xff] %v1713_v47  ;;  %v2225_v52 = vmul.f32 %v2012_v44, %v7796_v3  ;;  %2186 = vperm.xlu1 %4948, %v8027_v8   ;;  %v1828_v2 = vmul.f32 %v7669_v57, %v1748_v17  ;;  %v1827_v46 = vmul.f32 %v7712_v43, %v1747_v51  ;;  %v9335_v58 = vld [vmem:[#allocation78_spill] sm:$0xff]  ;;  %v1750_v17 = vld [vmem:[%s6302_s15 + $0xf8] sm:$0xff] }
 0x235   : > { %3283 = vst [vmem:[%s6302_s15 + $0xc0] sm:$0xff] %v2287_v32  ;;  %2181 = vperm.xlu0 %4947, %v8030_v54   ;;  %vm2389_vm0 = vcmp.ne.f32.partialorder %v8089_v25, 0.0  ;;  %v1620_v62 = vmul.f32 %v7652_v5, %v9334_v24  ;;  %v1652_v8 = vmul.f32 %v7636_v28, %v9334_v24  ;;  %v2290_v0 = vadd.f32 %v2226_v12, %v1826_v34  ;;  %v2027_v26 = vpop.permute.xlu1 %2026  ;;  %v2022_v39 = vpop.permute.xlu0 %2021  ;;  %v1749_v51 = vld [vmem:[%s6302_s15 + $0xf0] sm:$0xff]  ;;  %v9337_v47 = vld [vmem:[#allocation82_spill] sm:$0xff] }
 0x236   : > { %v2289_v36 = vadd.f32 %v2225_v52, %v1825_v10  ;;  %v1516_v7 = vmul.f32 %v9335_v58, %v1436_v63  ;;  %v1548_v54 = vmul.f32 %v9335_v58, %v1468_v50  ;;  %v1515_v18 = vmul.f32 %v9336_v15, %v1435_v37 }
 0x237   : > { %v1547_v49 = vmul.f32 %v9336_v15, %v1467_v53  ;;  %v1619_v45 = vmul.f32 %v7652_v5, %v9337_v47  ;;  %v1651_v32 = vmul.f32 %v7636_v28, %v9337_v47  ;;  %3286 = vst [vmem:[%s6302_s15 + $0xd8] sm:$0xff] %v2290_v0  ;;  %v2228_v6 = vmul.f32 %v2027_v26, %v7828_v56  ;;  %v1752_v0 = vld [vmem:[%s6302_s15 + $0x108] sm:$0xff]  ;;  %v9338_v53 = vld [vmem:[#allocation89_spill] sm:$0xff]  ;;  %v1437_v15 = vld [vmem:[%s6299_s19 + $0xf0] sm:$0xff] }
 0x238   : > { %3285 = vst [vmem:[%s6302_s15 + $0xd0] sm:$0xff] %v2289_v36  ;;  %v2227_v34 = vmul.f32 %v2022_v39, %v7832_v23  ;;  %5095 = vperm.xlu1 %4948, %v5094_v4   ;;  %v4479_v19 = vsel %vm2390_vm15, 1.0, %v9251_v16  ;;  %v4478_v10 = vsel %vm2389_vm0, 1.0, %v9251_v16  ;;  %v1684_v9 = vadd.f32 %v1620_v62, %v1516_v7  ;;  %v1751_v36 = vld [vmem:[%s6302_s15 + $0x100] sm:$0xff]  ;;  %v9339_v39 = vld [vmem:[#allocation88_spill] sm:$0xff] }
 0x239   : > { %5090 = vperm.xlu0 %4947, %v5089_v38   ;;  %v1716_v44 = vadd.f32 %v1652_v8, %v1548_v54  ;;  %v1683_v12 = vadd.f32 %v1619_v45, %v1515_v18  ;;  %v1715_v52 = vadd.f32 %v1651_v32, %v1547_v49  ;;  %v2292_v4 = vadd.f32 %v2228_v6, %v1828_v2  ;;  %v2037_v58 = vpop.permute.xlu1 %2036  ;;  %v2032_v37 = vpop.permute.xlu0 %2031  ;;  %v8161_v8 = vld [vmem:[%s6263_s21 + $0x8] sm:$0xff]  ;;  %v8165_v54 = vld [vmem:[%s6263_s21] sm:$0xff]  ;;  %v1469_v18 = vld [vmem:[%s6299_s19 + $0x1f0] sm:$0xff] }
 0x23a   : > { %v2291_v63 = vadd.f32 %v2227_v34, %v1827_v46  ;;  %v1830_v50 = vmul.f32 %v7783_v14, %v1750_v17  ;;  %v1829_v24 = vmul.f32 %v7787_v55, %v1749_v51  ;;  %3224 = vst [vmem:[%s6299_s19 + $0xe8] sm:$0xff] %v1684_v9  ;;  %v2230_v38 = vmul.f32 %v2037_v58, %v7885_v42  ;;  %v1754_v45 = vld [vmem:[%s6302_s15 + $0x118] sm:$0xff]  ;;  %v1753_v32 = vld [vmem:[%s6302_s15 + $0x110] sm:$0xff]  ;;  %v9340_v6 = vld [vmem:[#allocation90_spill] sm:$0xff] }
 0x23b   : > { %3256 = vst [vmem:[%s6299_s19 + $0x1e8] sm:$0xff] %v1716_v44  ;;  %3223 = vst [vmem:[%s6299_s19 + $0xe0] sm:$0xff] %v1683_v12  ;;  %v2229_v2 = vmul.f32 %v2032_v37, %v7888_v27  ;;  %v5104_v46 = vpack.i.bf16 %v4479_v19, %v8094_v60  ;;  %v5099_v62 = vpack.i.bf16 %v4478_v10, %v8098_v41  ;;  %v1438_v27 = vld [vmem:[%s6299_s19 + $0xf8] sm:$0xff]  ;;  %v9341_v10 = vld [vmem:[#allocation91_spill] sm:$0xff] }
 0x23c   : > { %3255 = vst [vmem:[%s6299_s19 + $0x1e0] sm:$0xff] %v1715_v52  ;;  %3288 = vst [vmem:[%s6302_s15 + $0xe8] sm:$0xff] %v2292_v4  ;;  %2196 = vperm.xlu1 %4948, %v8086_v40   ;;  %v1832_v7 = vmul.f32 %v8161_v8, %v1752_v0  ;;  %v1831_v42 = vmul.f32 %v8165_v54, %v1751_v36  ;;  %v1470_v40 = vld [vmem:[%s6299_s19 + $0x1f8] sm:$0xff]  ;;  %v1622_v60 = vmul.f32 %v7652_v5, %v9338_v53  ;;  %v8202_v58 = vld [vmem:[%s6263_s21 + $0x10] sm:$0xff] }
 0x23d   : > { %3287 = vst [vmem:[%s6302_s15 + $0xe0] sm:$0xff] %v2291_v63  ;;  %2191 = vperm.xlu0 %4947, %v8089_v25   ;;  %v1654_v41 = vmul.f32 %v7636_v28, %v9338_v53  ;;  %v2294_v25 = vadd.f32 %v2230_v38, %v1830_v50  ;;  %v2293_v26 = vadd.f32 %v2229_v2, %v1829_v24  ;;  %v2047_v49 = vpop.permute.xlu1 %2046  ;;  %v2042_v47 = vpop.permute.xlu0 %2041  ;;  %v8190_v52 = vld [vmem:[%s6272_s3] sm:$0xff]  ;;  %v8198_v0 = vld [vmem:[%s6263_s21 + $0x18] sm:$0xff] }
 0x23e   : > { %v1518_v17 = vmul.f32 %v9339_v39, %v1438_v27  ;;  %v1550_v51 = vmul.f32 %v9339_v39, %v1470_v40  ;;  %v1517_v34 = vmul.f32 %v9340_v6, %v1437_v15  ;;  %v1549_v19 = vmul.f32 %v9340_v6, %v1469_v18  ;;  %v8249_v6 = vld [vmem:[%s6263_s21 + $0x30] sm:$0xff] }
 0x23f   : > { %v1621_v9 = vmul.f32 %v7652_v5, %v9341_v10  ;;  %v1653_v44 = vmul.f32 %v7636_v28, %v9341_v10  ;;  %3290 = vst [vmem:[%s6302_s15 + $0xf8] sm:$0xff] %v2294_v25  ;;  %3289 = vst [vmem:[%s6302_s15 + $0xf0] sm:$0xff] %v2293_v26  ;;  %v2232_v12 = vmul.f32 %v2047_v49, %v7586_v29  ;;  %v8229_v25 = vld [vmem:[%s6263_s21 + $0x20] sm:$0xff] }
 0x240   : > { %v2231_v4 = vmul.f32 %v8190_v52, %v2042_v47  ;;  %5105 = vperm.xlu1 %4948, %v5104_v46   ;;  %v1686_v63 = vadd.f32 %v1622_v60, %v1518_v17  ;;  %v1718_v5 = vadd.f32 %v1654_v41, %v1550_v51  ;;  %v1834_v36 = vmul.f32 %v8198_v0, %v1754_v45  ;;  %v1756_v46 = vld [vmem:[%s6302_s15 + $0x128] sm:$0xff]  ;;  %v1758_v17 = vld [vmem:[%s6302_s15 + $0x138] sm:$0xff]  ;;  %v1757_v51 = vld [vmem:[%s6302_s15 + $0x130] sm:$0xff] }
 0x241   : > { %5100 = vperm.xlu0 %4947, %v5099_v62   ;;  %v1685_v28 = vadd.f32 %v1621_v9, %v1517_v34  ;;  %v1717_v50 = vadd.f32 %v1653_v44, %v1549_v19  ;;  %v8193_v24 = vadd.f32 %v2232_v12, %v1832_v7  ;;  %v1833_v37 = vmul.f32 %v8202_v58, %v1753_v32  ;;  %v2057_v38 = vpop.permute.xlu1 %2056  ;;  %v2052_v2 = vpop.permute.xlu0 %2051  ;;  %v1755_v62 = vld [vmem:[%s6302_s15 + $0x120] sm:$0xff]  ;;  %v8245_v45 = vld [vmem:[%s6263_s21 + $0x38] sm:$0xff] }
 0x242   : > { %v8195_v29 = vadd.f32 %v2231_v4, %v1831_v42  ;;  %3226 = vst [vmem:[%s6299_s19 + $0xf8] sm:$0xff] %v1686_v63  ;;  %3258 = vst [vmem:[%s6299_s19 + $0x1f8] sm:$0xff] %v1718_v5  ;;  %v2234_v7 = vmul.f32 %v2057_v38, %v7583_v13  ;;  %v8217_v42 = vld [vmem:[%s6272_s3 + $0x10] sm:$0xff]  ;;  %v8225_v60 = vld [vmem:[%s6263_s21 + $0x28] sm:$0xff]  ;;  %v1835_v26 = vmul.f32 %v8229_v25, %v1755_v62 }
 0x243   : > { %3225 = vst [vmem:[%s6299_s19 + $0xf0] sm:$0xff] %v1685_v28  ;;  %3257 = vst [vmem:[%s6299_s19 + $0x1f0] sm:$0xff] %v1717_v50  ;;  %v2233_v27 = vmul.f32 %v8217_v42, %v2052_v2  ;;  %v1836_v41 = vmul.f32 %v8225_v60, %v1756_v46  ;;  %v1838_v32 = vmul.f32 %v8245_v45, %v1758_v17  ;;  %v1759_v9 = vld [vmem:[%s6302_s15 + $0x140] sm:$0xff]  ;;  %v5123_v12 = vld [vmem:[%s6225_s24 + $0x2] sm:$0x1] }
 0x244   : > { %3292 = vst [vmem:[%s6302_s15 + $0x108] sm:$0xff] %v8193_v24  ;;  %3291 = vst [vmem:[%s6302_s15 + $0x100] sm:$0xff] %v8195_v29  ;;  %v8220_v40 = vadd.f32 %v2234_v7, %v1834_v36  ;;  %v1837_v34 = vmul.f32 %v8249_v6, %v1757_v51  ;;  %vm2521_vm1 = vcmp.ne.f32.partialorder %v5123_v12, 0.0  ;;  %v8262_v5 = vld [vmem:[%s6263_s21 + $0x48] sm:$0xff]  ;;  %v8266_v50 = vld [vmem:[%s6263_s21 + $0x40] sm:$0xff] }
 0x245   : > { %v8222_v53 = vadd.f32 %v2233_v27, %v1833_v37  ;;  %v2067_v39 = vpop.permute.xlu1 %2066  ;;  %v2062_v13 = vpop.permute.xlu0 %2061  ;;  %v1839_v36 = vmul.f32 %v8266_v50, %v1759_v9  ;;  %v4482_v62 = vsel %vm2521_vm1, 1.0, %v9251_v16 }
 0x246   : > { %3294 = vst [vmem:[%s6302_s15 + $0x118] sm:$0xff] %v8220_v40  ;;  %v2236_v15 = vmul.f32 %v2067_v39, %v7611_v31  ;;  %v2235_v18 = vmul.f32 %v2062_v13, %v7614_v20  ;;  %v1760_v31 = vld [vmem:[%s6302_s15 + $0x148] sm:$0xff] }
 0x247   : > { %3293 = vst [vmem:[%s6302_s15 + $0x110] sm:$0xff] %v8222_v53  ;;  %v1840_v28 = vmul.f32 %v8262_v5, %v1760_v31  ;;  %v8281_v39 = vld [vmem:[%s6263_s21 + $0x50] sm:$0xff] }
 0x248   : > { %v8240_v49 = vadd.f32 %v2236_v15, %v1836_v41  ;;  %v8242_v47 = vadd.f32 %v2235_v18, %v1835_v26  ;;  %v8277_v41 = vld [vmem:[%s6263_s21 + $0x58] sm:$0xff]  ;;  %9342 = vst [vmem:[#allocation64_spill] sm:$0xff] %v8281_v39 }
 0x249   : > { %v2077_v19 = vpop.permute.xlu1 %2076  ;;  %v2072_v10 = vpop.permute.xlu0 %2071 }
 0x24a   : > { %3296 = vst [vmem:[%s6302_s15 + $0x128] sm:$0xff] %v8240_v49  ;;  %3295 = vst [vmem:[%s6302_s15 + $0x120] sm:$0xff] %v8242_v47  ;;  %v2238_v20 = vmul.f32 %v2077_v19, %v7691_v48  ;;  %v2237_v44 = vmul.f32 %v2072_v10, %v7694_v30  ;;  %v1762_v48 = vld [vmem:[%s6302_s15 + $0x158] sm:$0xff]  ;;  %v1761_v30 = vld [vmem:[%s6302_s15 + $0x150] sm:$0xff] }
 0x24b   : > { %v1842_v26 = vmul.f32 %v8277_v41, %v1762_v48  ;;  %v1841_v13 = vmul.f32 %v8281_v39, %v1761_v30 }
 0x24c   : > { %v2302_v4 = vadd.f32 %v2238_v20, %v1838_v32  ;;  %v2301_v63 = vadd.f32 %v2237_v44, %v1837_v34  ;;  %v9343_v32 = vld [vmem:[#allocation58_spill] sm:$0xff]  ;;  %v1766_v20 = vld [vmem:[%s6302_s15 + $0x178] sm:$0xff]  ;;  %v1765_v44 = vld [vmem:[%s6302_s15 + $0x170] sm:$0xff] }
 0x24d   : > { %v2087_v37 = vpop.permute.xlu1 %2086  ;;  %v2082_v38 = vpop.permute.xlu0 %2081  ;;  %v8291_v34 = vrot.slane %v4482_v62, %v9343_v32 }
 0x24e   : > { %3298 = vst [vmem:[%s6302_s15 + $0x138] sm:$0xff] %v2302_v4  ;;  %3297 = vst [vmem:[%s6302_s15 + $0x130] sm:$0xff] %v2301_v63  ;;  %v2240_v2 = vmul.f32 %v2087_v37, %v7726_v61  ;;  %v2239_v46 = vmul.f32 %v2082_v38, %v7730_v21  ;;  %v1764_v61 = vld [vmem:[%s6302_s15 + $0x168] sm:$0xff]  ;;  %v1763_v21 = vld [vmem:[%s6302_s15 + $0x160] sm:$0xff]  ;;  %v8305_v37 = vmul.f32 %v7787_v55, %v1765_v44 }
 0x24f   : > { %v1844_v31 = vmul.f32 %v7669_v57, %v1764_v61  ;;  %v1843_v9 = vmul.f32 %v7712_v43, %v1763_v21  ;;  %v3100_v57 = vmul.f32 %v8291_v34, %v8193_v24  ;;  %v3099_v48 = vmul.f32 %v8291_v34, %v8195_v29  ;;  %v5129_v61 = vld [vmem:[%s6299_s19 + $0x108] sm:$0xff]  ;;  %v2531_v21 = vld [vmem:[%s6305_s0] sm:$0xff] }
 0x250   : > { %v2304_v7 = vadd.f32 %v2240_v2, %v1840_v28  ;;  %v2303_v27 = vadd.f32 %v2239_v46, %v1839_v36  ;;  %v8321_v55 = vmul.f32 %v8291_v34, %v8240_v49  ;;  %v8328_v30 = vmul.f32 %v8291_v34, %v2302_v4  ;;  %v2532_v46 = vld [vmem:[%s6305_s0 + $0x8] sm:$0xff] }
 0x251   : > { %v2097_v17 = vpop.permute.xlu1 %2096  ;;  %v2092_v51 = vpop.permute.xlu0 %2091  ;;  %v2564_v4 = vld [vmem:[%s6305_s0 + $0x108] sm:$0xff] }
 0x252   : > { %3300 = vst [vmem:[%s6302_s15 + $0x148] sm:$0xff] %v2304_v7  ;;  %3299 = vst [vmem:[%s6302_s15 + $0x140] sm:$0xff] %v2303_v27  ;;  %v2242_v15 = vmul.f32 %v2097_v17, %v7793_v22  ;;  %v2241_v18 = vmul.f32 %v2092_v51, %v7796_v3  ;;  %v8302_v3 = vmul.f32 %v7783_v14, %v1766_v20  ;;  %v5128_v17 = vld [vmem:[%s6299_s19 + $0x8] sm:$0xff] }
 0x253   : > { %v8317_v14 = vmul.f32 %v8291_v34, %v8222_v53  ;;  %v8336_v2 = vmul.f32 %v8291_v34, %v2304_v7 }
 0x254   : > { %v2306_v19 = vadd.f32 %v2242_v15, %v1842_v26  ;;  %v2305_v10 = vadd.f32 %v2241_v18, %v1841_v13 }
 0x255   : > { %v2107_v12 = vpop.permute.xlu1 %2106  ;;  %v2102_v28 = vpop.permute.xlu0 %2101 }
 0x256   : > { %3302 = vst [vmem:[%s6302_s15 + $0x158] sm:$0xff] %v2306_v19  ;;  %3301 = vst [vmem:[%s6302_s15 + $0x150] sm:$0xff] %v2305_v10  ;;  %v2244_v36 = vmul.f32 %v2107_v12, %v7828_v56  ;;  %v2243_v22 = vmul.f32 %v2102_v28, %v7832_v23  ;;  %v8313_v56 = vmul.f32 %v8291_v34, %v8220_v40 }
 0x257   : > { %v8325_v23 = vmul.f32 %v8291_v34, %v8242_v47  ;;  %v8331_v40 = vmul.f32 %v8291_v34, %v2301_v63  ;;  %v8339_v47 = vmul.f32 %v8291_v34, %v2303_v27  ;;  %v8344_v63 = vmul.f32 %v8291_v34, %v2306_v19  ;;  %v2563_v27 = vld [vmem:[%s6305_s0 + $0x100] sm:$0xff] }
 0x258   : > { %v2308_v43 = vadd.f32 %v2244_v36, %v1844_v31  ;;  %v2307_v38 = vadd.f32 %v2243_v22, %v1843_v9  ;;  %v8347_v13 = vmul.f32 %v8291_v34, %v2305_v10  ;;  %v5130_v31 = vld [vmem:[%s6299_s19] sm:$0xff] }
 0x259   : > { %v4956_v24 = vpop.permute.xlu1 %4955  ;;  %v4951_v29 = vpop.permute.xlu0 %4950  ;;  %v5131_v9 = vld [vmem:[%s6299_s19 + $0x100] sm:$0xff] }
 0x25a   : > { %3304 = vst [vmem:[%s6302_s15 + $0x168] sm:$0xff] %v2308_v43  ;;  %3303 = vst [vmem:[%s6302_s15 + $0x160] sm:$0xff] %v2307_v38  ;;  %v4958_v53 = vunpack.i.h.bf16 %v4956_v24  ;;  %v4957_v49 = vunpack.i.l.bf16 %v4956_v24  ;;  %v4953_v62 = vunpack.i.h.bf16 %v4951_v29  ;;  %v4952_v26 = vunpack.i.l.bf16 %v4951_v29  ;;  %v2566_v24 = vld [vmem:[%s6305_s0 + $0x118] sm:$0xff] }
 0x25b   : > { %v8354_v15 = vmul.f32 %v8291_v34, %v2308_v43  ;;  %v8357_v18 = vmul.f32 %v8291_v34, %v2307_v38  ;;  %v2534_v43 = vld [vmem:[%s6305_s0 + $0x18] sm:$0xff] }
 0x25c   : > { %v2916_v51 = vmul.f32 %v5128_v17, %v4957_v49  ;;  %v2948_v7 = vmul.f32 %v5129_v61, %v4958_v53  ;;  %v2915_v19 = vmul.f32 %v5130_v31, %v4952_v26  ;;  %v2947_v10 = vmul.f32 %v5131_v9, %v4953_v62  ;;  %v5132_v26 = vld [vmem:[%s6299_s19 + $0x18] sm:$0xff]  ;;  %v2533_v31 = vld [vmem:[%s6305_s0 + $0x10] sm:$0xff] }
 0x25d   : > { %v4966_v20 = vpop.permute.xlu1 %4965  ;;  %v4961_v44 = vpop.permute.xlu0 %4960  ;;  %v5133_v61 = vld [vmem:[%s6299_s19 + $0x118] sm:$0xff]  ;;  %v2565_v9 = vld [vmem:[%s6305_s0 + $0x110] sm:$0xff] }
 0x25e   : > { %v2980_v12 = vadd.f32 %v2916_v51, %v2532_v46  ;;  %v3012_v28 = vadd.f32 %v2948_v7, %v2564_v4  ;;  %v4968_v36 = vunpack.i.h.bf16 %v4966_v20  ;;  %v4967_v22 = vunpack.i.l.bf16 %v4966_v20  ;;  %v5134_v51 = vld [vmem:[%s6299_s19 + $0x10] sm:$0xff] }
 0x25f   : > { %v4963_v38 = vunpack.i.h.bf16 %v4961_v44  ;;  %v4962_v29 = vunpack.i.l.bf16 %v4961_v44  ;;  %v2979_v53 = vadd.f32 %v2915_v19, %v2531_v21  ;;  %v3011_v49 = vadd.f32 %v2947_v10, %v2563_v27  ;;  %v5135_v20 = vld [vmem:[%s6299_s19 + $0x110] sm:$0xff]  ;;  %v9344_v27 = vld [vmem:[#allocation96_spill] sm:$0xff] }
 0x260   : > { %v2918_v17 = vmul.f32 %v5132_v26, %v4967_v22  ;;  %v2950_v62 = vmul.f32 %v5133_v61, %v4968_v36  ;;  %v3132_v46 = vsub.f32 %v2980_v12, %v7679_v1  ;;  %v3164_v4 = vsub.f32 %v3012_v28, %v3100_v57  ;;  %v2536_v28 = vld [vmem:[%s6305_s0 + $0x28] sm:$0xff] }
 0x261   : > { %v2917_v7 = vmul.f32 %v5134_v51, %v4962_v29  ;;  %v2949_v39 = vmul.f32 %v5135_v20, %v4963_v38  ;;  %v4976_v44 = vpop.permute.xlu1 %4975  ;;  %v4971_v21 = vpop.permute.xlu0 %4970  ;;  %v3131_v19 = vsub.f32 %v2979_v53, %v9344_v27  ;;  %v3163_v10 = vsub.f32 %v3011_v49, %v3099_v48  ;;  %v2568_v38 = vld [vmem:[%s6305_s0 + $0x128] sm:$0xff]  ;;  %v2535_v49 = vld [vmem:[%s6305_s0 + $0x20] sm:$0xff] }
 0x262   : > { %v2982_v36 = vadd.f32 %v2918_v17, %v2534_v43  ;;  %v3014_v22 = vadd.f32 %v2950_v62, %v2566_v24  ;;  %v4978_v26 = vunpack.i.h.bf16 %v4976_v44  ;;  %v4977_v1 = vunpack.i.l.bf16 %v4976_v44  ;;  %3324 = vst [vmem:[%s6305_s0 + $0x8] sm:$0xff] %v3132_v46  ;;  %3356 = vst [vmem:[%s6305_s0 + $0x108] sm:$0xff] %v3164_v4  ;;  %v5136_v48 = vld [vmem:[%s6299_s19 + $0x28] sm:$0xff]  ;;  %v2567_v17 = vld [vmem:[%s6305_s0 + $0x120] sm:$0xff] }
 0x263   : > { %v2981_v57 = vadd.f32 %v2917_v7, %v2533_v31  ;;  %v3013_v12 = vadd.f32 %v2949_v39, %v2565_v9  ;;  %v4973_v29 = vunpack.i.h.bf16 %v4971_v21  ;;  %v4972_v61 = vunpack.i.l.bf16 %v4971_v21  ;;  %3323 = vst [vmem:[%s6305_s0] sm:$0xff] %v3131_v19  ;;  %4624 = vmatprep.mubr.f32.mxu0 %v3131_v19  ;;  %3355 = vst [vmem:[%s6305_s0 + $0x100] sm:$0xff] %v3163_v10  ;;  %v5137_v24 = vld [vmem:[%s6299_s19 + $0x128] sm:$0xff]  ;;  %v5138_v62 = vld [vmem:[%s6299_s19 + $0x20] sm:$0xff] }
 0x264   : > { %4672 = vmatprep.mubr.f32.mxu1 %v3163_v10  ;;  %v2920_v43 = vmul.f32 %v5136_v48, %v4977_v1  ;;  %v2952_v53 = vmul.f32 %v5137_v24, %v4978_v26  ;;  %4625 = vmatmul.mubr.f32.vlgmr.msra.gmra.mxu0 %v3132_v46  ;;  %v3134_v39 = vsub.f32 %v2982_v36, %v7675_v33  ;;  %v5139_v9 = vld [vmem:[%s6299_s19 + $0x120] sm:$0xff]  ;;  %v9345_v44 = vld [vmem:[#allocation95_spill] sm:$0xff]  ;;  %v2538_v26 = vld [vmem:[%s6305_s0 + $0x38] sm:$0xff] }
 0x265   : > { %4673 = vmatmul.mubr.f32.vlgmr.msra.gmra.mxu1 %v3164_v4  ;;  %v2919_v31 = vmul.f32 %v5138_v62, %v4972_v61  ;;  %v2951_v51 = vmul.f32 %v5139_v9, %v4973_v29  ;;  %v4986_v7 = vpop.permute.xlu1 %4985  ;;  %v4981_v20 = vpop.permute.xlu0 %4980  ;;  %v3133_v21 = vsub.f32 %v2981_v57, %v9345_v44  ;;  %v3165_v27 = vsub.f32 %v3013_v12, %v8317_v14  ;;  %v2570_v1 = vld [vmem:[%s6305_s0 + $0x138] sm:$0xff]  ;;  %v2569_v48 = vld [vmem:[%s6305_s0 + $0x130] sm:$0xff]  ;;  %v9346_v24 = vld [vmem:[#allocation97_spill] sm:$0xff] }
 0x266   : > { %v2984_v19 = vadd.f32 %v2920_v43, %v2536_v28  ;;  %v3016_v46 = vadd.f32 %v2952_v53, %v2568_v38  ;;  %v4988_v4 = vunpack.i.h.bf16 %v4986_v7  ;;  %v4987_v33 = vunpack.i.l.bf16 %v4986_v7  ;;  %3326 = vst [vmem:[%s6305_s0 + $0x18] sm:$0xff] %v3134_v39  ;;  %v5140_v14 = vld [vmem:[%s6299_s19 + $0x38] sm:$0xff]  ;;  %v2537_v38 = vld [vmem:[%s6305_s0 + $0x30] sm:$0xff]  ;;  %v9347_v7 = vld [vmem:[#allocation98_spill] sm:$0xff] }
 0x267   : > { %v2983_v10 = vadd.f32 %v2919_v31, %v2535_v49  ;;  %v3015_v36 = vadd.f32 %v2951_v51, %v2567_v17  ;;  %v4983_v29 = vunpack.i.h.bf16 %v4981_v20  ;;  %v4982_v61 = vunpack.i.l.bf16 %v4981_v20  ;;  %3325 = vst [vmem:[%s6305_s0 + $0x10] sm:$0xff] %v3133_v21  ;;  %4627 = vmatprep.mubr.f32.mxu0 %v3133_v21  ;;  %3357 = vst [vmem:[%s6305_s0 + $0x110] sm:$0xff] %v3165_v27  ;;  %v5141_v12 = vld [vmem:[%s6299_s19 + $0x138] sm:$0xff]  ;;  %v5142_v49 = vld [vmem:[%s6299_s19 + $0x30] sm:$0xff] }
 0x268   : > { %4675 = vmatprep.mubr.f32.mxu1 %v3165_v27  ;;  %v2922_v57 = vmul.f32 %v5140_v14, %v4987_v33  ;;  %v2954_v28 = vmul.f32 %v5141_v12, %v4988_v4  ;;  %4628 = vmatmul.mubr.f32.gmra.mxu0 %v3134_v39  ;;  %v3166_v43 = vsub.f32 %v3014_v22, %v8313_v56  ;;  %v5143_v62 = vld [vmem:[%s6299_s19 + $0x130] sm:$0xff]  ;;  %v2540_v4 = vld [vmem:[%s6305_s0 + $0x48] sm:$0xff]  ;;  %v2571_v14 = vld [vmem:[%s6305_s0 + $0x140] sm:$0xff] }
 0x269   : > { %v3136_v53 = vsub.f32 %v2984_v19, %v9346_v24  ;;  %v2921_v17 = vmul.f32 %v5142_v49, %v4982_v61  ;;  %v2953_v31 = vmul.f32 %v5143_v62, %v4983_v29  ;;  %v4996_v9 = vpop.permute.xlu1 %4995  ;;  %v4991_v51 = vpop.permute.xlu0 %4990  ;;  %v3135_v20 = vsub.f32 %v2983_v10, %v9347_v7  ;;  %v2572_v33 = vld [vmem:[%s6305_s0 + $0x148] sm:$0xff]  ;;  %v2539_v61 = vld [vmem:[%s6305_s0 + $0x40] sm:$0xff]  ;;  %v9349_v62 = vld [vmem:[#allocation63_spill] sm:$0xff] }
 0x26a   : > { %v3167_v44 = vsub.f32 %v3015_v36, %v8325_v23  ;;  %v2986_v39 = vadd.f32 %v2922_v57, %v2538_v26  ;;  %v3018_v21 = vadd.f32 %v2954_v28, %v2570_v1  ;;  %3358 = vst [vmem:[%s6305_s0 + $0x118] sm:$0xff] %v3166_v43  ;;  %4676 = vmatmul.mubr.f32.gmra.mxu1 %v3166_v43  ;;  %v4998_v56 = vunpack.i.h.bf16 %v4996_v9  ;;  %v5144_v23 = vld [vmem:[%s6299_s19 + $0x48] sm:$0xff]  ;;  %v5147_v43 = vld [vmem:[%s6299_s19 + $0x140] sm:$0xff] }
 0x26b   : > { %v4997_v22 = vunpack.i.l.bf16 %v4996_v9  ;;  %3328 = vst [vmem:[%s6305_s0 + $0x28] sm:$0xff] %v3136_v53  ;;  %v2985_v27 = vadd.f32 %v2921_v17, %v2537_v38  ;;  %v3017_v19 = vadd.f32 %v2953_v31, %v2569_v48  ;;  %v4993_v10 = vunpack.i.h.bf16 %v4991_v51  ;;  %3327 = vst [vmem:[%s6305_s0 + $0x20] sm:$0xff] %v3135_v20  ;;  %4630 = vmatprep.mubr.f32.mxu0 %v3135_v20  ;;  %v5145_v26 = vld [vmem:[%s6299_s19 + $0x148] sm:$0xff]  ;;  %v5146_v38 = vld [vmem:[%s6299_s19 + $0x40] sm:$0xff] }
 0x26c   : > { %v4992_v29 = vunpack.i.l.bf16 %v4991_v51  ;;  %3359 = vst [vmem:[%s6305_s0 + $0x120] sm:$0xff] %v3167_v44  ;;  %4678 = vmatprep.mubr.f32.mxu1 %v3167_v44  ;;  %v2956_v1 = vmul.f32 %v5145_v26, %v4998_v56  ;;  %4631 = vmatmul.mubr.f32.gmra.mxu0 %v3136_v53  ;;  %v3168_v57 = vsub.f32 %v3016_v46, %v8321_v55  ;;  %v9348_v12 = vld [vmem:[#allocation62_spill] sm:$0xff]  ;;  %v2542_v44 = vld [vmem:[%s6305_s0 + $0x58] sm:$0xff] }
 0x26d   : > { %v2924_v36 = vmul.f32 %v5144_v23, %v4997_v22  ;;  %v3138_v28 = vsub.f32 %v2986_v39, %v9348_v12  ;;  %v2955_v24 = vmul.f32 %v5147_v43, %v4993_v10  ;;  %v5006_v49 = vpop.permute.xlu1 %5005  ;;  %v5001_v17 = vpop.permute.xlu0 %5000  ;;  %v3137_v31 = vsub.f32 %v2985_v27, %v9349_v62  ;;  %v2574_v39 = vld [vmem:[%s6305_s0 + $0x158] sm:$0xff]  ;;  %v2573_v10 = vld [vmem:[%s6305_s0 + $0x150] sm:$0xff]  ;;  %v9350_v12 = vld [vmem:[#allocation57_spill] sm:$0xff] }
 0x26e   : > { %v2923_v48 = vmul.f32 %v5146_v38, %v4992_v29  ;;  %v3169_v9 = vsub.f32 %v3017_v19, %v8331_v40  ;;  %v3020_v51 = vadd.f32 %v2956_v1, %v2572_v33  ;;  %3360 = vst [vmem:[%s6305_s0 + $0x128] sm:$0xff] %v3168_v57  ;;  %4679 = vmatmul.mubr.f32.gmra.mxu1 %v3168_v57  ;;  %v5008_v55 = vunpack.i.h.bf16 %v5006_v49  ;;  %v5148_v40 = vld [vmem:[%s6299_s19 + $0x58] sm:$0xff]  ;;  %v2541_v33 = vld [vmem:[%s6305_s0 + $0x50] sm:$0xff] }
 0x26f   : > { %v2988_v53 = vadd.f32 %v2924_v36, %v2540_v4  ;;  %v5007_v46 = vunpack.i.l.bf16 %v5006_v49  ;;  %3330 = vst [vmem:[%s6305_s0 + $0x38] sm:$0xff] %v3138_v28  ;;  %v3019_v20 = vadd.f32 %v2955_v24, %v2571_v14  ;;  %v5003_v56 = vunpack.i.h.bf16 %v5001_v17  ;;  %3329 = vst [vmem:[%s6305_s0 + $0x30] sm:$0xff] %v3137_v31  ;;  %4633 = vmatprep.mubr.f32.mxu0 %v3137_v31  ;;  %v5149_v19 = vld [vmem:[%s6299_s19 + $0x158] sm:$0xff]  ;;  %v5150_v36 = vld [vmem:[%s6299_s19 + $0x50] sm:$0xff] }
 0x270   : > { %v2987_v7 = vadd.f32 %v2923_v48, %v2539_v61  ;;  %v5002_v22 = vunpack.i.l.bf16 %v5001_v17  ;;  %3361 = vst [vmem:[%s6305_s0 + $0x130] sm:$0xff] %v3169_v9  ;;  %4681 = vmatprep.mubr.f32.mxu1 %v3169_v9  ;;  %v2958_v4 = vmul.f32 %v5149_v19, %v5008_v55  ;;  %4634 = vmatmul.mubr.f32.gmra.mxu0 %v3138_v28  ;;  %v5151_v1 = vld [vmem:[%s6299_s19 + $0x150] sm:$0xff]  ;;  %v2544_v49 = vld [vmem:[%s6305_s0 + $0x68] sm:$0xff] }
 0x271   : > { %v2926_v27 = vmul.f32 %v5148_v40, %v5007_v46  ;;  %v3170_v29 = vsub.f32 %v3018_v21, %v8328_v30  ;;  %v3140_v23 = vsub.f32 %v2988_v53, %v7817_v59  ;;  %v2957_v61 = vmul.f32 %v5151_v1, %v5003_v56  ;;  %v5016_v14 = vpop.permute.xlu1 %5015  ;;  %v5011_v57 = vpop.permute.xlu0 %5010  ;;  %v2576_v17 = vld [vmem:[%s6305_s0 + $0x168] sm:$0xff]  ;;  %v2543_v46 = vld [vmem:[%s6305_s0 + $0x60] sm:$0xff] }
 0x272   : > { %v2925_v26 = vmul.f32 %v5150_v36, %v5002_v22  ;;  %v3139_v38 = vsub.f32 %v2987_v7, %v9350_v12  ;;  %v3171_v48 = vsub.f32 %v3019_v20, %v8339_v47  ;;  %v3022_v43 = vadd.f32 %v2958_v4, %v2574_v39  ;;  %v5152_v47 = vld [vmem:[%s6299_s19 + $0x68] sm:$0xff]  ;;  %v2575_v7 = vld [vmem:[%s6305_s0 + $0x160] sm:$0xff] }
 0x273   : > { %v2990_v28 = vadd.f32 %v2926_v27, %v2542_v44  ;;  %3362 = vst [vmem:[%s6305_s0 + $0x138] sm:$0xff] %v3170_v29  ;;  %4682 = vmatmul.mubr.f32.gmra.mxu1 %v3170_v29  ;;  %v5018_v59 = vunpack.i.h.bf16 %v5016_v14  ;;  %v5017_v30 = vunpack.i.l.bf16 %v5016_v14  ;;  %3332 = vst [vmem:[%s6305_s0 + $0x48] sm:$0xff] %v3140_v23  ;;  %v3021_v24 = vadd.f32 %v2957_v61, %v2573_v10  ;;  %v5153_v53 = vld [vmem:[%s6299_s19 + $0x168] sm:$0xff]  ;;  %v9351_v44 = vld [vmem:[#allocation59_spill] sm:$0xff] }
 0x274   : > { %v2989_v21 = vadd.f32 %v2925_v26, %v2541_v33  ;;  %v5013_v62 = vunpack.i.h.bf16 %v5011_v57  ;;  %v5012_v31 = vunpack.i.l.bf16 %v5011_v57  ;;  %3331 = vst [vmem:[%s6305_s0 + $0x40] sm:$0xff] %v3139_v38  ;;  %4636 = vmatprep.mubr.f32.mxu0 %v3139_v38  ;;  %3363 = vst [vmem:[%s6305_s0 + $0x140] sm:$0xff] %v3171_v48  ;;  %4684 = vmatprep.mubr.f32.mxu1 %v3171_v48  ;;  %v5154_v56 = vld [vmem:[%s6299_s19 + $0x60] sm:$0xff]  ;;  %v9352_v33 = vld [vmem:[#allocation99_spill] sm:$0xff] }
 0x275   : > { %v2928_v9 = vmul.f32 %v5152_v47, %v5017_v30  ;;  %v2960_v55 = vmul.f32 %v5153_v53, %v5018_v59  ;;  %4637 = vmatmul.mubr.f32.gmra.mxu0 %v3140_v23  ;;  %v3172_v20 = vsub.f32 %v3020_v51, %v8336_v2  ;;  %v3142_v39 = vsub.f32 %v2990_v28, %v9351_v44  ;;  %v5155_v40 = vld [vmem:[%s6299_s19 + $0x160] sm:$0xff]  ;;  %v2117_v19 = vpop.permute.xlu1 %2116  ;;  %v2112_v4 = vpop.permute.xlu0 %2111  ;;  %v8451_v2 = vld [vmem:[%s6272_s3 + $0x78] sm:$0xff]  ;;  %v8455_v26 = vld [vmem:[%s6272_s3 + $0x70] sm:$0xff] }
 0x276   : > { %v2927_v22 = vmul.f32 %v5154_v56, %v5012_v31  ;;  %v2959_v27 = vmul.f32 %v5155_v40, %v5013_v62  ;;  %v3141_v10 = vsub.f32 %v2989_v21, %v9352_v33  ;;  %v3173_v29 = vsub.f32 %v3021_v24, %v8347_v13  ;;  %v1768_v28 = vld [vmem:[%s6302_s15 + $0x188] sm:$0xff]  ;;  %v2546_v21 = vld [vmem:[%s6305_s0 + $0x78] sm:$0xff]  ;;  %v2577_v53 = vld [vmem:[%s6305_s0 + $0x170] sm:$0xff] }
 0x277   : > { %v2992_v36 = vadd.f32 %v2928_v9, %v2544_v49  ;;  %v3024_v23 = vadd.f32 %v2960_v55, %v2576_v17  ;;  %3364 = vst [vmem:[%s6305_s0 + $0x148] sm:$0xff] %v3172_v20  ;;  %4685 = vmatmul.mubr.f32.gmra.mxu1 %v3172_v20  ;;  %v2246_v51 = vmul.f32 %v8451_v2, %v2117_v19  ;;  %3334 = vst [vmem:[%s6305_s0 + $0x58] sm:$0xff] %v3142_v39  ;;  %v5159_v17 = vld [vmem:[%s6299_s19 + $0x78] sm:$0xff]  ;;  %v2545_v9 = vld [vmem:[%s6305_s0 + $0x70] sm:$0xff] }
 0x278   : > { %v2245_v1 = vmul.f32 %v8455_v26, %v2112_v4  ;;  %v2991_v61 = vadd.f32 %v2927_v22, %v2543_v46  ;;  %v3023_v14 = vadd.f32 %v2959_v27, %v2575_v7  ;;  %3333 = vst [vmem:[%s6305_s0 + $0x50] sm:$0xff] %v3141_v10  ;;  %4639 = vmatprep.mubr.f32.mxu0 %v3141_v10  ;;  %3365 = vst [vmem:[%s6305_s0 + $0x150] sm:$0xff] %v3173_v29  ;;  %v5160_v31 = vld [vmem:[%s6299_s19 + $0x178] sm:$0xff]  ;;  %v5162_v44 = vld [vmem:[%s6299_s19 + $0x70] sm:$0xff] }
 0x279   : > { %4687 = vmatprep.mubr.f32.mxu1 %v3173_v29  ;;  %v3174_v13 = vsub.f32 %v3022_v43, %v8344_v63  ;;  %v2310_v57 = vadd.f32 %v2246_v51, %v8302_v3  ;;  %4640 = vmatmul.mubr.f32.gmra.mxu0 %v3142_v39  ;;  %v3144_v38 = vsub.f32 %v2992_v36, %v7905_v35  ;;  %v5026_v59 = vpop.permute.xlu1 %5025  ;;  %v5021_v30 = vpop.permute.xlu0 %5020  ;;  %v1767_v43 = vld [vmem:[%s6302_s15 + $0x180] sm:$0xff]  ;;  %v5161_v55 = vld [vmem:[%s6225_s24 + $0x3] sm:$0x1] }
 0x27a   : > { %v2309_v12 = vadd.f32 %v2245_v1, %v8305_v37  ;;  %v3176_v48 = vsub.f32 %v3024_v23, %v8354_v15  ;;  %v3143_v63 = vsub.f32 %v2991_v61, %v7909_v11  ;;  %v3175_v3 = vsub.f32 %v3023_v14, %v8357_v18  ;;  %v5158_v37 = vld [vmem:[%s6225_s24 + $0x1] sm:$0x1]  ;;  %v5164_v4 = vld [vmem:[%s6272_s3 + $0x8] sm:$0xff]  ;;  %s9356_s24 = sld [smem:[#allocation42_spill]] }
 0x27b   : > { %3366 = vst [vmem:[%s6305_s0 + $0x158] sm:$0xff] %v3174_v13  ;;  %vm2520_vm2 = vcmp.ne.f32.partialorder %v5158_v37, 0.0  ;;  %3306 = vst [vmem:[%s6302_s15 + $0x178] sm:$0xff] %v2310_v57  ;;  %4688 = vmatmul.mubr.f32.gmra.mxu1 %v3174_v13  ;;  %v5028_v35 = vunpack.i.h.bf16 %v5026_v59  ;;  %v5027_v15 = vunpack.i.l.bf16 %v5026_v59  ;;  %v2578_v11 = vld [vmem:[%s6305_s0 + $0x178] sm:$0xff]  ;;  %v5023_v24 = vunpack.i.h.bf16 %v5021_v30 }
 0x27c   : > { %3305 = vst [vmem:[%s6302_s15 + $0x170] sm:$0xff] %v2309_v12  ;;  %3336 = vst [vmem:[%s6305_s0 + $0x68] sm:$0xff] %v3144_v38  ;;  %v5022_v18 = vunpack.i.l.bf16 %v5021_v30  ;;  %4642 = vmatprep.mubr.f32.mxu0 %v3143_v63  ;;  %4690 = vmatprep.mubr.f32.mxu1 %v3175_v3  ;;  %v1848_v49 = vmul.f32 %v8161_v8, %v1768_v28  ;;  %vm2522_vm3 = vcmp.ne.f32.partialorder %v5161_v55, 0.0  ;;  %v4481_v7 = vsel %vm2520_vm2, 1.0, %v9251_v16  ;;  %v5163_v8 = vld [vmem:[%s6299_s19 + $0x170] sm:$0xff]  ;;  %v9353_v61 = vld [vmem:[#allocation60_spill] sm:$0xff] }
 0x27d   : > { %3368 = vst [vmem:[%s6305_s0 + $0x168] sm:$0xff] %v3176_v48  ;;  %3335 = vst [vmem:[%s6305_s0 + $0x60] sm:$0xff] %v3143_v63  ;;  %v2930_v62 = vmul.f32 %v5159_v17, %v5027_v15  ;;  %v2962_v47 = vmul.f32 %v5160_v31, %v5028_v35  ;;  %4643 = vmatmul.mubr.f32.gmra.mxu0 %v3144_v38  ;;  %v1847_v46 = vmul.f32 %v8165_v54, %v1767_v43  ;;  %v2127_v22 = vpop.permute.xlu1 %2126  ;;  %v2122_v40 = vpop.permute.xlu0 %2121  ;;  %v2580_v43 = vld [vmem:[%s6305_s0 + $0x188] sm:$0xff]  ;;  %v5170_v55 = vld [vmem:[%s6299_s19 + $0x180] sm:$0xff] }
 0x27e   : > { %3367 = vst [vmem:[%s6305_s0 + $0x160] sm:$0xff] %v3175_v3  ;;  %v3114_v20 = vmul.f32 %v8291_v34, %v2310_v57  ;;  %v2929_v39 = vmul.f32 %v5162_v44, %v5022_v18  ;;  %v2961_v56 = vmul.f32 %v5163_v8, %v5023_v24  ;;  %v2248_v33 = vmul.f32 %v5164_v4, %v2127_v22  ;;  %v1770_v57 = vld [vmem:[%s6302_s15 + $0x198] sm:$0xff]  ;;  %v2548_v3 = vld [vmem:[%s6305_s0 + $0x88] sm:$0xff]  ;;  %v2547_v18 = vld [vmem:[%s6305_s0 + $0x80] sm:$0xff] }
 0x27f   : > { %v2994_v27 = vadd.f32 %v2930_v62, %v2546_v21  ;;  %v3026_v19 = vadd.f32 %v2962_v47, %v2578_v11  ;;  %4691 = vmatmul.mubr.f32.gmra.mxu1 %v3176_v48  ;;  %v2247_v54 = vmul.f32 %v8190_v52, %v2122_v40  ;;  %v3113_v10 = vmul.f32 %v8291_v34, %v2309_v12  ;;  %v9354_v12 = vld [vmem:[#allocation61_spill] sm:$0xff]  ;;  %v5165_v15 = vld [vmem:[%s6299_s19 + $0x88] sm:$0xff]  ;;  %v5171_v8 = vld [vmem:[%s6272_s3 + $0x18] sm:$0xff] }
 0x280   : > { %v2993_v29 = vadd.f32 %v2929_v39, %v2545_v9  ;;  %v3025_v36 = vadd.f32 %v2961_v56, %v2577_v53  ;;  %v4483_v23 = vsel %vm2522_vm3, 1.0, %v9251_v16  ;;  %v2312_v51 = vadd.f32 %v2248_v33, %v1848_v49  ;;  %v1769_v16 = vld [vmem:[%s6302_s15 + $0x190] sm:$0xff]  ;;  %v5166_v11 = vld [vmem:[%s6299_s19 + $0x188] sm:$0xff]  ;;  %v2579_v49 = vld [vmem:[%s6305_s0 + $0x180] sm:$0xff]  ;;  %s8712_s29 = sshll.u32 %s9356_s24, 13 }
 0x281   : > { %v2311_v1 = vadd.f32 %v2247_v54, %v1847_v46  ;;  %v3146_v14 = vsub.f32 %v2994_v27, %v9353_v61  ;;  %v3178_v13 = vsub.f32 %v3026_v19, %v3114_v20  ;;  %v8500_v52 = vrot.slane %v4481_v7, %v9343_v32  ;;  %v5036_v34 = vpop.permute.xlu1 %5035  ;;  %v5031_v63 = vpop.permute.xlu0 %5030  ;;  %v5167_v62 = vld [vmem:[%s6302_s15 + $0x88] sm:$0xff]  ;;  %v5168_v47 = vld [vmem:[%s6302_s15 + $0x80] sm:$0xff] }
 0x282   : > { %v3145_v38 = vsub.f32 %v2993_v29, %v9354_v12  ;;  %v3177_v48 = vsub.f32 %v3025_v36, %v3113_v10  ;;  %v8505_v28 = vrot.slane %v4483_v23, %v9343_v32  ;;  %3308 = vst [vmem:[%s6302_s15 + $0x188] sm:$0xff] %v2312_v51  ;;  %v5038_v59 = vunpack.i.h.bf16 %v5036_v34  ;;  %v5169_v53 = vld [vmem:[%s6299_s19 + $0x80] sm:$0xff]  ;;  %v1772_v10 = vld [vmem:[%s6302_s15 + $0x1a8] sm:$0xff] }
 0x283   : > { %3307 = vst [vmem:[%s6302_s15 + $0x180] sm:$0xff] %v2311_v1  ;;  %v5037_v30 = vunpack.i.l.bf16 %v5036_v34  ;;  %3338 = vst [vmem:[%s6305_s0 + $0x78] sm:$0xff] %v3146_v14  ;;  %v5033_v37 = vunpack.i.h.bf16 %v5031_v63  ;;  %v5032_v35 = vunpack.i.l.bf16 %v5031_v63  ;;  %v1850_v32 = vmul.f32 %v8198_v0, %v1770_v57  ;;  %v2582_v57 = vld [vmem:[%s6305_s0 + $0x198] sm:$0xff]  ;;  %v2549_v63 = vld [vmem:[%s6305_s0 + $0x90] sm:$0xff] }
 0x284   : > { %3370 = vst [vmem:[%s6305_s0 + $0x178] sm:$0xff] %v3178_v13  ;;  %3337 = vst [vmem:[%s6305_s0 + $0x70] sm:$0xff] %v3145_v38  ;;  %4645 = vmatprep.mubr.f32.mxu0 %v3145_v38  ;;  %4693 = vmatprep.mubr.f32.mxu1 %v3177_v48  ;;  %v2964_v24 = vmul.f32 %v5166_v11, %v5038_v59  ;;  %v1849_v17 = vmul.f32 %v8202_v58, %v1769_v16  ;;  %v5173_v59 = vld [vmem:[%s6299_s19 + $0x198] sm:$0xff]  ;;  %v5177_v11 = vld [vmem:[%s6299_s19 + $0x190] sm:$0xff] }
 0x285   : > { %3369 = vst [vmem:[%s6305_s0 + $0x170] sm:$0xff] %v3177_v48  ;;  %v2932_v21 = vmul.f32 %v5165_v15, %v5037_v30  ;;  %4646 = vmatmul.mubr.f32.gmra.mxu0 %v3146_v14  ;;  %4694 = vmatmul.mubr.f32.gmra.mxu1 %v3178_v13  ;;  %v3084_v31 = vmul.f32 %v5167_v62, %v8500_v52  ;;  %v2137_v7 = vpop.permute.xlu1 %2136  ;;  %v2132_v56 = vpop.permute.xlu0 %2131  ;;  %v2550_v13 = vld [vmem:[%s6305_s0 + $0x98] sm:$0xff] }
 0x286   : > { %v3083_v9 = vmul.f32 %v5168_v47, %v8500_v52  ;;  %v2931_v0 = vmul.f32 %v5169_v53, %v5032_v35  ;;  %v2963_v46 = vmul.f32 %v5170_v55, %v5033_v37  ;;  %v3116_v20 = vmul.f32 %v8505_v28, %v2312_v51  ;;  %v5172_v48 = vld [vmem:[%s6299_s19 + $0x98] sm:$0xff] }
 0x287   : > { %v2996_v44 = vadd.f32 %v2932_v21, %v2548_v3  ;;  %v3028_v39 = vadd.f32 %v2964_v24, %v2580_v43  ;;  %v2250_v58 = vmul.f32 %v5171_v8, %v2137_v7  ;;  %v3115_v22 = vmul.f32 %v8505_v28, %v2311_v1  ;;  %v1771_v1 = vld [vmem:[%s6302_s15 + $0x1a0] sm:$0xff]  ;;  %v2581_v3 = vld [vmem:[%s6305_s0 + $0x190] sm:$0xff]  ;;  %v5174_v37 = vld [vmem:[%s6302_s15 + $0x98] sm:$0xff] }
 0x288   : > { %v2995_v40 = vadd.f32 %v2931_v0, %v2547_v18  ;;  %v3027_v27 = vadd.f32 %v2963_v46, %v2579_v49  ;;  %v2249_v19 = vmul.f32 %v8217_v42, %v2132_v56  ;;  %v1852_v38 = vmul.f32 %v8225_v60, %v1772_v10  ;;  %v5176_v60 = vld [vmem:[%s6299_s19 + $0x90] sm:$0xff]  ;;  %v5179_v55 = vld [vmem:[%s6272_s3 + $0x20] sm:$0xff] }
 0x289   : > { %v2314_v4 = vadd.f32 %v2250_v58, %v1850_v32  ;;  %v3148_v33 = vsub.f32 %v2996_v44, %v3084_v31  ;;  %v3180_v54 = vsub.f32 %v3028_v39, %v3116_v20  ;;  %v1851_v43 = vmul.f32 %v8229_v25, %v1771_v1  ;;  %v5175_v32 = vld [vmem:[%s6302_s15 + $0x90] sm:$0xff]  ;;  %v5178_v31 = vld [vmem:[%s6272_s3 + $0x28] sm:$0xff]  ;;  %v1774_v39 = vld [vmem:[%s6302_s15 + $0x1b8] sm:$0xff] }
 0x28a   : > { %v2313_v29 = vadd.f32 %v2249_v19, %v1849_v17  ;;  %v5046_v36 = vpop.permute.xlu1 %5045  ;;  %v3147_v23 = vsub.f32 %v2995_v40, %v3083_v9  ;;  %v3179_v51 = vsub.f32 %v3027_v27, %v3115_v22  ;;  %v5041_v42 = vpop.permute.xlu0 %5040  ;;  %v3086_v35 = vmul.f32 %v5174_v37, %v8500_v52  ;;  %v1773_v40 = vld [vmem:[%s6302_s15 + $0x1b0] sm:$0xff]  ;;  %v5181_v1 = vld [vmem:[%s6299_s19 + $0x1a8] sm:$0xff] }
 0x28b   : > { %3310 = vst [vmem:[%s6302_s15 + $0x198] sm:$0xff] %v2314_v4  ;;  %v5048_v61 = vunpack.i.h.bf16 %v5046_v36  ;;  %v5047_v14 = vunpack.i.l.bf16 %v5046_v36  ;;  %3340 = vst [vmem:[%s6305_s0 + $0x88] sm:$0xff] %v3148_v33  ;;  %v5043_v34 = vunpack.i.h.bf16 %v5041_v42  ;;  %v5042_v12 = vunpack.i.l.bf16 %v5041_v42  ;;  %v2583_v42 = vld [vmem:[%s6305_s0 + $0x1a0] sm:$0xff]  ;;  %v5186_v37 = vld [vmem:[%s6272_s3 + $0x38] sm:$0xff] }
 0x28c   : > { %3372 = vst [vmem:[%s6305_s0 + $0x188] sm:$0xff] %v3180_v54  ;;  %3309 = vst [vmem:[%s6302_s15 + $0x190] sm:$0xff] %v2313_v29  ;;  %4648 = vmatprep.mubr.f32.mxu0 %v3147_v23  ;;  %4696 = vmatprep.mubr.f32.mxu1 %v3179_v51  ;;  %v3085_v15 = vmul.f32 %v5175_v32, %v8500_v52  ;;  %v3118_v49 = vmul.f32 %v8505_v28, %v2314_v4 }
 0x28d   : > { %3339 = vst [vmem:[%s6305_s0 + $0x80] sm:$0xff] %v3147_v23  ;;  %3371 = vst [vmem:[%s6305_s0 + $0x180] sm:$0xff] %v3179_v51  ;;  %v2934_v16 = vmul.f32 %v5172_v48, %v5047_v14  ;;  %v2966_v30 = vmul.f32 %v5173_v59, %v5048_v61  ;;  %4649 = vmatmul.mubr.f32.gmra.mxu0 %v3148_v33  ;;  %4697 = vmatmul.mubr.f32.gmra.mxu1 %v3180_v54  ;;  %v2552_v33 = vld [vmem:[%s6305_s0 + $0xa8] sm:$0xff]  ;;  %v2551_v14 = vld [vmem:[%s6305_s0 + $0xa0] sm:$0xff] }
 0x28e   : > { %v2933_v21 = vmul.f32 %v5176_v60, %v5042_v12  ;;  %v2965_v24 = vmul.f32 %v5177_v11, %v5043_v34  ;;  %v2147_v18 = vpop.permute.xlu1 %2146  ;;  %v2142_v47 = vpop.permute.xlu0 %2141  ;;  %v3117_v9 = vmul.f32 %v8505_v28, %v2313_v29  ;;  %v2584_v54 = vld [vmem:[%s6305_s0 + $0x1a8] sm:$0xff]  ;;  %v1854_v36 = vmul.f32 %v8245_v45, %v1774_v39  ;;  %v5183_v12 = vld [vmem:[%s6302_s15 + $0xa0] sm:$0xff] }
 0x28f   : > { %v2998_v17 = vadd.f32 %v2934_v16, %v2550_v13  ;;  %v3030_v62 = vadd.f32 %v2966_v30, %v2582_v57  ;;  %v2252_v25 = vmul.f32 %v5178_v31, %v2147_v18  ;;  %v2251_v46 = vmul.f32 %v5179_v55, %v2142_v47  ;;  %v5180_v23 = vld [vmem:[%s6299_s19 + $0xa8] sm:$0xff]  ;;  %v5184_v45 = vld [vmem:[%s6299_s19 + $0xa0] sm:$0xff] }
 0x290   : > { %v2997_v53 = vadd.f32 %v2933_v21, %v2549_v63  ;;  %v3029_v0 = vadd.f32 %v2965_v24, %v2581_v3  ;;  %v1853_v13 = vmul.f32 %v8249_v6, %v1773_v40  ;;  %v5182_v57 = vld [vmem:[%s6302_s15 + $0xa8] sm:$0xff]  ;;  %v5185_v16 = vld [vmem:[%s6299_s19 + $0x1a0] sm:$0xff]  ;;  %v2553_v40 = vld [vmem:[%s6305_s0 + $0xb0] sm:$0xff] }
 0x291   : > { %v2316_v7 = vadd.f32 %v2252_v25, %v1852_v38  ;;  %v3150_v20 = vsub.f32 %v2998_v17, %v3086_v35  ;;  %v3182_v44 = vsub.f32 %v3030_v62, %v3118_v49  ;;  %v2315_v8 = vadd.f32 %v2251_v46, %v1851_v43  ;;  %v5187_v21 = vld [vmem:[%s6272_s3 + $0x30] sm:$0xff]  ;;  %v2554_v46 = vld [vmem:[%s6305_s0 + $0xb8] sm:$0xff] }
 0x292   : > { %v5056_v58 = vpop.permute.xlu1 %5055  ;;  %v3149_v56 = vsub.f32 %v2997_v53, %v3085_v15  ;;  %v3181_v22 = vsub.f32 %v3029_v0, %v3117_v9  ;;  %v5051_v4 = vpop.permute.xlu0 %5050  ;;  %v3088_v34 = vmul.f32 %v5182_v57, %v8500_v52  ;;  %v3087_v38 = vmul.f32 %v5183_v12, %v8500_v52  ;;  %v1776_v17 = vld [vmem:[%s6302_s15 + $0x1c8] sm:$0xff]  ;;  %v1775_v9 = vld [vmem:[%s6302_s15 + $0x1c0] sm:$0xff] }
 0x293   : > { %3312 = vst [vmem:[%s6302_s15 + $0x1a8] sm:$0xff] %v2316_v7  ;;  %v5058_v27 = vunpack.i.h.bf16 %v5056_v58  ;;  %v5057_v19 = vunpack.i.l.bf16 %v5056_v58  ;;  %3342 = vst [vmem:[%s6305_s0 + $0x98] sm:$0xff] %v3150_v20  ;;  %v5053_v10 = vunpack.i.h.bf16 %v5051_v4  ;;  %v5052_v29 = vunpack.i.l.bf16 %v5051_v4  ;;  %v5190_v4 = vld [vmem:[%s6302_s15 + $0xb8] sm:$0xff] }
 0x294   : > { %3374 = vst [vmem:[%s6305_s0 + $0x198] sm:$0xff] %v3182_v44  ;;  %3311 = vst [vmem:[%s6302_s15 + $0x1a0] sm:$0xff] %v2315_v8  ;;  %4651 = vmatprep.mubr.f32.mxu0 %v3149_v56  ;;  %4699 = vmatprep.mubr.f32.mxu1 %v3181_v22  ;;  %v3120_v63 = vmul.f32 %v8505_v28, %v2316_v7  ;;  %v3119_v32 = vmul.f32 %v8505_v28, %v2315_v8  ;;  %v2586_v7 = vld [vmem:[%s6305_s0 + $0x1b8] sm:$0xff] }
 0x295   : > { %3341 = vst [vmem:[%s6305_s0 + $0x90] sm:$0xff] %v3149_v56  ;;  %3373 = vst [vmem:[%s6305_s0 + $0x190] sm:$0xff] %v3181_v22  ;;  %v2936_v51 = vmul.f32 %v5180_v23, %v5057_v19  ;;  %v2968_v61 = vmul.f32 %v5181_v1, %v5058_v27  ;;  %4652 = vmatmul.mubr.f32.gmra.mxu0 %v3150_v20  ;;  %4700 = vmatmul.mubr.f32.gmra.mxu1 %v3182_v44  ;;  %v5188_v8 = vld [vmem:[%s6299_s19 + $0xb8] sm:$0xff]  ;;  %v2585_v27 = vld [vmem:[%s6305_s0 + $0x1b0] sm:$0xff] }
 0x296   : > { %v2935_v48 = vmul.f32 %v5184_v45, %v5052_v29  ;;  %v2967_v59 = vmul.f32 %v5185_v16, %v5053_v10  ;;  %v2157_v30 = vpop.permute.xlu1 %2156  ;;  %v2152_v35 = vpop.permute.xlu0 %2151  ;;  %v1856_v39 = vmul.f32 %v8262_v5, %v1776_v17  ;;  %v5189_v56 = vld [vmem:[%s6299_s19 + $0x1b8] sm:$0xff]  ;;  %v1855_v19 = vmul.f32 %v8266_v50, %v1775_v9  ;;  %v5192_v5 = vld [vmem:[%s6299_s19 + $0xb0] sm:$0xff] }
 0x297   : > { %v3000_v3 = vadd.f32 %v2936_v51, %v2552_v33  ;;  %v3032_v43 = vadd.f32 %v2968_v61, %v2584_v54  ;;  %v2254_v6 = vmul.f32 %v5186_v37, %v2157_v30  ;;  %v2253_v11 = vmul.f32 %v5187_v21, %v2152_v35  ;;  %v5191_v54 = vld [vmem:[%s6302_s15 + $0xb0] sm:$0xff]  ;;  %v1778_v30 = vld [vmem:[%s6302_s15 + $0x1d8] sm:$0xff]  ;;  %v2588_v21 = vld [vmem:[%s6305_s0 + $0x1c8] sm:$0xff] }
 0x298   : > { %v2999_v15 = vadd.f32 %v2935_v48, %v2551_v14  ;;  %v3031_v60 = vadd.f32 %v2967_v59, %v2583_v42  ;;  %v3090_v33 = vmul.f32 %v5190_v4, %v8500_v52  ;;  %v3089_v10 = vmul.f32 %v5191_v54, %v8500_v52  ;;  %v5194_v42 = vld [vmem:[%s6272_s3 + $0x48] sm:$0xff]  ;;  %v9355_v9 = vld [vmem:[#allocation64_spill] sm:$0xff] }
 0x299   : > { %v2318_v24 = vadd.f32 %v2254_v6, %v1854_v36  ;;  %v3152_v18 = vsub.f32 %v3000_v3, %v3088_v34  ;;  %v3184_v49 = vsub.f32 %v3032_v43, %v3120_v63  ;;  %v2317_v62 = vadd.f32 %v2253_v11, %v1853_v13  ;;  %v5193_v36 = vld [vmem:[%s6299_s19 + $0x1b0] sm:$0xff] }
 0x29a   : > { %v5066_v31 = vpop.permute.xlu1 %5065  ;;  %v3151_v25 = vsub.f32 %v2999_v15, %v3087_v38  ;;  %v3183_v47 = vsub.f32 %v3031_v60, %v3119_v32  ;;  %v5061_v55 = vpop.permute.xlu0 %5060  ;;  %v5195_v38 = vld [vmem:[%s6272_s3 + $0x40] sm:$0xff]  ;;  %v1777_v6 = vld [vmem:[%s6302_s15 + $0x1d0] sm:$0xff]  ;;  %v2556_v60 = vld [vmem:[%s6305_s0 + $0xc8] sm:$0xff] }
 0x29b   : > { %3314 = vst [vmem:[%s6302_s15 + $0x1b8] sm:$0xff] %v2318_v24  ;;  %v5068_v53 = vunpack.i.h.bf16 %v5066_v31  ;;  %v5067_v0 = vunpack.i.l.bf16 %v5066_v31  ;;  %3344 = vst [vmem:[%s6305_s0 + $0xa8] sm:$0xff] %v3152_v18  ;;  %v5063_v20 = vunpack.i.h.bf16 %v5061_v55  ;;  %v5062_v44 = vunpack.i.l.bf16 %v5061_v55 }
 0x29c   : > { %3376 = vst [vmem:[%s6305_s0 + $0x1a8] sm:$0xff] %v3184_v49  ;;  %3313 = vst [vmem:[%s6302_s15 + $0x1b0] sm:$0xff] %v2317_v62  ;;  %4654 = vmatprep.mubr.f32.mxu0 %v3151_v25  ;;  %4702 = vmatprep.mubr.f32.mxu1 %v3183_v47  ;;  %v3122_v1 = vmul.f32 %v8505_v28, %v2318_v24  ;;  %v3121_v57 = vmul.f32 %v8505_v28, %v2317_v62  ;;  %v5197_v62 = vld [vmem:[%s6299_s19 + $0x1c8] sm:$0xff] }
 0x29d   : > { %3343 = vst [vmem:[%s6305_s0 + $0xa0] sm:$0xff] %v3151_v25  ;;  %3375 = vst [vmem:[%s6305_s0 + $0x1a0] sm:$0xff] %v3183_v47  ;;  %v2938_v58 = vmul.f32 %v5188_v8, %v5067_v0  ;;  %v2970_v22 = vmul.f32 %v5189_v56, %v5068_v53  ;;  %4655 = vmatmul.mubr.f32.gmra.mxu0 %v3152_v18  ;;  %4703 = vmatmul.mubr.f32.gmra.mxu1 %v3184_v49  ;;  %v5196_v49 = vld [vmem:[%s6299_s19 + $0xc8] sm:$0xff]  ;;  %v2555_v25 = vld [vmem:[%s6305_s0 + $0xc0] sm:$0xff] }
 0x29e   : > { %v2937_v29 = vmul.f32 %v5192_v5, %v5062_v44  ;;  %v2969_v23 = vmul.f32 %v5193_v36, %v5063_v20  ;;  %v2167_v51 = vpop.permute.xlu1 %2166  ;;  %v1858_v18 = vmul.f32 %v8277_v41, %v1778_v30  ;;  %v2587_v47 = vld [vmem:[%s6305_s0 + $0x1c0] sm:$0xff]  ;;  %v1857_v53 = vmul.f32 %v9355_v9, %v1777_v6  ;;  %v5198_v0 = vld [vmem:[%s6302_s15 + $0xc8] sm:$0xff]  ;;  %v5205_v30 = vld [vmem:[%s6299_s19 + $0xd8] sm:$0xff] }
 0x29f   : > { %v3002_v61 = vadd.f32 %v2938_v58, %v2554_v46  ;;  %v3034_v14 = vadd.f32 %v2970_v22, %v2586_v7  ;;  %v2256_v50 = vmul.f32 %v5194_v42, %v2167_v51  ;;  %v2162_v13 = vpop.permute.xlu0 %2161  ;;  %v3092_v55 = vmul.f32 %v5198_v0, %v8500_v52  ;;  %v5199_v46 = vld [vmem:[%s6302_s15 + $0xc0] sm:$0xff]  ;;  %v1780_v51 = vld [vmem:[%s6302_s15 + $0x1e8] sm:$0xff]  ;;  %v2589_v6 = vld [vmem:[%s6305_s0 + $0x1d0] sm:$0xff] }
 0x2a0   : > { %v3001_v34 = vadd.f32 %v2937_v29, %v2553_v40  ;;  %v3033_v12 = vadd.f32 %v2969_v23, %v2585_v27  ;;  %v2255_v45 = vmul.f32 %v5195_v38, %v2162_v13  ;;  %v3091_v7 = vmul.f32 %v5199_v46, %v8500_v52  ;;  %v5200_v41 = vld [vmem:[%s6299_s19 + $0xc0] sm:$0xff]  ;;  %v5202_v40 = vld [vmem:[%s6272_s3 + $0x58] sm:$0xff] }
 0x2a1   : > { %v2320_v48 = vadd.f32 %v2256_v50, %v1856_v39  ;;  %v3154_v16 = vsub.f32 %v3002_v61, %v3090_v33  ;;  %v3186_v59 = vsub.f32 %v3034_v14, %v3122_v1  ;;  %v5201_v44 = vld [vmem:[%s6299_s19 + $0x1c0] sm:$0xff]  ;;  %v2590_v38 = vld [vmem:[%s6305_s0 + $0x1d8] sm:$0xff] }
 0x2a2   : > { %v2319_v63 = vadd.f32 %v2255_v45, %v1855_v19  ;;  %v3153_v43 = vsub.f32 %v3001_v34, %v3089_v10  ;;  %v3185_v37 = vsub.f32 %v3033_v12, %v3121_v57  ;;  %v5203_v10 = vld [vmem:[%s6272_s3 + $0x50] sm:$0xff]  ;;  %v1779_v50 = vld [vmem:[%s6302_s15 + $0x1e0] sm:$0xff]  ;;  %v2558_v12 = vld [vmem:[%s6305_s0 + $0xd8] sm:$0xff] }
 0x2a3   : > { %v5076_v3 = vpop.permute.xlu1 %5075  ;;  %3316 = vst [vmem:[%s6302_s15 + $0x1c8] sm:$0xff] %v2320_v48  ;;  %v5071_v15 = vpop.permute.xlu0 %5070  ;;  %3346 = vst [vmem:[%s6305_s0 + $0xb8] sm:$0xff] %v3154_v16  ;;  %v3124_v58 = vmul.f32 %v8505_v28, %v2320_v48  ;;  %v5212_v9 = vld [vmem:[%s6272_s3 + $0x68] sm:$0xff] }
 0x2a4   : > { %v5078_v35 = vunpack.i.h.bf16 %v5076_v3  ;;  %v5077_v32 = vunpack.i.l.bf16 %v5076_v3  ;;  %3378 = vst [vmem:[%s6305_s0 + $0x1b8] sm:$0xff] %v3186_v59  ;;  %3315 = vst [vmem:[%s6302_s15 + $0x1c0] sm:$0xff] %v2319_v63  ;;  %v5073_v11 = vunpack.i.h.bf16 %v5071_v15  ;;  %v5072_v24 = vunpack.i.l.bf16 %v5071_v15  ;;  %4657 = vmatprep.mubr.f32.mxu0 %v3153_v43  ;;  %4705 = vmatprep.mubr.f32.mxu1 %v3185_v37  ;;  %v5206_v3 = vld [vmem:[%s6299_s19 + $0x1d8] sm:$0xff] }
 0x2a5   : > { %3345 = vst [vmem:[%s6305_s0 + $0xb0] sm:$0xff] %v3153_v43  ;;  %3377 = vst [vmem:[%s6305_s0 + $0x1b0] sm:$0xff] %v3185_v37  ;;  %4658 = vmatmul.mubr.f32.gmra.mxu0 %v3154_v16  ;;  %4706 = vmatmul.mubr.f32.gmra.mxu1 %v3186_v59  ;;  %v3123_v4 = vmul.f32 %v8505_v28, %v2319_v63  ;;  %v5204_v16 = vld [vmem:[%s6263_s21 + $0x68] sm:$0xff]  ;;  %v2557_v37 = vld [vmem:[%s6305_s0 + $0xd0] sm:$0xff] }
 0x2a6   : > { %v2940_v17 = vmul.f32 %v5196_v49, %v5077_v32  ;;  %v2972_v31 = vmul.f32 %v5197_v62, %v5078_v35  ;;  %v2939_v20 = vmul.f32 %v5200_v41, %v5072_v24  ;;  %v2971_v39 = vmul.f32 %v5201_v44, %v5073_v11  ;;  %v5207_v35 = vld [vmem:[%s6263_s21 + $0x60] sm:$0xff]  ;;  %v5210_v24 = vld [vmem:[%s6299_s19 + $0xd0] sm:$0xff] }
 0x2a7   : > { %v2177_v8 = vpop.permute.xlu1 %2176  ;;  %v2172_v19 = vpop.permute.xlu0 %2171  ;;  %v1860_v59 = vmul.f32 %v5204_v16, %v1780_v51  ;;  %v1859_v32 = vmul.f32 %v5207_v35, %v1779_v50  ;;  %v5208_v15 = vld [vmem:[%s6302_s15 + $0xd8] sm:$0xff]  ;;  %v5211_v49 = vld [vmem:[%s6299_s19 + $0x1d0] sm:$0xff]  ;;  %v5217_v50 = vld [vmem:[%s6299_s19 + $0x1e8] sm:$0xff] }
 0x2a8   : > { %v3004_v56 = vadd.f32 %v2940_v17, %v2556_v60  ;;  %v3036_v22 = vadd.f32 %v2972_v31, %v2588_v21  ;;  %v2258_v27 = vmul.f32 %v5202_v40, %v2177_v8  ;;  %v3003_v33 = vadd.f32 %v2939_v20, %v2555_v25  ;;  %v5209_v21 = vld [vmem:[%s6302_s15 + $0xd0] sm:$0xff]  ;;  %v5213_v41 = vld [vmem:[%s6272_s3 + $0x60] sm:$0xff]  ;;  %s3865_s3 = scalar_lea.sflag [#allocation21], %s6232_s11 }
 0x2a9   : > { %v3035_v54 = vadd.f32 %v2971_v39, %v2587_v47  ;;  %v2257_v5 = vmul.f32 %v5203_v10, %v2172_v19  ;;  %v3094_v60 = vmul.f32 %v5208_v15, %v8500_v52  ;;  %v3093_v11 = vmul.f32 %v5209_v21, %v8500_v52  ;;  %v2560_v10 = vld [vmem:[%s6305_s0 + $0xe8] sm:$0xff]  ;;  %v5220_v16 = vld [vmem:[%s6299_s19 + $0x1e0] sm:$0xff] }
 0x2aa   : > { %v2322_v29 = vadd.f32 %v2258_v27, %v1858_v18  ;;  %v3156_v36 = vsub.f32 %v3004_v56, %v3092_v55  ;;  %v3188_v23 = vsub.f32 %v3036_v22, %v3124_v58  ;;  %v3155_v14 = vsub.f32 %v3003_v33, %v3091_v7  ;;  %v1782_v58 = vld [vmem:[%s6302_s15 + $0x1f8] sm:$0xff] }
 0x2ab   : > { %v2321_v1 = vadd.f32 %v2257_v5, %v1857_v53  ;;  %v5086_v61 = vpop.permute.xlu1 %5085  ;;  %v3187_v42 = vsub.f32 %v3035_v54, %v3123_v4  ;;  %v5081_v34 = vpop.permute.xlu0 %5080  ;;  %v1781_v54 = vld [vmem:[%s6302_s15 + $0x1f0] sm:$0xff]  ;;  %v2592_v5 = vld [vmem:[%s6305_s0 + $0x1e8] sm:$0xff] }
 0x2ac   : > { %3318 = vst [vmem:[%s6302_s15 + $0x1d8] sm:$0xff] %v2322_v29  ;;  %v5088_v13 = vunpack.i.h.bf16 %v5086_v61  ;;  %v5087_v57 = vunpack.i.l.bf16 %v5086_v61  ;;  %3348 = vst [vmem:[%s6305_s0 + $0xc8] sm:$0xff] %v3156_v36  ;;  %v5083_v45 = vunpack.i.h.bf16 %v5081_v34  ;;  %v5082_v48 = vunpack.i.l.bf16 %v5081_v34  ;;  %4660 = vmatprep.mubr.f32.mxu0 %v3155_v14  ;;  %v2591_v34 = vld [vmem:[%s6305_s0 + $0x1e0] sm:$0xff] }
 0x2ad   : > { %3380 = vst [vmem:[%s6305_s0 + $0x1c8] sm:$0xff] %v3188_v23  ;;  %3317 = vst [vmem:[%s6302_s15 + $0x1d0] sm:$0xff] %v2321_v1  ;;  %4708 = vmatprep.mubr.f32.mxu1 %v3187_v42  ;;  %4661 = vmatmul.mubr.f32.gmra.mxu0 %v3156_v36  ;;  %v3126_v31 = vmul.f32 %v8505_v28, %v2322_v29  ;;  %v3125_v55 = vmul.f32 %v8505_v28, %v2321_v1  ;;  %v5215_v1 = vld [vmem:[%s6302_s15 + $0xe8] sm:$0xff] }
 0x2ae   : > { %3347 = vst [vmem:[%s6305_s0 + $0xc0] sm:$0xff] %v3155_v14  ;;  %3379 = vst [vmem:[%s6305_s0 + $0x1c0] sm:$0xff] %v3187_v42  ;;  %v2942_v63 = vmul.f32 %v5205_v30, %v5087_v57  ;;  %v2974_v43 = vmul.f32 %v5206_v3, %v5088_v13  ;;  %4709 = vmatmul.mubr.f32.gmra.mxu1 %v3188_v23  ;;  %v2941_v18 = vmul.f32 %v5210_v24, %v5082_v48  ;;  %v5214_v23 = vld [vmem:[%s6263_s21 + $0x78] sm:$0xff]  ;;  %v5216_v14 = vld [vmem:[%s6299_s19 + $0xe8] sm:$0xff] }
 0x2af   : > { %v2973_v17 = vmul.f32 %v5211_v49, %v5083_v45  ;;  %v2187_v62 = vpop.permute.xlu1 %2186  ;;  %v1862_v51 = vmul.f32 %v5214_v23, %v1782_v58  ;;  %v3096_v61 = vmul.f32 %v5215_v1, %v8500_v52  ;;  %v2559_v57 = vld [vmem:[%s6305_s0 + $0xe0] sm:$0xff] }
 0x2b0   : > { %v3006_v25 = vadd.f32 %v2942_v63, %v2558_v12  ;;  %v3038_v47 = vadd.f32 %v2974_v43, %v2590_v38  ;;  %v2260_v53 = vmul.f32 %v5212_v9, %v2187_v62  ;;  %v2182_v0 = vpop.permute.xlu0 %2181  ;;  %v3005_v46 = vadd.f32 %v2941_v18, %v2557_v37  ;;  %v5218_v12 = vld [vmem:[%s6302_s15 + $0xe0] sm:$0xff]  ;;  %v5221_v63 = vld [vmem:[%s6263_s21 + $0x70] sm:$0xff]  ;;  %s8718_s21 = scalar_lea.hbm %s9358_s2, %s8712_s29 }
 0x2b1   : > { %v3037_v7 = vadd.f32 %v2973_v17, %v2589_v6  ;;  %v2259_v20 = vmul.f32 %v5213_v41, %v2182_v0  ;;  %v3095_v38 = vmul.f32 %v5218_v12, %v8500_v52  ;;  %v5219_v45 = vld [vmem:[%s6299_s19 + $0xe0] sm:$0xff]  ;;  %v1861_v3 = vmul.f32 %v5221_v63, %v1781_v54  ;;  %v5223_v41 = vld [vmem:[%s6299_s19 + $0x1f8] sm:$0xff]  ;;  %v5227_v54 = vld [vmem:[%s6302_s15 + $0xf0] sm:$0xff] }
 0x2b2   : > { %v2324_v44 = vadd.f32 %v2260_v53, %v1860_v59  ;;  %v3158_v39 = vsub.f32 %v3006_v25, %v3094_v60  ;;  %v3190_v8 = vsub.f32 %v3038_v47, %v3126_v31  ;;  %v3157_v40 = vsub.f32 %v3005_v46, %v3093_v11  ;;  %v2594_v53 = vld [vmem:[%s6305_s0 + $0x1f8] sm:$0xff] }
 0x2b3   : > { %v2323_v56 = vadd.f32 %v2259_v20, %v1859_v32  ;;  %v5096_v22 = vpop.permute.xlu1 %5095  ;;  %v3189_v27 = vsub.f32 %v3037_v7, %v3125_v55  ;;  %v5222_v46 = vld [vmem:[%s6299_s19 + $0xf8] sm:$0xff] }
 0x2b4   : > { %3320 = vst [vmem:[%s6302_s15 + $0x1e8] sm:$0xff] %v2324_v44  ;;  %v5098_v19 = vunpack.i.h.bf16 %v5096_v22  ;;  %v5097_v4 = vunpack.i.l.bf16 %v5096_v22  ;;  %v5091_v33 = vpop.permute.xlu0 %5090  ;;  %3350 = vst [vmem:[%s6305_s0 + $0xd8] sm:$0xff] %v3158_v39  ;;  %4663 = vmatprep.mubr.f32.mxu0 %v3157_v40  ;;  %v3128_v43 = vmul.f32 %v8505_v28, %v2324_v44  ;;  %v2561_v44 = vld [vmem:[%s6305_s0 + $0xf0] sm:$0xff] }
 0x2b5   : > { %3382 = vst [vmem:[%s6305_s0 + $0x1d8] sm:$0xff] %v3190_v8  ;;  %3319 = vst [vmem:[%s6302_s15 + $0x1e0] sm:$0xff] %v2323_v56  ;;  %v5093_v29 = vunpack.i.h.bf16 %v5091_v33  ;;  %v5092_v36 = vunpack.i.l.bf16 %v5091_v33  ;;  %4711 = vmatprep.mubr.f32.mxu1 %v3189_v27  ;;  %4664 = vmatmul.mubr.f32.gmra.mxu0 %v3158_v39  ;;  %v3127_v15 = vmul.f32 %v8505_v28, %v2323_v56  ;;  %v2593_v39 = vld [vmem:[%s6305_s0 + $0x1f0] sm:$0xff] }
 0x2b6   : > { %3349 = vst [vmem:[%s6305_s0 + $0xd0] sm:$0xff] %v3157_v40  ;;  %3381 = vst [vmem:[%s6305_s0 + $0x1d0] sm:$0xff] %v3189_v27  ;;  %v2944_v42 = vmul.f32 %v5216_v14, %v5097_v4  ;;  %v2976_v13 = vmul.f32 %v5217_v50, %v5098_v19  ;;  %4712 = vmatmul.mubr.f32.gmra.mxu1 %v3190_v8  ;;  %v5224_v8 = vld [vmem:[%s6299_s19 + $0xf0] sm:$0xff]  ;;  %v5226_v40 = vld [vmem:[%s6302_s15 + $0xf8] sm:$0xff] }
 0x2b7   : > { %v2943_v48 = vmul.f32 %v5219_v45, %v5092_v36  ;;  %v2975_v59 = vmul.f32 %v5220_v16, %v5093_v29  ;;  %v2197_v30 = vpop.permute.xlu1 %2196  ;;  %v5225_v56 = vld [vmem:[%s6299_s19 + $0x1f0] sm:$0xff]  ;;  %v3098_v27 = vmul.f32 %v5226_v40, %v8500_v52 }
 0x2b8   : > { %v3008_v37 = vadd.f32 %v2944_v42, %v2560_v10  ;;  %v3040_v6 = vadd.f32 %v2976_v13, %v2592_v5  ;;  %v2262_v35 = vmul.f32 %v8451_v2, %v2197_v30  ;;  %v2192_v32 = vpop.permute.xlu0 %2191  ;;  %v3097_v10 = vmul.f32 %v5227_v54, %v8500_v52 }
 0x2b9   : > { %v3007_v60 = vadd.f32 %v2943_v48, %v2559_v57  ;;  %v3039_v21 = vadd.f32 %v2975_v59, %v2591_v34  ;;  %v2261_v11 = vmul.f32 %v8455_v26, %v2192_v32  ;;  %v2562_v26 = vld [vmem:[%s6305_s0 + $0xf8] sm:$0xff] }
 0x2ba   : > { %v2326_v24 = vadd.f32 %v2262_v35, %v1862_v51  ;;  %v3160_v18 = vsub.f32 %v3008_v37, %v3096_v61  ;;  %v3192_v49 = vsub.f32 %v3040_v6, %v3128_v43 }
 0x2bb   : > { %v2325_v17 = vadd.f32 %v2261_v11, %v1861_v3  ;;  %v5106_v62 = vpop.permute.xlu1 %5105  ;;  %v3159_v2 = vsub.f32 %v3007_v60, %v3095_v38  ;;  %v3191_v31 = vsub.f32 %v3039_v21, %v3127_v15 }
 0x2bc   : > { %3322 = vst [vmem:[%s6302_s15 + $0x1f8] sm:$0xff] %v2326_v24  ;;  %v5108_v25 = vunpack.i.h.bf16 %v5106_v62  ;;  %v5107_v47 = vunpack.i.l.bf16 %v5106_v62  ;;  %v5101_v9 = vpop.permute.xlu0 %5100  ;;  %3352 = vst [vmem:[%s6305_s0 + $0xe8] sm:$0xff] %v3160_v18  ;;  %v3130_v19 = vmul.f32 %v8505_v28, %v2326_v24 }
 0x2bd   : > { %3384 = vst [vmem:[%s6305_s0 + $0x1e8] sm:$0xff] %v3192_v49  ;;  %3321 = vst [vmem:[%s6302_s15 + $0x1f0] sm:$0xff] %v2325_v17  ;;  %v5103_v0 = vunpack.i.h.bf16 %v5101_v9  ;;  %v5102_v55 = vunpack.i.l.bf16 %v5101_v9  ;;  %4666 = vmatprep.mubr.f32.mxu0 %v3159_v2  ;;  %4714 = vmatprep.mubr.f32.mxu1 %v3191_v31  ;;  %v3129_v5 = vmul.f32 %v8505_v28, %v2325_v17 }
 0x2be   : > { %3351 = vst [vmem:[%s6305_s0 + $0xe0] sm:$0xff] %v3159_v2  ;;  %3383 = vst [vmem:[%s6305_s0 + $0x1e0] sm:$0xff] %v3191_v31  ;;  %v2946_v7 = vmul.f32 %v5222_v46, %v5107_v47  ;;  %v2978_v20 = vmul.f32 %v5223_v41, %v5108_v25  ;;  %4667 = vmatmul.mubr.f32.gmra.mxu0 %v3160_v18  ;;  %4715 = vmatmul.mubr.f32.gmra.mxu1 %v3192_v49 }
 0x2bf   : > { %v2945_v58 = vmul.f32 %v5224_v8, %v5102_v55  ;;  %v2977_v22 = vmul.f32 %v5225_v56, %v5103_v0 }
 0x2c0   : > { %v3010_v4 = vadd.f32 %v2946_v7, %v2562_v26  ;;  %v3042_v33 = vadd.f32 %v2978_v20, %v2594_v53 }
 0x2c1   : > { %v3009_v29 = vadd.f32 %v2945_v58, %v2561_v44  ;;  %v3041_v36 = vadd.f32 %v2977_v22, %v2593_v39 }
 0x2c2   : > { %v3162_v23 = vsub.f32 %v3010_v4, %v3098_v27  ;;  %v3194_v51 = vsub.f32 %v3042_v33, %v3130_v19 }
 0x2c3   : > { %v3161_v1 = vsub.f32 %v3009_v29, %v3097_v10  ;;  %v3193_v61 = vsub.f32 %v3041_v36, %v3129_v5 }
 0x2c4   : > { %3354 = vst [vmem:[%s6305_s0 + $0xf8] sm:$0xff] %v3162_v23  ;;  %3386 = vst [vmem:[%s6305_s0 + $0x1f8] sm:$0xff] %v3194_v51 }
 0x2c5   : > { %3353 = vst [vmem:[%s6305_s0 + $0xf0] sm:$0xff] %v3161_v1  ;;  %4669 = vmatprep.mubr.f32.mxu0 %v3161_v1  ;;  %3385 = vst [vmem:[%s6305_s0 + $0x1f0] sm:$0xff] %v3193_v61  ;;  %4717 = vmatprep.mubr.f32.mxu1 %v3193_v61 }
 0x2c6   : > { %4670 = vmatmul.mubr.f32.gmra.mxu0 %v3162_v23  ;;  %4718 = vmatmul.mubr.f32.gmra.mxu1 %v3194_v51 }
 0x2c7   : > { %5524 = shalt.err (!%p5521_p5)
}
 0x2c8   : > { %s5525_s7 = scalar_lea.hbm %s8718_s21, 8192  ;;  %s5529_s16 = scalar_lea.hbm %s9358_s2, 16384 }
 0x2c9   : > { %p5526_p1 = scmp.ne.s32.totalorder %s8718_s21, %s5525_s7  ;;  %p5530_p8 = scmp.lt.s32.totalorder %s8718_s21, %s9358_s2 }
 0x2ca   : > { %p5531_p7 = scmp.lt.s32.totalorder %s5529_s16, %s5525_s7 }
 0x2cb   : > { %p5527_p13 = pnand %p5526_p1, %p9359_p3 }
 0x2cc   : > { %p5532_p10 = por %p5531_p7, %p5530_p8 }
 0x2cd   : > { %p5528_p4 = pneg %p5527_p13 }
 0x2cf   : > { %p5533_p11 = pnand %p5532_p10, %p5528_p4 }
 0x2d1   : > { %5536 = shalt.err (!%p5533_p11)
}
 0x2d2   : > { %s5780_s19 = smov 128   ;;  %s5781_s22 = smov 8  }
 0x2d3   : > { %4773 = dma.vmem_to_hbm [thread:$0]  (%p9359_p3), %s8721_s26, 8192, %s8718_s21, %s3865_s3, %s5780_s19, %s5780_s19, %s5781_s22  }
 0x2d4   : > { %s9360_s17 = sld [smem:[#allocation113_spill]]  ;;  %s3930_s7 = sshll.u32 %s6302_s15, 4  ;;  %s8756_s7 = int_to_ptr.vmem [resolvable:$true] %s3930_s7 }
 0x2d5   : > { %s9362_s16 = sld [smem:[#allocation114_spill]]  ;;  %s5537_s5 = scalar_lea.vmem %s8756_s7, 8192 }
 0x2d6   : > { %p5538_p0 = scmp.ne.s32.totalorder %s8756_s7, %s5537_s5  ;;  %s5782_s21 = smov [#allocation22]  }
 0x2d7   : > { %s5541_s26 = sshll.u32 %s5782_s21, 4  ;;  %s5542_s26 = int_to_ptr.vmem [resolvable:$false] %s5541_s26 }
 0x2d8   : > { %p5539_p9 = pnand %p5538_p0, %p9359_p3  ;;  %s5543_s13 = scalar_lea.vmem %s5542_s26, 16384 }
 0x2d9   : > { %p5544_p12 = scmp.lt.s32.totalorder %s8756_s7, %s5542_s26  ;;  %p5545_p6 = scmp.lt.s32.totalorder %s5543_s13, %s5537_s5 }
 0x2da   : > { %s9361_s12 = smov %s9360_s17  ;;  %s8753_s27 = scalar_lea.hbm %s9360_s17, %s8712_s29 }
 0x2db   : > { %s9363_s8 = smov %s9362_s16  ;;  %s8762_s18 = scalar_lea.hbm %s9362_s16, %s8712_s29 }
 0x2dc   : > { %p5540_p2 = pneg %p5539_p9  ;;  %p5546_p5 = por %p5545_p6, %p5544_p12 }
 0x2de   : > { %p5547_p1 = pnand %p5546_p5, %p5540_p2 }
 0x2e0   : > { %5550 = shalt.err (!%p5547_p1)
}
 0x2e1   : > { %s5551_s15 = scalar_lea.hbm %s8753_s27, 8192  ;;  %s5555_s17 = scalar_lea.hbm %s9361_s12, 16384 }
 0x2e2   : > { %p5552_p13 = scmp.ne.s32.totalorder %s8753_s27, %s5551_s15  ;;  %p5556_p7 = scmp.lt.s32.totalorder %s8753_s27, %s9361_s12 }
 0x2e3   : > { %p5557_p10 = scmp.lt.s32.totalorder %s5555_s17, %s5551_s15 }
 0x2e4   : > { %p5553_p4 = pnand %p5552_p13, %p9359_p3 }
 0x2e5   : > { %p5558_p11 = por %p5557_p10, %p5556_p7 }
 0x2e6   : > { %p5554_p8 = pneg %p5553_p4 }
 0x2e8   : > { %p5559_p0 = pnand %p5558_p11, %p5554_p8 }
 0x2ea   : > { %5562 = shalt.err (!%p5559_p0)
}
 0x2eb   : > { %4774 = dma.vmem_to_hbm [thread:$0]  (%p9359_p3), %s8756_s7, 8192, %s8753_s27, %s3865_s3, %s5780_s19, %s5780_s19, %s5781_s22  }
 0x2ec   : > { %s3949_s5 = sshll.u32 %s6305_s0, 4  ;;  %s3875_s16 = scalar_lea.sflag [#allocation24], %s6235_s30  ;;  %s8790_s5 = int_to_ptr.vmem [resolvable:$true] %s3949_s5 }
 0x2ed   : > { %s5563_s21 = scalar_lea.vmem %s8790_s5, 8192  ;;  %s5783_s26 = smov [#allocation23]  }
 0x2ee   : > { %p5564_p9 = scmp.ne.s32.totalorder %s8790_s5, %s5563_s21  ;;  %s5567_s11 = sshll.u32 %s5783_s26, 4  ;;  %s5568_s11 = int_to_ptr.vmem [resolvable:$false] %s5567_s11 }
 0x2ef   : > { %s5569_s13 = scalar_lea.vmem %s5568_s11, 16384  ;;  %p5570_p6 = scmp.lt.s32.totalorder %s8790_s5, %s5568_s11 }
 0x2f0   : > { %p5565_p2 = pnand %p5564_p9, %p9359_p3  ;;  %p5571_p5 = scmp.lt.s32.totalorder %s5569_s13, %s5563_s21 }
 0x2f2   : > { %p5566_p12 = pneg %p5565_p2  ;;  %p5572_p1 = por %p5571_p5, %p5570_p6 }
 0x2f4   : > { %p5573_p13 = pnand %p5572_p1, %p5566_p12 }
 0x2f6   : > { %5576 = shalt.err (!%p5573_p13)
}
 0x2f7   : > { %s5577_s0 = scalar_lea.hbm %s8762_s18, 8192  ;;  %s5581_s7 = scalar_lea.hbm %s9363_s8, 16384 }
 0x2f8   : > { %p5578_p4 = scmp.ne.s32.totalorder %s8762_s18, %s5577_s0  ;;  %p5582_p10 = scmp.lt.s32.totalorder %s8762_s18, %s9363_s8 }
 0x2f9   : > { %p5583_p11 = scmp.lt.s32.totalorder %s5581_s7, %s5577_s0 }
 0x2fa   : > { %p5579_p8 = pnand %p5578_p4, %p9359_p3 }
 0x2fb   : > { %p5584_p0 = por %p5583_p11, %p5582_p10 }
 0x2fc   : > { %p5580_p7 = pneg %p5579_p8 }
 0x2fe   : > { %p5585_p9 = pnand %p5584_p0, %p5580_p7 }
 0x300   : > { %5588 = shalt.err (!%p5585_p9)
}
 0x301   : > { %4775 = dma.vmem_to_hbm [thread:$0]  (%p9359_p3), %s8790_s5, 8192, %s8762_s18, %s3875_s16, %s5780_s19, %s5780_s19, %s5781_s22  }
 0x302   : > { %s9364_s14 = scalar_lea.vmem [#allocation17], %s6235_s30  ;;  %s9365_s30 = sld [smem:[#allocation41_spill]] }
 0x303   : > { %v8818_v52 = vld [vmem:[%s9364_s14] ss:$0 sm:$0xff]  ;;  %s3892_s17 = sshll.u32 %s6296_s9, 4  ;;  %s9366_s28 = sld [smem:[#allocation35_spill]]  ;;  %s8945_s17 = int_to_ptr.vmem [resolvable:$true] %s3892_s17 }
 0x304   : > { %s9367_s5 = sld [smem:[#allocation54_spill]]  ;;  %s5589_s3 = scalar_lea.vmem %s8945_s17, 8192 }
 0x305   : > { %s9368_s21 = sld [smem:[#allocation111_spill]]  ;;  %p5590_p3 = scmp.ne.s32.totalorder %s8945_s17, %s5589_s3 }
 0x306   : > { %s5784_s27 = smov [#allocation19]  }
 0x307   : > { %s5593_s7 = sshll.u32 %s5784_s27, 4  ;;  %s5594_s7 = int_to_ptr.vmem [resolvable:$false] %s5593_s7 }
 0x308   : > { %s4489_s1 = sshll.u32 %s9365_s30, 7  ;;  %s5595_s15 = scalar_lea.vmem %s5594_s7, 16384 }
 0x309   : > { %s3889_s18 = sadd.s32 %s9356_s24, %s4489_s1  ;;  %s9370_s13 = sand.u32 1, %s9366_s28  }
 0x30a   : > { %s4490_s23 = sshll.u32 %s3889_s18, 7  ;;  %s8960_s0 = scalar_lea.sflag [#allocation4], %s9370_s13 }
 0x30b   : > { %s9369_s11 = smov %s9368_s21  ;;  %s8954_s26 = scalar_lea.hbm %s9368_s21, %s4490_s23 }
 0x30c   : > { %p9371_p2 = scmp.ne.s32.totalorder %s9367_s5, 0  ;;  %p5596_p5 = scmp.lt.s32.totalorder %s8945_s17, %s5594_s7 }
 0x30d   : > { %p5597_p1 = scmp.lt.s32.totalorder %s5595_s15, %s5589_s3 }
 0x30e   : > { %p5591_p12 = pnand %p5590_p3, %p9371_p2 }
 0x30f   : > { %p5598_p13 = por %p5597_p1, %p5596_p5 }
 0x310   : > { %p5592_p6 = pneg %p5591_p12 }
 0x312   : > { %p5599_p4 = pnand %p5598_p13, %p5592_p6 }
 0x324   : > { %v4626_v28 = vpop.f32.mrf.mxu0 }
 0x325   : > { %v4674_v14 = vpop.f32.mrf.mxu1  ;;  %v3482_v42 = vadd.f32 %v4626_v28, %v8818_v52 }
 0x326   : > { %v3642_v50 = vadd.f32 %v4674_v14, %v8818_v52  ;;  %v3476_v13 = vpop.f32.mrf.mxu0 }
 0x327   : > { %v3636_v57 = vpop.f32.mrf.mxu1  ;;  %3796 = vst [vmem:[%s6296_s9 + $0x8] sm:$0xff] %v3482_v42  ;;  %v3477_v34 = vadd.f32 %v8818_v52, %v3476_v13 }
 0x328   : > { %3828 = vst [vmem:[%s6296_s9 + $0x108] sm:$0xff] %v3642_v50  ;;  %v3637_v12 = vadd.f32 %v8818_v52, %v3636_v57  ;;  %v4629_v38 = vpop.f32.mrf.mxu0 }
 0x329   : > { %3795 = vst [vmem:[%s6296_s9] sm:$0xff] %v3477_v34  ;;  %v3492_v45 = vadd.f32 %v4629_v38, %v8818_v52 }
 0x32a   : > { %3827 = vst [vmem:[%s6296_s9 + $0x100] sm:$0xff] %v3637_v12  ;;  %v4677_v48 = vpop.f32.mrf.mxu1  ;;  %v3486_v16 = vpop.f32.mrf.mxu0 }
 0x32b   : > { %3798 = vst [vmem:[%s6296_s9 + $0x18] sm:$0xff] %v3492_v45  ;;  %v3652_v59 = vadd.f32 %v4677_v48, %v8818_v52  ;;  %v3487_v30 = vadd.f32 %v8818_v52, %v3486_v16 }
 0x32c   : > { %v3646_v63 = vpop.f32.mrf.mxu1  ;;  %v4632_v3 = vpop.f32.mrf.mxu0 }
 0x32d   : > { %3830 = vst [vmem:[%s6296_s9 + $0x118] sm:$0xff] %v3652_v59  ;;  %3797 = vst [vmem:[%s6296_s9 + $0x10] sm:$0xff] %v3487_v30  ;;  %v3647_v43 = vadd.f32 %v8818_v52, %v3646_v63  ;;  %v3502_v37 = vadd.f32 %v4632_v3, %v8818_v52 }
 0x32e   : > { %v4680_v6 = vpop.f32.mrf.mxu1  ;;  %v3496_v35 = vpop.f32.mrf.mxu0 }
 0x32f   : > { %3829 = vst [vmem:[%s6296_s9 + $0x110] sm:$0xff] %v3647_v43  ;;  %3800 = vst [vmem:[%s6296_s9 + $0x28] sm:$0xff] %v3502_v37  ;;  %v3662_v32 = vadd.f32 %v4680_v6, %v8818_v52  ;;  %v3497_v15 = vadd.f32 %v8818_v52, %v3496_v35 }
 0x330   : > { %v3656_v60 = vpop.f32.mrf.mxu1  ;;  %v4635_v21 = vpop.f32.mrf.mxu0 }
 0x331   : > { %3832 = vst [vmem:[%s6296_s9 + $0x128] sm:$0xff] %v3662_v32  ;;  %3799 = vst [vmem:[%s6296_s9 + $0x20] sm:$0xff] %v3497_v15  ;;  %v3657_v11 = vadd.f32 %v8818_v52, %v3656_v60  ;;  %v3512_v24 = vadd.f32 %v4635_v21, %v8818_v52 }
 0x332   : > { %v3506_v49 = vpop.f32.mrf.mxu0 }
 0x333   : > { %v4683_v18 = vpop.f32.mrf.mxu1  ;;  %3831 = vst [vmem:[%s6296_s9 + $0x120] sm:$0xff] %v3657_v11  ;;  %3802 = vst [vmem:[%s6296_s9 + $0x38] sm:$0xff] %v3512_v24  ;;  %v3507_v62 = vadd.f32 %v8818_v52, %v3506_v49 }
 0x334   : > { %v3672_v17 = vadd.f32 %v4683_v18, %v8818_v52 }
 0x335   : > { %v3666_v2 = vpop.f32.mrf.mxu1  ;;  %v4638_v31 = vpop.f32.mrf.mxu0  ;;  %3801 = vst [vmem:[%s6296_s9 + $0x30] sm:$0xff] %v3507_v62 }
 0x336   : > { %3834 = vst [vmem:[%s6296_s9 + $0x138] sm:$0xff] %v3672_v17  ;;  %v3667_v25 = vadd.f32 %v8818_v52, %v3666_v2  ;;  %v3522_v47 = vadd.f32 %v4638_v31, %v8818_v52 }
 0x337   : > { %v4686_v9 = vpop.f32.mrf.mxu1  ;;  %v3516_v26 = vpop.f32.mrf.mxu0 }
 0x338   : > { %3833 = vst [vmem:[%s6296_s9 + $0x130] sm:$0xff] %v3667_v25  ;;  %3804 = vst [vmem:[%s6296_s9 + $0x48] sm:$0xff] %v3522_v47  ;;  %v3682_v53 = vadd.f32 %v4686_v9, %v8818_v52  ;;  %v3517_v0 = vadd.f32 %v8818_v52, %v3516_v26 }
 0x339   : > { %v3676_v55 = vpop.f32.mrf.mxu1  ;;  %v4641_v46 = vpop.f32.mrf.mxu0 }
 0x33a   : > { %3836 = vst [vmem:[%s6296_s9 + $0x148] sm:$0xff] %v3682_v53  ;;  %3803 = vst [vmem:[%s6296_s9 + $0x40] sm:$0xff] %v3517_v0  ;;  %v3677_v7 = vadd.f32 %v8818_v52, %v3676_v55  ;;  %v3532_v41 = vadd.f32 %v4641_v46, %v8818_v52 }
 0x33b   : > { %v4689_v20 = vpop.f32.mrf.mxu1  ;;  %v3526_v44 = vpop.f32.mrf.mxu0 }
 0x33c   : > { %3835 = vst [vmem:[%s6296_s9 + $0x140] sm:$0xff] %v3677_v7  ;;  %3806 = vst [vmem:[%s6296_s9 + $0x58] sm:$0xff] %v3532_v41  ;;  %v3692_v39 = vadd.f32 %v4689_v20, %v8818_v52  ;;  %v3527_v8 = vadd.f32 %v8818_v52, %v3526_v44 }
 0x33d   : > { %v3686_v58 = vpop.f32.mrf.mxu1  ;;  %v4644_v56 = vpop.f32.mrf.mxu0 }
 0x33e   : > { %3838 = vst [vmem:[%s6296_s9 + $0x158] sm:$0xff] %v3692_v39  ;;  %3805 = vst [vmem:[%s6296_s9 + $0x50] sm:$0xff] %v3527_v8  ;;  %v3687_v22 = vadd.f32 %v8818_v52, %v3686_v58  ;;  %v3542_v40 = vadd.f32 %v4644_v56, %v8818_v52 }
 0x33f   : > { %v4692_v27 = vpop.f32.mrf.mxu1  ;;  %v3536_v19 = vpop.f32.mrf.mxu0 }
 0x340   : > { %3837 = vst [vmem:[%s6296_s9 + $0x150] sm:$0xff] %v3687_v22  ;;  %3808 = vst [vmem:[%s6296_s9 + $0x68] sm:$0xff] %v3542_v40  ;;  %v3702_v4 = vadd.f32 %v4692_v27, %v8818_v52  ;;  %v3537_v33 = vadd.f32 %v8818_v52, %v3536_v19 }
 0x341   : > { %v3696_v54 = vpop.f32.mrf.mxu1 }
 0x342   : > { %3840 = vst [vmem:[%s6296_s9 + $0x168] sm:$0xff] %v3702_v4  ;;  %3807 = vst [vmem:[%s6296_s9 + $0x60] sm:$0xff] %v3537_v33  ;;  %v3697_v10 = vadd.f32 %v8818_v52, %v3696_v54 }
 0x344   : > { %3839 = vst [vmem:[%s6296_s9 + $0x160] sm:$0xff] %v3697_v10 }
 0x345   : > { %v4647_v5 = vpop.f32.mrf.mxu0  ;;  %v4695_v29 = vpop.f32.mrf.mxu1 }
 0x346   : > { %v3552_v36 = vadd.f32 %v4647_v5, %v8818_v52  ;;  %v3712_v23 = vadd.f32 %v4695_v29, %v8818_v52 }
 0x347   : > { %v3546_v51 = vpop.f32.mrf.mxu0  ;;  %v3706_v1 = vpop.f32.mrf.mxu1 }
 0x348   : > { %3810 = vst [vmem:[%s6296_s9 + $0x78] sm:$0xff] %v3552_v36  ;;  %3842 = vst [vmem:[%s6296_s9 + $0x178] sm:$0xff] %v3712_v23  ;;  %v3547_v61 = vadd.f32 %v8818_v52, %v3546_v51  ;;  %v3707_v28 = vadd.f32 %v8818_v52, %v3706_v1 }
 0x34a   : > { %3809 = vst [vmem:[%s6296_s9 + $0x70] sm:$0xff] %v3547_v61  ;;  %3841 = vst [vmem:[%s6296_s9 + $0x170] sm:$0xff] %v3707_v28 }
 0x34d   : > { %v4650_v14 = vpop.f32.mrf.mxu0  ;;  %v4698_v42 = vpop.f32.mrf.mxu1 }
 0x34e   : > { %v3562_v50 = vadd.f32 %v4650_v14, %v8818_v52  ;;  %v3722_v13 = vadd.f32 %v4698_v42, %v8818_v52 }
 0x34f   : > { %v3556_v57 = vpop.f32.mrf.mxu0  ;;  %v3716_v34 = vpop.f32.mrf.mxu1 }
 0x350   : > { %3812 = vst [vmem:[%s6296_s9 + $0x88] sm:$0xff] %v3562_v50  ;;  %3844 = vst [vmem:[%s6296_s9 + $0x188] sm:$0xff] %v3722_v13  ;;  %v3557_v12 = vadd.f32 %v8818_v52, %v3556_v57  ;;  %v3717_v38 = vadd.f32 %v8818_v52, %v3716_v34 }
 0x352   : > { %3811 = vst [vmem:[%s6296_s9 + $0x80] sm:$0xff] %v3557_v12  ;;  %3843 = vst [vmem:[%s6296_s9 + $0x180] sm:$0xff] %v3717_v38 }
 0x355   : > { %v4653_v45 = vpop.f32.mrf.mxu0  ;;  %v4701_v48 = vpop.f32.mrf.mxu1 }
 0x356   : > { %v3572_v16 = vadd.f32 %v4653_v45, %v8818_v52  ;;  %v3732_v59 = vadd.f32 %v4701_v48, %v8818_v52 }
 0x357   : > { %v3566_v30 = vpop.f32.mrf.mxu0  ;;  %v3726_v63 = vpop.f32.mrf.mxu1 }
 0x358   : > { %3814 = vst [vmem:[%s6296_s9 + $0x98] sm:$0xff] %v3572_v16  ;;  %3846 = vst [vmem:[%s6296_s9 + $0x198] sm:$0xff] %v3732_v59  ;;  %v3567_v3 = vadd.f32 %v8818_v52, %v3566_v30  ;;  %v3727_v43 = vadd.f32 %v8818_v52, %v3726_v63 }
 0x35a   : > { %3813 = vst [vmem:[%s6296_s9 + $0x90] sm:$0xff] %v3567_v3  ;;  %3845 = vst [vmem:[%s6296_s9 + $0x190] sm:$0xff] %v3727_v43 }
 0x35d   : > { %v4656_v37 = vpop.f32.mrf.mxu0  ;;  %v4704_v6 = vpop.f32.mrf.mxu1 }
 0x35e   : > { %v3582_v35 = vadd.f32 %v4656_v37, %v8818_v52  ;;  %v3742_v32 = vadd.f32 %v4704_v6, %v8818_v52 }
 0x35f   : > { %v3576_v15 = vpop.f32.mrf.mxu0  ;;  %v3736_v60 = vpop.f32.mrf.mxu1 }
 0x360   : > { %3816 = vst [vmem:[%s6296_s9 + $0xa8] sm:$0xff] %v3582_v35  ;;  %3848 = vst [vmem:[%s6296_s9 + $0x1a8] sm:$0xff] %v3742_v32  ;;  %v3577_v21 = vadd.f32 %v8818_v52, %v3576_v15  ;;  %v3737_v11 = vadd.f32 %v8818_v52, %v3736_v60 }
 0x362   : > { %3815 = vst [vmem:[%s6296_s9 + $0xa0] sm:$0xff] %v3577_v21  ;;  %3847 = vst [vmem:[%s6296_s9 + $0x1a0] sm:$0xff] %v3737_v11 }
 0x365   : > { %v4659_v24 = vpop.f32.mrf.mxu0  ;;  %v4707_v18 = vpop.f32.mrf.mxu1 }
 0x366   : > { %v3592_v49 = vadd.f32 %v4659_v24, %v8818_v52  ;;  %v3752_v17 = vadd.f32 %v4707_v18, %v8818_v52 }
 0x367   : > { %v3586_v62 = vpop.f32.mrf.mxu0  ;;  %v3746_v2 = vpop.f32.mrf.mxu1 }
 0x368   : > { %3818 = vst [vmem:[%s6296_s9 + $0xb8] sm:$0xff] %v3592_v49  ;;  %3850 = vst [vmem:[%s6296_s9 + $0x1b8] sm:$0xff] %v3752_v17  ;;  %v3587_v31 = vadd.f32 %v8818_v52, %v3586_v62  ;;  %v3747_v25 = vadd.f32 %v8818_v52, %v3746_v2 }
 0x36a   : > { %3817 = vst [vmem:[%s6296_s9 + $0xb0] sm:$0xff] %v3587_v31  ;;  %3849 = vst [vmem:[%s6296_s9 + $0x1b0] sm:$0xff] %v3747_v25 }
 0x36d   : > { %v4662_v47 = vpop.f32.mrf.mxu0 }
 0x36e   : > { %v4710_v9 = vpop.f32.mrf.mxu1  ;;  %v3602_v26 = vadd.f32 %v4662_v47, %v8818_v52 }
 0x36f   : > { %v3762_v53 = vadd.f32 %v4710_v9, %v8818_v52  ;;  %v3596_v0 = vpop.f32.mrf.mxu0 }
 0x370   : > { %v3756_v55 = vpop.f32.mrf.mxu1  ;;  %3820 = vst [vmem:[%s6296_s9 + $0xc8] sm:$0xff] %v3602_v26  ;;  %v3597_v46 = vadd.f32 %v8818_v52, %v3596_v0 }
 0x371   : > { %3852 = vst [vmem:[%s6296_s9 + $0x1c8] sm:$0xff] %v3762_v53  ;;  %v3757_v7 = vadd.f32 %v8818_v52, %v3756_v55 }
 0x372   : > { %3819 = vst [vmem:[%s6296_s9 + $0xc0] sm:$0xff] %v3597_v46 }
 0x373   : > { %3851 = vst [vmem:[%s6296_s9 + $0x1c0] sm:$0xff] %v3757_v7 }
 0x375   : > { %v4665_v41 = vpop.f32.mrf.mxu0 }
 0x376   : > { %v4713_v20 = vpop.f32.mrf.mxu1  ;;  %v3612_v44 = vadd.f32 %v4665_v41, %v8818_v52 }
 0x377   : > { %v3772_v39 = vadd.f32 %v4713_v20, %v8818_v52  ;;  %v3606_v8 = vpop.f32.mrf.mxu0 }
 0x378   : > { %v3766_v58 = vpop.f32.mrf.mxu1  ;;  %3822 = vst [vmem:[%s6296_s9 + $0xd8] sm:$0xff] %v3612_v44  ;;  %v3607_v56 = vadd.f32 %v8818_v52, %v3606_v8 }
 0x379   : > { %3854 = vst [vmem:[%s6296_s9 + $0x1d8] sm:$0xff] %v3772_v39  ;;  %v3767_v22 = vadd.f32 %v8818_v52, %v3766_v58 }
 0x37a   : > { %3821 = vst [vmem:[%s6296_s9 + $0xd0] sm:$0xff] %v3607_v56 }
 0x37b   : > { %3853 = vst [vmem:[%s6296_s9 + $0x1d0] sm:$0xff] %v3767_v22 }
 0x37e   : > { %v4668_v40 = vpop.f32.mrf.mxu0  ;;  %v4716_v27 = vpop.f32.mrf.mxu1 }
 0x37f   : > { %v3622_v19 = vadd.f32 %v4668_v40, %v8818_v52  ;;  %v3782_v4 = vadd.f32 %v4716_v27, %v8818_v52 }
 0x380   : > { %v3616_v33 = vpop.f32.mrf.mxu0  ;;  %v3776_v54 = vpop.f32.mrf.mxu1 }
 0x381   : > { %3824 = vst [vmem:[%s6296_s9 + $0xe8] sm:$0xff] %v3622_v19  ;;  %3856 = vst [vmem:[%s6296_s9 + $0x1e8] sm:$0xff] %v3782_v4  ;;  %v3617_v10 = vadd.f32 %v8818_v52, %v3616_v33  ;;  %v3777_v5 = vadd.f32 %v8818_v52, %v3776_v54 }
 0x383   : > { %3823 = vst [vmem:[%s6296_s9 + $0xe0] sm:$0xff] %v3617_v10  ;;  %3855 = vst [vmem:[%s6296_s9 + $0x1e0] sm:$0xff] %v3777_v5 }
 0x386   : > { %v4671_v29 = vpop.f32.mrf.mxu0  ;;  %v4719_v36 = vpop.f32.mrf.mxu1 }
 0x387   : > { %v3632_v23 = vadd.f32 %v4671_v29, %v8818_v52  ;;  %v3792_v51 = vadd.f32 %v4719_v36, %v8818_v52 }
 0x388   : > { %v3626_v1 = vpop.f32.mrf.mxu0  ;;  %v3786_v61 = vpop.f32.mrf.mxu1 }
 0x389   : > { %3826 = vst [vmem:[%s6296_s9 + $0xf8] sm:$0xff] %v3632_v23  ;;  %3858 = vst [vmem:[%s6296_s9 + $0x1f8] sm:$0xff] %v3792_v51  ;;  %v3627_v28 = vadd.f32 %v8818_v52, %v3626_v1  ;;  %v3787_v14 = vadd.f32 %v8818_v52, %v3786_v61 }
 0x38b   : > { %3825 = vst [vmem:[%s6296_s9 + $0xf0] sm:$0xff] %v3627_v28  ;;  %3857 = vst [vmem:[%s6296_s9 + $0x1f0] sm:$0xff] %v3787_v14 }
 0x38c   : > { %5602 = shalt.err (!%p5599_p4)
}
 0x38d   : > { %s5603_s9 = scalar_lea.hbm %s8954_s26, 8192  ;;  %s5607_s30 = scalar_lea.hbm %s9369_s11, 49152 }
 0x38e   : > { %p5604_p8 = scmp.ne.s32.totalorder %s8954_s26, %s5603_s9  ;;  %p5608_p11 = scmp.lt.s32.totalorder %s8954_s26, %s9369_s11 }
 0x38f   : > { %p5609_p0 = scmp.lt.s32.totalorder %s5607_s30, %s5603_s9 }
 0x390   : > { %p5605_p7 = pnand %p5604_p8, %p9371_p2 }
 0x391   : > { %p5610_p9 = por %p5609_p0, %p5608_p11 }
 0x392   : > { %p5606_p10 = pneg %p5605_p7 }
 0x394   : > { %p5611_p3 = pnand %p5610_p9, %p5606_p10 }
 0x396   : > { %5614 = shalt.err (!%p5611_p3)
}
 0x397   : > { %s5785_s28 = smov 256  }
 0x398   : > { %4772 = dma.vmem_to_hbm [thread:$0]  (%p9371_p2), %s8945_s17, 8192, %s8954_s26, %s8960_s0, %s5780_s19, %s5785_s28, %s5781_s22  }
 0x399 PF: > { %s9372_s23 = sld [smem:[#allocation44_spill]] }
 0x39a   : > { %s9373_s24 = sld [smem:[#allocation34_spill]] }
 0x39b   : > { %s9374_s16 = sld [smem:[#allocation56_spill]] }
 0x39f   : > { %p4825_p12 = scmp.ge.s32.totalorder %s9372_s23, 2 }
 0x3a0   : > { %s3964_s21 = sand.u32 1, %s9373_s24  }
 0x3a1   : > { %p9375_p6 = scmp.ne.s32.totalorder %s9374_s16, 0  ;;  %s3965_s13 = scalar_lea.sflag [#allocation4], %s3964_s21 }
 0x3a3   : > { %p4812_p5 = pnand %p4825_p12, %p9375_p6 }
 0x3a5   : > { %p4813_p1 = pneg %p4812_p5 }
 0x3a7   : > { %5696 = dma.done.wait (%p4813_p1), %s3965_s13, 8192  }
 0x3a8   : > { %5698 = vsyncadd (%p4813_p1), %s3965_s13, 4294959104  ;;  %s9376_s5 = sadd.s32 4294967294, %s9372_s23   ;;  %s9377_s3 = sld [smem:[#allocation46_spill]] }
 0x3a9   : > { %s3973_s27 = sand.u32 1, %s9376_s5  }
 0x3aa   : > { %s3974_s19 = scalar_lea.sflag [#allocation21], %s3973_s27 }
 0x3ae   : > { %p9378_p13 = scmp.ne.s32.totalorder %s9377_s3, 0 }
 0x3b0   : > { %p4815_p4 = pnand %p4825_p12, %p9378_p13 }
 0x3b2   : > { %p4816_p8 = pneg %p4815_p4 }
 0x3b4   : > { %5700 = dma.done.wait (%p4816_p8), %s3974_s19, 16384  }
 0x3b5   : > { %5702 = vsyncadd (%p4816_p8), %s3974_s19, 4294950912  ;;  %s9379_s22 = sld [smem:[#allocation37_spill]] }
 0x3bb   : > { %s3991_s17 = sand.u32 1, %s9379_s22  }
 0x3bc   : > { %s3992_s26 = scalar_lea.sflag [#allocation24], %s3991_s17 }
 0x3bd   : > { %5704 = dma.done.wait (%p4816_p8), %s3992_s26, 8192  }
 0x3be   : > { %5706 = vsyncadd (%p4816_p8), %s3992_s26, 4294959104  ;;  %s52_s26 = sadd.s32 1, %s9372_s23   ;;  %s9381_s29 = sld [smem:[#allocation35_spill]] }
 0x3bf   : > { %p8995_p2 = scmp.ge.s32.totalorder %s52_s26, 8   ;;  %s9382_s30 = sld [smem:[#allocation36_spill]] }
 0x3c0   : > { %s9383_s15 = sld [smem:[#allocation53_spill]]  ;;  %s9392_s19 = smov %s5737_s20 }
 0x3c1   : > { %s9384_s16 = sld [smem:[#allocation38_spill]]  ;;  %s9394_s23 = smov %s5757_s25 }
 0x3c2   : > { %s9385_s17 = sld [smem:[#allocation39_spill]] }
 0x3c3   : > { %s9386_s18 = sld [smem:[#allocation52_spill]] }
 0x3c4   : > { %s9387_s7 = sld [smem:[#allocation40_spill]] }
 0x3c5   : > { %s9388_s21 = sld [smem:[#allocation51_spill]] }
 0x3c6   : > { %s9389_s22 = sld [smem:[#allocation43_spill]] }
 0x3c7   : > { %s9390_s24 = sld [smem:[#allocation49_spill]] }
 0x3c8   : > { %s9391_s9 = sld [smem:[#allocation50_spill]] }
 0x3ca   : > { %s9393_s20 = smov %s9387_s7  ;;  %51 = sbr.rel (!%p8995_p2) target bundleno = 40 (0x28), region = 274 }
 0x3ce   : > { %s9395_s25 = smov %s9391_s9 }
 0x3cf   :  { %3997 = vsyncpa [#allocation3], 1 }
 0x3d0   :  { %3999 = vsyncpa [#allocation3 + $0x1], 1 }
 0x3d1   :  { %4000 = vsyncpa [#allocation6], 1 }
 0x3d2   :  { %4002 = vsyncpa [#allocation6 + $0x1], 1 }
 0x3d3   :  { %4003 = vsyncpa [#allocation9], 1 }
 0x3d4   :  { %4005 = vsyncpa [#allocation9 + $0x1], 1 }
 0x3d5   :  { %4006 = vsyncpa [#allocation12], 1 }
 0x3d6   :  { %4008 = vsyncpa [#allocation12 + $0x1], 1 }
 0x3d7   :  { %4009 = vsyncpa [#allocation15], 1 }
 0x3d8   :  { %4011 = vsyncpa [#allocation15 + $0x1], 1 }
 0x3d9   :  { %4012 = vsyncpa [#allocation18], 1 }
 0x3da   :  { %4014 = vsyncpa [#allocation18 + $0x1], 1 }
 0x3db   :  { %4015 = vsyncpa [#allocation4], 1 }
 0x3dc   :  { %4017 = vsyncpa [#allocation4 + $0x1], 1 }
 0x3dd   :  { %4018 = vsyncpa [#allocation21], 1 }
 0x3de   :  { %4020 = vsyncpa [#allocation21 + $0x1], 1 }
 0x3df   :  { %4021 = vsyncpa [#allocation24], 1 }
 0x3e0   :  { %4023 = vsyncpa [#allocation24 + $0x1], 1 }

</bundles_post_ra>
